<compile_context>
chip_gen: v7x
topology: tpu7x:2x2x1
jax: 0.10.0
libtpu: 0.0.40
codegen_flags: <defaults>
</compile_context>

<pallas_src>
import jax
import jax.numpy as jnp
from jax.experimental import pallas as pl
from jax.experimental.pallas import tpu as pltpu


N_RESOURCE = 9     # number of resource embedding tables
EMB_DIM = 128      # nn.Embedding(3, 128)
CLIP_DIM = 512     # CLIP ViT-B/32 text feature width


def _embed3(idx_col, tbl):
    """Lookup into a 3-row embedding table via VPU selects.

    idx_col: (T, 1) int32 with values in {0, 1, 2}
    tbl:     (3, 128) f32
    returns: (T, 128) f32
    """
    r0 = tbl[0:1, :]
    r1 = tbl[1:2, :]
    r2 = tbl[2:3, :]
    return jnp.where(idx_col == 0, r0, jnp.where(idx_col == 1, r1, r2))


def _subgoal_kernel(
    text_ref,        # (1, 1, 512)   f32   CLIP feature for this batch element
    recipe_ref,      # (1, T, 1)     int32
    table_ref,       # (1, T, 1)     int32
    layout_ref,      # (1, 9, T, 1)  int32
    w_ffn_ref,       # (512, C_half) f32
    b_ffn_ref,       # (1, C_half)   f32
    recipe_tbl_ref,  # (3, 128)      f32
    table_tbl_ref,   # (3, 128)      f32
    res_tbl_ref,     # (9, 3, 128)   f32
    w_text_ref,      # (C_half, C)   f32   rows [0, C_half) of final weight
    w_recipe_ref,    # (128, C)      f32
    w_table_ref,     # (128, C)      f32
    w_res_ref,       # (9, 128, C)   f32
    b_final_ref,     # (1, C)        f32
    out_ref,         # (1, T, C)     f32
):
    f32 = jnp.float32

    # ---- text branch: CLIP feature -> ffn -> text slice of final_layer ----
    text = text_ref[0]                                                    # (1, 512)
    text_h = (jnp.dot(text, w_ffn_ref[...], preferred_element_type=f32)
              + b_ffn_ref[...])                                           # (1, C_half)
    acc = jnp.dot(text_h, w_text_ref[...], preferred_element_type=f32)    # (1, C) -> broadcast over T

    # ---- recipe / table embeddings folded straight into the final matmul ----
    rec_emb = _embed3(recipe_ref[0], recipe_tbl_ref[...])                 # (T, 128)
    acc = acc + jnp.dot(rec_emb, w_recipe_ref[...], preferred_element_type=f32)

    tab_emb = _embed3(table_ref[0], table_tbl_ref[...])                   # (T, 128)
    acc = acc + jnp.dot(tab_emb, w_table_ref[...], preferred_element_type=f32)

    # ---- nine resource embeddings, each contracted with its weight slice ----
    lay = layout_ref[0]                                                   # (9, T, 1)
    for i in range(N_RESOURCE):
        emb_i = _embed3(lay[i], res_tbl_ref[i])                           # (T, 128)
        acc = acc + jnp.dot(emb_i, w_res_ref[i], preferred_element_type=f32)

    out_ref[0] = acc + b_final_ref[...]                                   # (T, C), lane-dense


def subgoal_embedding_forward(params, text_feats, recipe, table, layout):
    """text_feats: (B, 512) f32 CLIP text features,
    recipe/table: (B, T) int in [0,3), layout: (B, T, 9) int in [0,3).
    Returns (B, T, condition_dim) f32."""
    B, T = recipe.shape
    C_half = params["w_ffn"].shape[1]
    C_out = params["b_final"].shape[0]

    # Split the final_layer weight rows to match the torch.cat feature order:
    # [text (C_half), recipe (128), table (128), resources (9*128)].
    w_final = params["w_final"]
    w_text = w_final[:C_half]
    w_recipe = w_final[C_half:C_half + EMB_DIM]
    w_table = w_final[C_half + EMB_DIM:C_half + 2 * EMB_DIM]
    w_res = w_final[C_half + 2 * EMB_DIM:].reshape(N_RESOURCE, EMB_DIM, C_out)

    # Layouts chosen so every BlockSpec's trailing dims equal the full array dims.
    text3 = text_feats.astype(jnp.float32).reshape(B, 1, CLIP_DIM)
    recipe3 = recipe.astype(jnp.int32).reshape(B, T, 1)
    table3 = table.astype(jnp.int32).reshape(B, T, 1)
    layout4 = layout.astype(jnp.int32).transpose(0, 2, 1).reshape(B, N_RESOURCE, T, 1)
    b_ffn = params["b_ffn"].reshape(1, C_half)
    b_final = params["b_final"].reshape(1, C_out)

    in_specs = [
        pl.BlockSpec((1, 1, CLIP_DIM), lambda b: (b, 0, 0)),
        pl.BlockSpec((1, T, 1), lambda b: (b, 0, 0)),
        pl.BlockSpec((1, T, 1), lambda b: (b, 0, 0)),
        pl.BlockSpec((1, N_RESOURCE, T, 1), lambda b: (b, 0, 0, 0)),
        pl.BlockSpec((CLIP_DIM, C_half), lambda b: (0, 0)),
        pl.BlockSpec((1, C_half), lambda b: (0, 0)),
        pl.BlockSpec((3, EMB_DIM), lambda b: (0, 0)),
        pl.BlockSpec((3, EMB_DIM), lambda b: (0, 0)),
        pl.BlockSpec((N_RESOURCE, 3, EMB_DIM), lambda b: (0, 0, 0)),
        pl.BlockSpec((C_half, C_out), lambda b: (0, 0)),
        pl.BlockSpec((EMB_DIM, C_out), lambda b: (0, 0)),
        pl.BlockSpec((EMB_DIM, C_out), lambda b: (0, 0)),
        pl.BlockSpec((N_RESOURCE, EMB_DIM, C_out), lambda b: (0, 0, 0)),
        pl.BlockSpec((1, C_out), lambda b: (0, 0)),
    ]

    return pl.pallas_call(
        _subgoal_kernel,
        out_shape=jax.ShapeDtypeStruct((B, T, C_out), jnp.float32),
        grid=(B,),
        in_specs=in_specs,
        out_specs=pl.BlockSpec((1, T, C_out), lambda b: (b, 0, 0)),
        compiler_params=pltpu.CompilerParams(
            dimension_semantics=("parallel",),
            vmem_limit_bytes=32 * 1024 * 1024,
        ),
    )(
        text3, recipe3, table3, layout4,
        params["w_ffn"], b_ffn,
        params["recipe_tbl"], params["table_tbl"], params["resource_tbl"],
        w_text, w_recipe, w_table, w_res, b_final,
    )


# ----------------------------------------------------------------------------
# Deterministic parameter init (shapes mirror the PyTorch module)
# ----------------------------------------------------------------------------

def init_params(key, condition_dim=512):
    C_half = condition_dim // 2
    in_dim = C_half + 2 * EMB_DIM + N_RESOURCE * EMB_DIM
    ks = jax.random.split(key, 5)

    def nrm(k, shape, scale=0.02):
        return jax.random.normal(k, shape, jnp.float32) * scale

    return {
        "w_ffn": nrm(ks[0], (CLIP_DIM, C_half)),                     # ffn: Linear(512, cond//2)
        "b_ffn": jnp.zeros((C_half,), jnp.float32),
        "recipe_tbl": nrm(ks[1], (3, EMB_DIM), 1.0),                 # nn.Embedding(3,128)
        "table_tbl": nrm(ks[2], (3, EMB_DIM), 1.0),
        "resource_tbl": nrm(ks[3], (N_RESOURCE, 3, EMB_DIM), 1.0),   # 9 x nn.Embedding(3,128)
        "w_final": nrm(ks[4], (in_dim, condition_dim)),              # Linear(1664, cond)
        "b_final": jnp.zeros((condition_dim,), jnp.float32),
    }


def reference_forward(params, text_feats, recipe, table, layout):
    """Pure-JAX reference mirroring the PyTorch forward (concat + one matmul)."""
    B, T = recipe.shape
    C_half = params["w_ffn"].shape[1]
    text = text_feats @ params["w_ffn"] + params["b_ffn"]
    text = jnp.broadcast_to(text[:, None, :], (B, T, C_half))
    rec = params["recipe_tbl"][recipe]
    tab = params["table_tbl"][table]
    res = jnp.concatenate(
        [params["resource_tbl"][i][layout[:, :, i]] for i in range(N_RESOURCE)],
        axis=-1)
    feat = jnp.concatenate([text, rec, tab, res], axis=-1)
    return feat @ params["w_final"] + params["b_final"]


if __name__ == "__main__":
    condition_dim = 512
    B, T = 2, 8

    key = jax.random.PRNGKey(0)
    kp, kt, kr, kb, kl = jax.random.split(key, 5)
    params = init_params(kp, condition_dim)

    # TODO(synk): CLIP text encoder is a frozen external model; feed its 512-d
    # features directly.
    text_feats = jax.random.normal(kt, (B, CLIP_DIM), jnp.float32)
    recipe = jax.random.randint(kr, (B, T), 0, 3, jnp.int32)
    table = jax.random.randint(kb, (B, T), 0, 3, jnp.int32)
    layout = jax.random.randint(kl, (B, T, N_RESOURCE), 0, 3, jnp.int32)

    out = subgoal_embedding_forward(params, text_feats, recipe, table, layout)
    out = jax.block_until_ready(out)

    ref = reference_forward(params, text_feats, recipe, table, layout)
    assert out.shape == (B, T, condition_dim), out.shape
    assert bool(jnp.all(jnp.isfinite(out)))
    assert bool(jnp.allclose(out, ref, rtol=1e-3, atol=1e-3))
    print("KERNEL_OK")
</pallas_src>

<mosaic_0001>
module attributes {stable_mosaic.version = 11 : i64} {
  func.func @_subgoal_kernel(%arg0: i32, %arg1: memref<1x1x512xf32, #tpu.memory_space<vmem>>, %arg2: memref<1x8x1xi32, #tpu.memory_space<vmem>>, %arg3: memref<1x8x1xi32, #tpu.memory_space<vmem>>, %arg4: memref<1x9x8x1xi32, #tpu.memory_space<vmem>>, %arg5: memref<512x256xf32, #tpu.memory_space<vmem>>, %arg6: memref<1x256xf32, #tpu.memory_space<vmem>>, %arg7: memref<3x128xf32, #tpu.memory_space<vmem>>, %arg8: memref<3x128xf32, #tpu.memory_space<vmem>>, %arg9: memref<9x3x128xf32, #tpu.memory_space<vmem>>, %arg10: memref<256x512xf32, #tpu.memory_space<vmem>>, %arg11: memref<128x512xf32, #tpu.memory_space<vmem>>, %arg12: memref<128x512xf32, #tpu.memory_space<vmem>>, %arg13: memref<9x128x512xf32, #tpu.memory_space<vmem>>, %arg14: memref<1x512xf32, #tpu.memory_space<vmem>>, %arg15: memref<1x8x512xf32, #tpu.memory_space<vmem>>) attributes {dimension_semantics = [#tpu.dimension_semantics<parallel>], iteration_bounds = array<i64: 2>, scalar_prefetch = 0 : i64, scratch_operands = 0 : i64, tpu.core_type = #tpu.core_type<tc>, window_params = [{transform_indices = @transform_0, window_bounds = array<i64: 1, 1, 512>}, {transform_indices = @transform_1, window_bounds = array<i64: 1, 8, 1>}, {transform_indices = @transform_2, window_bounds = array<i64: 1, 8, 1>}, {transform_indices = @transform_3, window_bounds = array<i64: 1, 9, 8, 1>}, {pipeline_mode = #tpu.pipeline_mode<synchronous>, transform_indices = @transform_4, window_bounds = array<i64: 512, 256>}, {pipeline_mode = #tpu.pipeline_mode<synchronous>, transform_indices = @transform_5, window_bounds = array<i64: 1, 256>}, {pipeline_mode = #tpu.pipeline_mode<synchronous>, transform_indices = @transform_6, window_bounds = array<i64: 3, 128>}, {pipeline_mode = #tpu.pipeline_mode<synchronous>, transform_indices = @transform_7, window_bounds = array<i64: 3, 128>}, {pipeline_mode = #tpu.pipeline_mode<synchronous>, transform_indices = @transform_8, window_bounds = array<i64: 9, 3, 128>}, {pipeline_mode = #tpu.pipeline_mode<synchronous>, transform_indices = @transform_9, window_bounds = array<i64: 256, 512>}, {pipeline_mode = #tpu.pipeline_mode<synchronous>, transform_indices = @transform_10, window_bounds = array<i64: 128, 512>}, {pipeline_mode = #tpu.pipeline_mode<synchronous>, transform_indices = @transform_11, window_bounds = array<i64: 128, 512>}, {pipeline_mode = #tpu.pipeline_mode<synchronous>, transform_indices = @transform_12, window_bounds = array<i64: 9, 128, 512>}, {pipeline_mode = #tpu.pipeline_mode<synchronous>, transform_indices = @transform_13, window_bounds = array<i64: 1, 512>}, {transform_indices = @transform_14, window_bounds = array<i64: 1, 8, 512>}]} {
    %c0 = arith.constant 0 : index
    %c0_0 = arith.constant 0 : index
    %c0_1 = arith.constant 0 : index
    %0 = vector.load %arg1[%c0, %c0_0, %c0_1] : memref<1x1x512xf32, #tpu.memory_space<vmem>>, vector<1x1x512xf32>
    %1 = vector.shape_cast %0 : vector<1x1x512xf32> to vector<1x512xf32>
    %c0_2 = arith.constant 0 : index
    %c0_3 = arith.constant 0 : index
    %2 = vector.load %arg5[%c0_2, %c0_3] : memref<512x256xf32, #tpu.memory_space<vmem>>, vector<512x256xf32>
    %cst = arith.constant dense<0.000000e+00> : vector<1x256xf32>
    %3 = tpu.matmul %1, %2, %cst {dimension_numbers = #tpu.dot_dimension_numbers<[1], [0], [0], [1], [0, 0, 1, 1], [], []>} : vector<1x512xf32>, vector<512x256xf32>, vector<1x256xf32> -> vector<1x256xf32>
    %c0_4 = arith.constant 0 : index
    %c0_5 = arith.constant 0 : index
    %4 = vector.load %arg6[%c0_4, %c0_5] : memref<1x256xf32, #tpu.memory_space<vmem>>, vector<1x256xf32>
    %5 = arith.addf %3, %4 : vector<1x256xf32>
    %c0_6 = arith.constant 0 : index
    %c0_7 = arith.constant 0 : index
    %6 = vector.load %arg10[%c0_6, %c0_7] : memref<256x512xf32, #tpu.memory_space<vmem>>, vector<256x512xf32>
    %cst_8 = arith.constant dense<0.000000e+00> : vector<1x512xf32>
    %7 = tpu.matmul %5, %6, %cst_8 {dimension_numbers = #tpu.dot_dimension_numbers<[1], [0], [0], [1], [0, 0, 1, 1], [], []>} : vector<1x256xf32>, vector<256x512xf32>, vector<1x512xf32> -> vector<1x512xf32>
    %c0_9 = arith.constant 0 : index
    %c0_10 = arith.constant 0 : index
    %c0_11 = arith.constant 0 : index
    %8 = vector.load %arg2[%c0_9, %c0_10, %c0_11] : memref<1x8x1xi32, #tpu.memory_space<vmem>>, vector<1x8x1xi32>
    %9 = vector.shape_cast %8 : vector<1x8x1xi32> to vector<8x1xi32>
    %c0_12 = arith.constant 0 : index
    %c0_13 = arith.constant 0 : index
    %10 = vector.load %arg7[%c0_12, %c0_13] : memref<3x128xf32, #tpu.memory_space<vmem>>, vector<3x128xf32>
    %11 = vector.extract_strided_slice %10 {offsets = [0, 0], sizes = [1, 128], strides = [1, 1]} : vector<3x128xf32> to vector<1x128xf32>
    %12 = vector.extract_strided_slice %10 {offsets = [1, 0], sizes = [1, 128], strides = [1, 1]} : vector<3x128xf32> to vector<1x128xf32>
    %13 = vector.extract_strided_slice %10 {offsets = [2, 0], sizes = [1, 128], strides = [1, 1]} : vector<3x128xf32> to vector<1x128xf32>
    %c0_i32 = arith.constant 0 : i32
    %14 = vector.broadcast %c0_i32 : i32 to vector<8x1xi32>
    %15 = arith.cmpi eq, %9, %14 : vector<8x1xi32>
    %c1_i32 = arith.constant 1 : i32
    %16 = vector.broadcast %c1_i32 : i32 to vector<8x1xi32>
    %17 = arith.cmpi eq, %9, %16 : vector<8x1xi32>
    %18 = vector.shape_cast %17 : vector<8x1xi1> to vector<8x1xi1>
    %19 = vector.broadcast %18 : vector<8x1xi1> to vector<8x128xi1>
    %20 = vector.shape_cast %12 : vector<1x128xf32> to vector<1x128xf32>
    %21 = vector.broadcast %20 : vector<1x128xf32> to vector<8x128xf32>
    %22 = vector.shape_cast %13 : vector<1x128xf32> to vector<1x128xf32>
    %23 = vector.broadcast %22 : vector<1x128xf32> to vector<8x128xf32>
    %24 = arith.select %19, %21, %23 : vector<8x128xi1>, vector<8x128xf32>
    %25 = vector.shape_cast %15 : vector<8x1xi1> to vector<8x1xi1>
    %26 = vector.broadcast %25 : vector<8x1xi1> to vector<8x128xi1>
    %27 = vector.shape_cast %11 : vector<1x128xf32> to vector<1x128xf32>
    %28 = vector.broadcast %27 : vector<1x128xf32> to vector<8x128xf32>
    %29 = arith.select %26, %28, %24 : vector<8x128xi1>, vector<8x128xf32>
    %c0_14 = arith.constant 0 : index
    %c0_15 = arith.constant 0 : index
    %30 = vector.load %arg11[%c0_14, %c0_15] : memref<128x512xf32, #tpu.memory_space<vmem>>, vector<128x512xf32>
    %cst_16 = arith.constant dense<0.000000e+00> : vector<8x512xf32>
    %31 = tpu.matmul %29, %30, %cst_16 {dimension_numbers = #tpu.dot_dimension_numbers<[1], [0], [0], [1], [0, 0, 1, 1], [], []>} : vector<8x128xf32>, vector<128x512xf32>, vector<8x512xf32> -> vector<8x512xf32>
    %32 = vector.broadcast %7 : vector<1x512xf32> to vector<8x512xf32>
    %33 = arith.addf %32, %31 : vector<8x512xf32>
    %c0_17 = arith.constant 0 : index
    %c0_18 = arith.constant 0 : index
    %c0_19 = arith.constant 0 : index
    %34 = vector.load %arg3[%c0_17, %c0_18, %c0_19] : memref<1x8x1xi32, #tpu.memory_space<vmem>>, vector<1x8x1xi32>
    %35 = vector.shape_cast %34 : vector<1x8x1xi32> to vector<8x1xi32>
    %c0_20 = arith.constant 0 : index
    %c0_21 = arith.constant 0 : index
    %36 = vector.load %arg8[%c0_20, %c0_21] : memref<3x128xf32, #tpu.memory_space<vmem>>, vector<3x128xf32>
    %37 = vector.extract_strided_slice %36 {offsets = [0, 0], sizes = [1, 128], strides = [1, 1]} : vector<3x128xf32> to vector<1x128xf32>
    %38 = vector.extract_strided_slice %36 {offsets = [1, 0], sizes = [1, 128], strides = [1, 1]} : vector<3x128xf32> to vector<1x128xf32>
    %39 = vector.extract_strided_slice %36 {offsets = [2, 0], sizes = [1, 128], strides = [1, 1]} : vector<3x128xf32> to vector<1x128xf32>
    %c0_i32_22 = arith.constant 0 : i32
    %40 = vector.broadcast %c0_i32_22 : i32 to vector<8x1xi32>
    %41 = arith.cmpi eq, %35, %40 : vector<8x1xi32>
    %c1_i32_23 = arith.constant 1 : i32
    %42 = vector.broadcast %c1_i32_23 : i32 to vector<8x1xi32>
    %43 = arith.cmpi eq, %35, %42 : vector<8x1xi32>
    %44 = vector.shape_cast %43 : vector<8x1xi1> to vector<8x1xi1>
    %45 = vector.broadcast %44 : vector<8x1xi1> to vector<8x128xi1>
    %46 = vector.shape_cast %38 : vector<1x128xf32> to vector<1x128xf32>
    %47 = vector.broadcast %46 : vector<1x128xf32> to vector<8x128xf32>
    %48 = vector.shape_cast %39 : vector<1x128xf32> to vector<1x128xf32>
    %49 = vector.broadcast %48 : vector<1x128xf32> to vector<8x128xf32>
    %50 = arith.select %45, %47, %49 : vector<8x128xi1>, vector<8x128xf32>
    %51 = vector.shape_cast %41 : vector<8x1xi1> to vector<8x1xi1>
    %52 = vector.broadcast %51 : vector<8x1xi1> to vector<8x128xi1>
    %53 = vector.shape_cast %37 : vector<1x128xf32> to vector<1x128xf32>
    %54 = vector.broadcast %53 : vector<1x128xf32> to vector<8x128xf32>
    %55 = arith.select %52, %54, %50 : vector<8x128xi1>, vector<8x128xf32>
    %c0_24 = arith.constant 0 : index
    %c0_25 = arith.constant 0 : index
    %56 = vector.load %arg12[%c0_24, %c0_25] : memref<128x512xf32, #tpu.memory_space<vmem>>, vector<128x512xf32>
    %cst_26 = arith.constant dense<0.000000e+00> : vector<8x512xf32>
    %57 = tpu.matmul %55, %56, %cst_26 {dimension_numbers = #tpu.dot_dimension_numbers<[1], [0], [0], [1], [0, 0, 1, 1], [], []>} : vector<8x128xf32>, vector<128x512xf32>, vector<8x512xf32> -> vector<8x512xf32>
    %58 = arith.addf %33, %57 : vector<8x512xf32>
    %c0_27 = arith.constant 0 : index
    %c0_28 = arith.constant 0 : index
    %c0_29 = arith.constant 0 : index
    %c0_30 = arith.constant 0 : index
    %59 = vector.load %arg4[%c0_27, %c0_28, %c0_29, %c0_30] : memref<1x9x8x1xi32, #tpu.memory_space<vmem>>, vector<1x9x8x1xi32>
    %60 = vector.shape_cast %59 : vector<1x9x8x1xi32> to vector<9x8x1xi32>
    %61 = vector.extract_strided_slice %60 {offsets = [0, 0, 0], sizes = [1, 8, 1], strides = [1, 1, 1]} : vector<9x8x1xi32> to vector<1x8x1xi32>
    %62 = vector.shape_cast %61 : vector<1x8x1xi32> to vector<8x1xi32>
    %c0_31 = arith.constant 0 : index
    %c0_32 = arith.constant 0 : index
    %c0_33 = arith.constant 0 : index
    %63 = vector.load %arg9[%c0_31, %c0_32, %c0_33] : memref<9x3x128xf32, #tpu.memory_space<vmem>>, vector<1x3x128xf32>
    %64 = vector.shape_cast %63 : vector<1x3x128xf32> to vector<3x128xf32>
    %65 = vector.extract_strided_slice %64 {offsets = [0, 0], sizes = [1, 128], strides = [1, 1]} : vector<3x128xf32> to vector<1x128xf32>
    %66 = vector.extract_strided_slice %64 {offsets = [1, 0], sizes = [1, 128], strides = [1, 1]} : vector<3x128xf32> to vector<1x128xf32>
    %67 = vector.extract_strided_slice %64 {offsets = [2, 0], sizes = [1, 128], strides = [1, 1]} : vector<3x128xf32> to vector<1x128xf32>
    %c0_i32_34 = arith.constant 0 : i32
    %68 = vector.broadcast %c0_i32_34 : i32 to vector<8x1xi32>
    %69 = arith.cmpi eq, %62, %68 : vector<8x1xi32>
    %c1_i32_35 = arith.constant 1 : i32
    %70 = vector.broadcast %c1_i32_35 : i32 to vector<8x1xi32>
    %71 = arith.cmpi eq, %62, %70 : vector<8x1xi32>
    %72 = vector.shape_cast %71 : vector<8x1xi1> to vector<8x1xi1>
    %73 = vector.broadcast %72 : vector<8x1xi1> to vector<8x128xi1>
    %74 = vector.shape_cast %66 : vector<1x128xf32> to vector<1x128xf32>
    %75 = vector.broadcast %74 : vector<1x128xf32> to vector<8x128xf32>
    %76 = vector.shape_cast %67 : vector<1x128xf32> to vector<1x128xf32>
    %77 = vector.broadcast %76 : vector<1x128xf32> to vector<8x128xf32>
    %78 = arith.select %73, %75, %77 : vector<8x128xi1>, vector<8x128xf32>
    %79 = vector.shape_cast %69 : vector<8x1xi1> to vector<8x1xi1>
    %80 = vector.broadcast %79 : vector<8x1xi1> to vector<8x128xi1>
    %81 = vector.shape_cast %65 : vector<1x128xf32> to vector<1x128xf32>
    %82 = vector.broadcast %81 : vector<1x128xf32> to vector<8x128xf32>
    %83 = arith.select %80, %82, %78 : vector<8x128xi1>, vector<8x128xf32>
    %c0_36 = arith.constant 0 : index
    %c0_37 = arith.constant 0 : index
    %c0_38 = arith.constant 0 : index
    %84 = vector.load %arg13[%c0_36, %c0_37, %c0_38] : memref<9x128x512xf32, #tpu.memory_space<vmem>>, vector<1x128x512xf32>
    %85 = vector.shape_cast %84 : vector<1x128x512xf32> to vector<128x512xf32>
    %cst_39 = arith.constant dense<0.000000e+00> : vector<8x512xf32>
    %86 = tpu.matmul %83, %85, %cst_39 {dimension_numbers = #tpu.dot_dimension_numbers<[1], [0], [0], [1], [0, 0, 1, 1], [], []>} : vector<8x128xf32>, vector<128x512xf32>, vector<8x512xf32> -> vector<8x512xf32>
    %87 = arith.addf %58, %86 : vector<8x512xf32>
    %88 = vector.extract_strided_slice %60 {offsets = [1, 0, 0], sizes = [1, 8, 1], strides = [1, 1, 1]} : vector<9x8x1xi32> to vector<1x8x1xi32>
    %89 = vector.shape_cast %88 : vector<1x8x1xi32> to vector<8x1xi32>
    %c1 = arith.constant 1 : index
    %c0_40 = arith.constant 0 : index
    %c0_41 = arith.constant 0 : index
    %90 = vector.load %arg9[%c1, %c0_40, %c0_41] : memref<9x3x128xf32, #tpu.memory_space<vmem>>, vector<1x3x128xf32>
    %91 = vector.shape_cast %90 : vector<1x3x128xf32> to vector<3x128xf32>
    %92 = vector.extract_strided_slice %91 {offsets = [0, 0], sizes = [1, 128], strides = [1, 1]} : vector<3x128xf32> to vector<1x128xf32>
    %93 = vector.extract_strided_slice %91 {offsets = [1, 0], sizes = [1, 128], strides = [1, 1]} : vector<3x128xf32> to vector<1x128xf32>
    %94 = vector.extract_strided_slice %91 {offsets = [2, 0], sizes = [1, 128], strides = [1, 1]} : vector<3x128xf32> to vector<1x128xf32>
    %c0_i32_42 = arith.constant 0 : i32
    %95 = vector.broadcast %c0_i32_42 : i32 to vector<8x1xi32>
    %96 = arith.cmpi eq, %89, %95 : vector<8x1xi32>
    %c1_i32_43 = arith.constant 1 : i32
    %97 = vector.broadcast %c1_i32_43 : i32 to vector<8x1xi32>
    %98 = arith.cmpi eq, %89, %97 : vector<8x1xi32>
    %99 = vector.shape_cast %98 : vector<8x1xi1> to vector<8x1xi1>
    %100 = vector.broadcast %99 : vector<8x1xi1> to vector<8x128xi1>
    %101 = vector.shape_cast %93 : vector<1x128xf32> to vector<1x128xf32>
    %102 = vector.broadcast %101 : vector<1x128xf32> to vector<8x128xf32>
    %103 = vector.shape_cast %94 : vector<1x128xf32> to vector<1x128xf32>
    %104 = vector.broadcast %103 : vector<1x128xf32> to vector<8x128xf32>
    %105 = arith.select %100, %102, %104 : vector<8x128xi1>, vector<8x128xf32>
    %106 = vector.shape_cast %96 : vector<8x1xi1> to vector<8x1xi1>
    %107 = vector.broadcast %106 : vector<8x1xi1> to vector<8x128xi1>
    %108 = vector.shape_cast %92 : vector<1x128xf32> to vector<1x128xf32>
    %109 = vector.broadcast %108 : vector<1x128xf32> to vector<8x128xf32>
    %110 = arith.select %107, %109, %105 : vector<8x128xi1>, vector<8x128xf32>
    %c1_44 = arith.constant 1 : index
    %c0_45 = arith.constant 0 : index
    %c0_46 = arith.constant 0 : index
    %111 = vector.load %arg13[%c1_44, %c0_45, %c0_46] : memref<9x128x512xf32, #tpu.memory_space<vmem>>, vector<1x128x512xf32>
    %112 = vector.shape_cast %111 : vector<1x128x512xf32> to vector<128x512xf32>
    %cst_47 = arith.constant dense<0.000000e+00> : vector<8x512xf32>
    %113 = tpu.matmul %110, %112, %cst_47 {dimension_numbers = #tpu.dot_dimension_numbers<[1], [0], [0], [1], [0, 0, 1, 1], [], []>} : vector<8x128xf32>, vector<128x512xf32>, vector<8x512xf32> -> vector<8x512xf32>
    %114 = arith.addf %87, %113 : vector<8x512xf32>
    %115 = vector.extract_strided_slice %60 {offsets = [2, 0, 0], sizes = [1, 8, 1], strides = [1, 1, 1]} : vector<9x8x1xi32> to vector<1x8x1xi32>
    %116 = vector.shape_cast %115 : vector<1x8x1xi32> to vector<8x1xi32>
    %c2 = arith.constant 2 : index
    %c0_48 = arith.constant 0 : index
    %c0_49 = arith.constant 0 : index
    %117 = vector.load %arg9[%c2, %c0_48, %c0_49] : memref<9x3x128xf32, #tpu.memory_space<vmem>>, vector<1x3x128xf32>
    %118 = vector.shape_cast %117 : vector<1x3x128xf32> to vector<3x128xf32>
    %119 = vector.extract_strided_slice %118 {offsets = [0, 0], sizes = [1, 128], strides = [1, 1]} : vector<3x128xf32> to vector<1x128xf32>
    %120 = vector.extract_strided_slice %118 {offsets = [1, 0], sizes = [1, 128], strides = [1, 1]} : vector<3x128xf32> to vector<1x128xf32>
    %121 = vector.extract_strided_slice %118 {offsets = [2, 0], sizes = [1, 128], strides = [1, 1]} : vector<3x128xf32> to vector<1x128xf32>
    %c0_i32_50 = arith.constant 0 : i32
    %122 = vector.broadcast %c0_i32_50 : i32 to vector<8x1xi32>
    %123 = arith.cmpi eq, %116, %122 : vector<8x1xi32>
    %c1_i32_51 = arith.constant 1 : i32
    %124 = vector.broadcast %c1_i32_51 : i32 to vector<8x1xi32>
    %125 = arith.cmpi eq, %116, %124 : vector<8x1xi32>
    %126 = vector.shape_cast %125 : vector<8x1xi1> to vector<8x1xi1>
    %127 = vector.broadcast %126 : vector<8x1xi1> to vector<8x128xi1>
    %128 = vector.shape_cast %120 : vector<1x128xf32> to vector<1x128xf32>
    %129 = vector.broadcast %128 : vector<1x128xf32> to vector<8x128xf32>
    %130 = vector.shape_cast %121 : vector<1x128xf32> to vector<1x128xf32>
    %131 = vector.broadcast %130 : vector<1x128xf32> to vector<8x128xf32>
    %132 = arith.select %127, %129, %131 : vector<8x128xi1>, vector<8x128xf32>
    %133 = vector.shape_cast %123 : vector<8x1xi1> to vector<8x1xi1>
    %134 = vector.broadcast %133 : vector<8x1xi1> to vector<8x128xi1>
    %135 = vector.shape_cast %119 : vector<1x128xf32> to vector<1x128xf32>
    %136 = vector.broadcast %135 : vector<1x128xf32> to vector<8x128xf32>
    %137 = arith.select %134, %136, %132 : vector<8x128xi1>, vector<8x128xf32>
    %c2_52 = arith.constant 2 : index
    %c0_53 = arith.constant 0 : index
    %c0_54 = arith.constant 0 : index
    %138 = vector.load %arg13[%c2_52, %c0_53, %c0_54] : memref<9x128x512xf32, #tpu.memory_space<vmem>>, vector<1x128x512xf32>
    %139 = vector.shape_cast %138 : vector<1x128x512xf32> to vector<128x512xf32>
    %cst_55 = arith.constant dense<0.000000e+00> : vector<8x512xf32>
    %140 = tpu.matmul %137, %139, %cst_55 {dimension_numbers = #tpu.dot_dimension_numbers<[1], [0], [0], [1], [0, 0, 1, 1], [], []>} : vector<8x128xf32>, vector<128x512xf32>, vector<8x512xf32> -> vector<8x512xf32>
    %141 = arith.addf %114, %140 : vector<8x512xf32>
    %142 = vector.extract_strided_slice %60 {offsets = [3, 0, 0], sizes = [1, 8, 1], strides = [1, 1, 1]} : vector<9x8x1xi32> to vector<1x8x1xi32>
    %143 = vector.shape_cast %142 : vector<1x8x1xi32> to vector<8x1xi32>
    %c3 = arith.constant 3 : index
    %c0_56 = arith.constant 0 : index
    %c0_57 = arith.constant 0 : index
    %144 = vector.load %arg9[%c3, %c0_56, %c0_57] : memref<9x3x128xf32, #tpu.memory_space<vmem>>, vector<1x3x128xf32>
    %145 = vector.shape_cast %144 : vector<1x3x128xf32> to vector<3x128xf32>
    %146 = vector.extract_strided_slice %145 {offsets = [0, 0], sizes = [1, 128], strides = [1, 1]} : vector<3x128xf32> to vector<1x128xf32>
    %147 = vector.extract_strided_slice %145 {offsets = [1, 0], sizes = [1, 128], strides = [1, 1]} : vector<3x128xf32> to vector<1x128xf32>
    %148 = vector.extract_strided_slice %145 {offsets = [2, 0], sizes = [1, 128], strides = [1, 1]} : vector<3x128xf32> to vector<1x128xf32>
    %c0_i32_58 = arith.constant 0 : i32
    %149 = vector.broadcast %c0_i32_58 : i32 to vector<8x1xi32>
    %150 = arith.cmpi eq, %143, %149 : vector<8x1xi32>
    %c1_i32_59 = arith.constant 1 : i32
    %151 = vector.broadcast %c1_i32_59 : i32 to vector<8x1xi32>
    %152 = arith.cmpi eq, %143, %151 : vector<8x1xi32>
    %153 = vector.shape_cast %152 : vector<8x1xi1> to vector<8x1xi1>
    %154 = vector.broadcast %153 : vector<8x1xi1> to vector<8x128xi1>
    %155 = vector.shape_cast %147 : vector<1x128xf32> to vector<1x128xf32>
    %156 = vector.broadcast %155 : vector<1x128xf32> to vector<8x128xf32>
    %157 = vector.shape_cast %148 : vector<1x128xf32> to vector<1x128xf32>
    %158 = vector.broadcast %157 : vector<1x128xf32> to vector<8x128xf32>
    %159 = arith.select %154, %156, %158 : vector<8x128xi1>, vector<8x128xf32>
    %160 = vector.shape_cast %150 : vector<8x1xi1> to vector<8x1xi1>
    %161 = vector.broadcast %160 : vector<8x1xi1> to vector<8x128xi1>
    %162 = vector.shape_cast %146 : vector<1x128xf32> to vector<1x128xf32>
    %163 = vector.broadcast %162 : vector<1x128xf32> to vector<8x128xf32>
    %164 = arith.select %161, %163, %159 : vector<8x128xi1>, vector<8x128xf32>
    %c3_60 = arith.constant 3 : index
    %c0_61 = arith.constant 0 : index
    %c0_62 = arith.constant 0 : index
    %165 = vector.load %arg13[%c3_60, %c0_61, %c0_62] : memref<9x128x512xf32, #tpu.memory_space<vmem>>, vector<1x128x512xf32>
    %166 = vector.shape_cast %165 : vector<1x128x512xf32> to vector<128x512xf32>
    %cst_63 = arith.constant dense<0.000000e+00> : vector<8x512xf32>
    %167 = tpu.matmul %164, %166, %cst_63 {dimension_numbers = #tpu.dot_dimension_numbers<[1], [0], [0], [1], [0, 0, 1, 1], [], []>} : vector<8x128xf32>, vector<128x512xf32>, vector<8x512xf32> -> vector<8x512xf32>
    %168 = arith.addf %141, %167 : vector<8x512xf32>
    %169 = vector.extract_strided_slice %60 {offsets = [4, 0, 0], sizes = [1, 8, 1], strides = [1, 1, 1]} : vector<9x8x1xi32> to vector<1x8x1xi32>
    %170 = vector.shape_cast %169 : vector<1x8x1xi32> to vector<8x1xi32>
    %c4 = arith.constant 4 : index
    %c0_64 = arith.constant 0 : index
    %c0_65 = arith.constant 0 : index
    %171 = vector.load %arg9[%c4, %c0_64, %c0_65] : memref<9x3x128xf32, #tpu.memory_space<vmem>>, vector<1x3x128xf32>
    %172 = vector.shape_cast %171 : vector<1x3x128xf32> to vector<3x128xf32>
    %173 = vector.extract_strided_slice %172 {offsets = [0, 0], sizes = [1, 128], strides = [1, 1]} : vector<3x128xf32> to vector<1x128xf32>
    %174 = vector.extract_strided_slice %172 {offsets = [1, 0], sizes = [1, 128], strides = [1, 1]} : vector<3x128xf32> to vector<1x128xf32>
    %175 = vector.extract_strided_slice %172 {offsets = [2, 0], sizes = [1, 128], strides = [1, 1]} : vector<3x128xf32> to vector<1x128xf32>
    %c0_i32_66 = arith.constant 0 : i32
    %176 = vector.broadcast %c0_i32_66 : i32 to vector<8x1xi32>
    %177 = arith.cmpi eq, %170, %176 : vector<8x1xi32>
    %c1_i32_67 = arith.constant 1 : i32
    %178 = vector.broadcast %c1_i32_67 : i32 to vector<8x1xi32>
    %179 = arith.cmpi eq, %170, %178 : vector<8x1xi32>
    %180 = vector.shape_cast %179 : vector<8x1xi1> to vector<8x1xi1>
    %181 = vector.broadcast %180 : vector<8x1xi1> to vector<8x128xi1>
    %182 = vector.shape_cast %174 : vector<1x128xf32> to vector<1x128xf32>
    %183 = vector.broadcast %182 : vector<1x128xf32> to vector<8x128xf32>
    %184 = vector.shape_cast %175 : vector<1x128xf32> to vector<1x128xf32>
    %185 = vector.broadcast %184 : vector<1x128xf32> to vector<8x128xf32>
    %186 = arith.select %181, %183, %185 : vector<8x128xi1>, vector<8x128xf32>
    %187 = vector.shape_cast %177 : vector<8x1xi1> to vector<8x1xi1>
    %188 = vector.broadcast %187 : vector<8x1xi1> to vector<8x128xi1>
    %189 = vector.shape_cast %173 : vector<1x128xf32> to vector<1x128xf32>
    %190 = vector.broadcast %189 : vector<1x128xf32> to vector<8x128xf32>
    %191 = arith.select %188, %190, %186 : vector<8x128xi1>, vector<8x128xf32>
    %c4_68 = arith.constant 4 : index
    %c0_69 = arith.constant 0 : index
    %c0_70 = arith.constant 0 : index
    %192 = vector.load %arg13[%c4_68, %c0_69, %c0_70] : memref<9x128x512xf32, #tpu.memory_space<vmem>>, vector<1x128x512xf32>
    %193 = vector.shape_cast %192 : vector<1x128x512xf32> to vector<128x512xf32>
    %cst_71 = arith.constant dense<0.000000e+00> : vector<8x512xf32>
    %194 = tpu.matmul %191, %193, %cst_71 {dimension_numbers = #tpu.dot_dimension_numbers<[1], [0], [0], [1], [0, 0, 1, 1], [], []>} : vector<8x128xf32>, vector<128x512xf32>, vector<8x512xf32> -> vector<8x512xf32>
    %195 = arith.addf %168, %194 : vector<8x512xf32>
    %196 = vector.extract_strided_slice %60 {offsets = [5, 0, 0], sizes = [1, 8, 1], strides = [1, 1, 1]} : vector<9x8x1xi32> to vector<1x8x1xi32>
    %197 = vector.shape_cast %196 : vector<1x8x1xi32> to vector<8x1xi32>
    %c5 = arith.constant 5 : index
    %c0_72 = arith.constant 0 : index
    %c0_73 = arith.constant 0 : index
    %198 = vector.load %arg9[%c5, %c0_72, %c0_73] : memref<9x3x128xf32, #tpu.memory_space<vmem>>, vector<1x3x128xf32>
    %199 = vector.shape_cast %198 : vector<1x3x128xf32> to vector<3x128xf32>
    %200 = vector.extract_strided_slice %199 {offsets = [0, 0], sizes = [1, 128], strides = [1, 1]} : vector<3x128xf32> to vector<1x128xf32>
    %201 = vector.extract_strided_slice %199 {offsets = [1, 0], sizes = [1, 128], strides = [1, 1]} : vector<3x128xf32> to vector<1x128xf32>
    %202 = vector.extract_strided_slice %199 {offsets = [2, 0], sizes = [1, 128], strides = [1, 1]} : vector<3x128xf32> to vector<1x128xf32>
    %c0_i32_74 = arith.constant 0 : i32
    %203 = vector.broadcast %c0_i32_74 : i32 to vector<8x1xi32>
    %204 = arith.cmpi eq, %197, %203 : vector<8x1xi32>
    %c1_i32_75 = arith.constant 1 : i32
    %205 = vector.broadcast %c1_i32_75 : i32 to vector<8x1xi32>
    %206 = arith.cmpi eq, %197, %205 : vector<8x1xi32>
    %207 = vector.shape_cast %206 : vector<8x1xi1> to vector<8x1xi1>
    %208 = vector.broadcast %207 : vector<8x1xi1> to vector<8x128xi1>
    %209 = vector.shape_cast %201 : vector<1x128xf32> to vector<1x128xf32>
    %210 = vector.broadcast %209 : vector<1x128xf32> to vector<8x128xf32>
    %211 = vector.shape_cast %202 : vector<1x128xf32> to vector<1x128xf32>
    %212 = vector.broadcast %211 : vector<1x128xf32> to vector<8x128xf32>
    %213 = arith.select %208, %210, %212 : vector<8x128xi1>, vector<8x128xf32>
    %214 = vector.shape_cast %204 : vector<8x1xi1> to vector<8x1xi1>
    %215 = vector.broadcast %214 : vector<8x1xi1> to vector<8x128xi1>
    %216 = vector.shape_cast %200 : vector<1x128xf32> to vector<1x128xf32>
    %217 = vector.broadcast %216 : vector<1x128xf32> to vector<8x128xf32>
    %218 = arith.select %215, %217, %213 : vector<8x128xi1>, vector<8x128xf32>
    %c5_76 = arith.constant 5 : index
    %c0_77 = arith.constant 0 : index
    %c0_78 = arith.constant 0 : index
    %219 = vector.load %arg13[%c5_76, %c0_77, %c0_78] : memref<9x128x512xf32, #tpu.memory_space<vmem>>, vector<1x128x512xf32>
    %220 = vector.shape_cast %219 : vector<1x128x512xf32> to vector<128x512xf32>
    %cst_79 = arith.constant dense<0.000000e+00> : vector<8x512xf32>
    %221 = tpu.matmul %218, %220, %cst_79 {dimension_numbers = #tpu.dot_dimension_numbers<[1], [0], [0], [1], [0, 0, 1, 1], [], []>} : vector<8x128xf32>, vector<128x512xf32>, vector<8x512xf32> -> vector<8x512xf32>
    %222 = arith.addf %195, %221 : vector<8x512xf32>
    %223 = vector.extract_strided_slice %60 {offsets = [6, 0, 0], sizes = [1, 8, 1], strides = [1, 1, 1]} : vector<9x8x1xi32> to vector<1x8x1xi32>
    %224 = vector.shape_cast %223 : vector<1x8x1xi32> to vector<8x1xi32>
    %c6 = arith.constant 6 : index
    %c0_80 = arith.constant 0 : index
    %c0_81 = arith.constant 0 : index
    %225 = vector.load %arg9[%c6, %c0_80, %c0_81] : memref<9x3x128xf32, #tpu.memory_space<vmem>>, vector<1x3x128xf32>
    %226 = vector.shape_cast %225 : vector<1x3x128xf32> to vector<3x128xf32>
    %227 = vector.extract_strided_slice %226 {offsets = [0, 0], sizes = [1, 128], strides = [1, 1]} : vector<3x128xf32> to vector<1x128xf32>
    %228 = vector.extract_strided_slice %226 {offsets = [1, 0], sizes = [1, 128], strides = [1, 1]} : vector<3x128xf32> to vector<1x128xf32>
    %229 = vector.extract_strided_slice %226 {offsets = [2, 0], sizes = [1, 128], strides = [1, 1]} : vector<3x128xf32> to vector<1x128xf32>
    %c0_i32_82 = arith.constant 0 : i32
    %230 = vector.broadcast %c0_i32_82 : i32 to vector<8x1xi32>
    %231 = arith.cmpi eq, %224, %230 : vector<8x1xi32>
    %c1_i32_83 = arith.constant 1 : i32
    %232 = vector.broadcast %c1_i32_83 : i32 to vector<8x1xi32>
    %233 = arith.cmpi eq, %224, %232 : vector<8x1xi32>
    %234 = vector.shape_cast %233 : vector<8x1xi1> to vector<8x1xi1>
    %235 = vector.broadcast %234 : vector<8x1xi1> to vector<8x128xi1>
    %236 = vector.shape_cast %228 : vector<1x128xf32> to vector<1x128xf32>
    %237 = vector.broadcast %236 : vector<1x128xf32> to vector<8x128xf32>
    %238 = vector.shape_cast %229 : vector<1x128xf32> to vector<1x128xf32>
    %239 = vector.broadcast %238 : vector<1x128xf32> to vector<8x128xf32>
    %240 = arith.select %235, %237, %239 : vector<8x128xi1>, vector<8x128xf32>
    %241 = vector.shape_cast %231 : vector<8x1xi1> to vector<8x1xi1>
    %242 = vector.broadcast %241 : vector<8x1xi1> to vector<8x128xi1>
    %243 = vector.shape_cast %227 : vector<1x128xf32> to vector<1x128xf32>
    %244 = vector.broadcast %243 : vector<1x128xf32> to vector<8x128xf32>
    %245 = arith.select %242, %244, %240 : vector<8x128xi1>, vector<8x128xf32>
    %c6_84 = arith.constant 6 : index
    %c0_85 = arith.constant 0 : index
    %c0_86 = arith.constant 0 : index
    %246 = vector.load %arg13[%c6_84, %c0_85, %c0_86] : memref<9x128x512xf32, #tpu.memory_space<vmem>>, vector<1x128x512xf32>
    %247 = vector.shape_cast %246 : vector<1x128x512xf32> to vector<128x512xf32>
    %cst_87 = arith.constant dense<0.000000e+00> : vector<8x512xf32>
    %248 = tpu.matmul %245, %247, %cst_87 {dimension_numbers = #tpu.dot_dimension_numbers<[1], [0], [0], [1], [0, 0, 1, 1], [], []>} : vector<8x128xf32>, vector<128x512xf32>, vector<8x512xf32> -> vector<8x512xf32>
    %249 = arith.addf %222, %248 : vector<8x512xf32>
    %250 = vector.extract_strided_slice %60 {offsets = [7, 0, 0], sizes = [1, 8, 1], strides = [1, 1, 1]} : vector<9x8x1xi32> to vector<1x8x1xi32>
    %251 = vector.shape_cast %250 : vector<1x8x1xi32> to vector<8x1xi32>
    %c7 = arith.constant 7 : index
    %c0_88 = arith.constant 0 : index
    %c0_89 = arith.constant 0 : index
    %252 = vector.load %arg9[%c7, %c0_88, %c0_89] : memref<9x3x128xf32, #tpu.memory_space<vmem>>, vector<1x3x128xf32>
    %253 = vector.shape_cast %252 : vector<1x3x128xf32> to vector<3x128xf32>
    %254 = vector.extract_strided_slice %253 {offsets = [0, 0], sizes = [1, 128], strides = [1, 1]} : vector<3x128xf32> to vector<1x128xf32>
    %255 = vector.extract_strided_slice %253 {offsets = [1, 0], sizes = [1, 128], strides = [1, 1]} : vector<3x128xf32> to vector<1x128xf32>
    %256 = vector.extract_strided_slice %253 {offsets = [2, 0], sizes = [1, 128], strides = [1, 1]} : vector<3x128xf32> to vector<1x128xf32>
    %c0_i32_90 = arith.constant 0 : i32
    %257 = vector.broadcast %c0_i32_90 : i32 to vector<8x1xi32>
    %258 = arith.cmpi eq, %251, %257 : vector<8x1xi32>
    %c1_i32_91 = arith.constant 1 : i32
    %259 = vector.broadcast %c1_i32_91 : i32 to vector<8x1xi32>
    %260 = arith.cmpi eq, %251, %259 : vector<8x1xi32>
    %261 = vector.shape_cast %260 : vector<8x1xi1> to vector<8x1xi1>
    %262 = vector.broadcast %261 : vector<8x1xi1> to vector<8x128xi1>
    %263 = vector.shape_cast %255 : vector<1x128xf32> to vector<1x128xf32>
    %264 = vector.broadcast %263 : vector<1x128xf32> to vector<8x128xf32>
    %265 = vector.shape_cast %256 : vector<1x128xf32> to vector<1x128xf32>
    %266 = vector.broadcast %265 : vector<1x128xf32> to vector<8x128xf32>
    %267 = arith.select %262, %264, %266 : vector<8x128xi1>, vector<8x128xf32>
    %268 = vector.shape_cast %258 : vector<8x1xi1> to vector<8x1xi1>
    %269 = vector.broadcast %268 : vector<8x1xi1> to vector<8x128xi1>
    %270 = vector.shape_cast %254 : vector<1x128xf32> to vector<1x128xf32>
    %271 = vector.broadcast %270 : vector<1x128xf32> to vector<8x128xf32>
    %272 = arith.select %269, %271, %267 : vector<8x128xi1>, vector<8x128xf32>
    %c7_92 = arith.constant 7 : index
    %c0_93 = arith.constant 0 : index
    %c0_94 = arith.constant 0 : index
    %273 = vector.load %arg13[%c7_92, %c0_93, %c0_94] : memref<9x128x512xf32, #tpu.memory_space<vmem>>, vector<1x128x512xf32>
    %274 = vector.shape_cast %273 : vector<1x128x512xf32> to vector<128x512xf32>
    %cst_95 = arith.constant dense<0.000000e+00> : vector<8x512xf32>
    %275 = tpu.matmul %272, %274, %cst_95 {dimension_numbers = #tpu.dot_dimension_numbers<[1], [0], [0], [1], [0, 0, 1, 1], [], []>} : vector<8x128xf32>, vector<128x512xf32>, vector<8x512xf32> -> vector<8x512xf32>
    %276 = arith.addf %249, %275 : vector<8x512xf32>
    %277 = vector.extract_strided_slice %60 {offsets = [8, 0, 0], sizes = [1, 8, 1], strides = [1, 1, 1]} : vector<9x8x1xi32> to vector<1x8x1xi32>
    %278 = vector.shape_cast %277 : vector<1x8x1xi32> to vector<8x1xi32>
    %c8 = arith.constant 8 : index
    %c0_96 = arith.constant 0 : index
    %c0_97 = arith.constant 0 : index
    %279 = vector.load %arg9[%c8, %c0_96, %c0_97] : memref<9x3x128xf32, #tpu.memory_space<vmem>>, vector<1x3x128xf32>
    %280 = vector.shape_cast %279 : vector<1x3x128xf32> to vector<3x128xf32>
    %281 = vector.extract_strided_slice %280 {offsets = [0, 0], sizes = [1, 128], strides = [1, 1]} : vector<3x128xf32> to vector<1x128xf32>
    %282 = vector.extract_strided_slice %280 {offsets = [1, 0], sizes = [1, 128], strides = [1, 1]} : vector<3x128xf32> to vector<1x128xf32>
    %283 = vector.extract_strided_slice %280 {offsets = [2, 0], sizes = [1, 128], strides = [1, 1]} : vector<3x128xf32> to vector<1x128xf32>
    %c0_i32_98 = arith.constant 0 : i32
    %284 = vector.broadcast %c0_i32_98 : i32 to vector<8x1xi32>
    %285 = arith.cmpi eq, %278, %284 : vector<8x1xi32>
    %c1_i32_99 = arith.constant 1 : i32
    %286 = vector.broadcast %c1_i32_99 : i32 to vector<8x1xi32>
    %287 = arith.cmpi eq, %278, %286 : vector<8x1xi32>
    %288 = vector.shape_cast %287 : vector<8x1xi1> to vector<8x1xi1>
    %289 = vector.broadcast %288 : vector<8x1xi1> to vector<8x128xi1>
    %290 = vector.shape_cast %282 : vector<1x128xf32> to vector<1x128xf32>
    %291 = vector.broadcast %290 : vector<1x128xf32> to vector<8x128xf32>
    %292 = vector.shape_cast %283 : vector<1x128xf32> to vector<1x128xf32>
    %293 = vector.broadcast %292 : vector<1x128xf32> to vector<8x128xf32>
    %294 = arith.select %289, %291, %293 : vector<8x128xi1>, vector<8x128xf32>
    %295 = vector.shape_cast %285 : vector<8x1xi1> to vector<8x1xi1>
    %296 = vector.broadcast %295 : vector<8x1xi1> to vector<8x128xi1>
    %297 = vector.shape_cast %281 : vector<1x128xf32> to vector<1x128xf32>
    %298 = vector.broadcast %297 : vector<1x128xf32> to vector<8x128xf32>
    %299 = arith.select %296, %298, %294 : vector<8x128xi1>, vector<8x128xf32>
    %c8_100 = arith.constant 8 : index
    %c0_101 = arith.constant 0 : index
    %c0_102 = arith.constant 0 : index
    %300 = vector.load %arg13[%c8_100, %c0_101, %c0_102] : memref<9x128x512xf32, #tpu.memory_space<vmem>>, vector<1x128x512xf32>
    %301 = vector.shape_cast %300 : vector<1x128x512xf32> to vector<128x512xf32>
    %cst_103 = arith.constant dense<0.000000e+00> : vector<8x512xf32>
    %302 = tpu.matmul %299, %301, %cst_103 {dimension_numbers = #tpu.dot_dimension_numbers<[1], [0], [0], [1], [0, 0, 1, 1], [], []>} : vector<8x128xf32>, vector<128x512xf32>, vector<8x512xf32> -> vector<8x512xf32>
    %303 = arith.addf %276, %302 : vector<8x512xf32>
    %c0_104 = arith.constant 0 : index
    %c0_105 = arith.constant 0 : index
    %304 = vector.load %arg14[%c0_104, %c0_105] : memref<1x512xf32, #tpu.memory_space<vmem>>, vector<1x512xf32>
    %305 = vector.broadcast %304 : vector<1x512xf32> to vector<8x512xf32>
    %306 = arith.addf %303, %305 : vector<8x512xf32>
    %c0_106 = arith.constant 0 : index
    %c0_107 = arith.constant 0 : index
    %c0_108 = arith.constant 0 : index
    %307 = vector.load %arg15[%c0_106, %c0_107, %c0_108] : memref<1x8x512xf32, #tpu.memory_space<vmem>>, vector<1x8x512xf32>
    %308 = vector.shape_cast %307 : vector<1x8x512xf32> to vector<8x512xf32>
    %309 = vector.shape_cast %306 : vector<8x512xf32> to vector<1x8x512xf32>
    tpu.vector_store %arg15[%c0_106, %c0_107, %c0_108], %309 {strides = array<i32>} : memref<1x8x512xf32, #tpu.memory_space<vmem>>, vector<1x8x512xf32>,
    return
  }
  func.func @transform_0(%arg0: i32) -> (i32, i32, i32) {
    %c0_i32 = arith.constant 0 : i32
    %c0_i32_0 = arith.constant 0 : i32
    %c0_i32_1 = arith.constant 0 : i32
    return %arg0, %c0_i32, %c0_i32_0 : i32, i32, i32
  }
  func.func @transform_1(%arg0: i32) -> (i32, i32, i32) {
    %c0_i32 = arith.constant 0 : i32
    %c0_i32_0 = arith.constant 0 : i32
    %c0_i32_1 = arith.constant 0 : i32
    return %arg0, %c0_i32, %c0_i32_0 : i32, i32, i32
  }
  func.func @transform_2(%arg0: i32) -> (i32, i32, i32) {
    %c0_i32 = arith.constant 0 : i32
    %c0_i32_0 = arith.constant 0 : i32
    %c0_i32_1 = arith.constant 0 : i32
    return %arg0, %c0_i32, %c0_i32_0 : i32, i32, i32
  }
  func.func @transform_3(%arg0: i32) -> (i32, i32, i32, i32) {
    %c0_i32 = arith.constant 0 : i32
    %c0_i32_0 = arith.constant 0 : i32
    %c0_i32_1 = arith.constant 0 : i32
    %c0_i32_2 = arith.constant 0 : i32
    return %arg0, %c0_i32, %c0_i32_0, %c0_i32_1 : i32, i32, i32, i32
  }
  func.func @transform_4(%arg0: i32) -> (i32, i32) {
    %c0_i32 = arith.constant 0 : i32
    %c0_i32_0 = arith.constant 0 : i32
    %c0_i32_1 = arith.constant 0 : i32
    return %c0_i32, %c0_i32_0 : i32, i32
  }
  func.func @transform_5(%arg0: i32) -> (i32, i32) {
    %c0_i32 = arith.constant 0 : i32
    %c0_i32_0 = arith.constant 0 : i32
    %c0_i32_1 = arith.constant 0 : i32
    return %c0_i32, %c0_i32_0 : i32, i32
  }
  func.func @transform_6(%arg0: i32) -> (i32, i32) {
    %c0_i32 = arith.constant 0 : i32
    %c0_i32_0 = arith.constant 0 : i32
    %c0_i32_1 = arith.constant 0 : i32
    return %c0_i32, %c0_i32_0 : i32, i32
  }
  func.func @transform_7(%arg0: i32) -> (i32, i32) {
    %c0_i32 = arith.constant 0 : i32
    %c0_i32_0 = arith.constant 0 : i32
    %c0_i32_1 = arith.constant 0 : i32
    return %c0_i32, %c0_i32_0 : i32, i32
  }
  func.func @transform_8(%arg0: i32) -> (i32, i32, i32) {
    %c0_i32 = arith.constant 0 : i32
    %c0_i32_0 = arith.constant 0 : i32
    %c0_i32_1 = arith.constant 0 : i32
    %c0_i32_2 = arith.constant 0 : i32
    return %c0_i32, %c0_i32_0, %c0_i32_1 : i32, i32, i32
  }
  func.func @transform_9(%arg0: i32) -> (i32, i32) {
    %c0_i32 = arith.constant 0 : i32
    %c0_i32_0 = arith.constant 0 : i32
    %c0_i32_1 = arith.constant 0 : i32
    return %c0_i32, %c0_i32_0 : i32, i32
  }
  func.func @transform_10(%arg0: i32) -> (i32, i32) {
    %c0_i32 = arith.constant 0 : i32
    %c0_i32_0 = arith.constant 0 : i32
    %c0_i32_1 = arith.constant 0 : i32
    return %c0_i32, %c0_i32_0 : i32, i32
  }
  func.func @transform_11(%arg0: i32) -> (i32, i32) {
    %c0_i32 = arith.constant 0 : i32
    %c0_i32_0 = arith.constant 0 : i32
    %c0_i32_1 = arith.constant 0 : i32
    return %c0_i32, %c0_i32_0 : i32, i32
  }
  func.func @transform_12(%arg0: i32) -> (i32, i32, i32) {
    %c0_i32 = arith.constant 0 : i32
    %c0_i32_0 = arith.constant 0 : i32
    %c0_i32_1 = arith.constant 0 : i32
    %c0_i32_2 = arith.constant 0 : i32
    return %c0_i32, %c0_i32_0, %c0_i32_1 : i32, i32, i32
  }
  func.func @transform_13(%arg0: i32) -> (i32, i32) {
    %c0_i32 = arith.constant 0 : i32
    %c0_i32_0 = arith.constant 0 : i32
    %c0_i32_1 = arith.constant 0 : i32
    return %c0_i32, %c0_i32_0 : i32, i32
  }
  func.func @transform_14(%arg0: i32) -> (i32, i32, i32) {
    %c0_i32 = arith.constant 0 : i32
    %c0_i32_0 = arith.constant 0 : i32
    %c0_i32_1 = arith.constant 0 : i32
    return %arg0, %c0_i32, %c0_i32_0 : i32, i32, i32
  }
}

</mosaic_0001>

<bundles_post_ra>
// kernel: tpu_custom_call.1
= control target key start
LH: loop header
LB: loop body
LE: loop exit
PB: predicated region body
PF: predicated region fallthrough
CT: control target
= control target key end

     0   :  { %s6479_s0 = inlined_call_operand.hbm [shape: f32[2,1,512], index: 0, kind: input, shape index: {}]   ;;  %s6480_s1 = inlined_call_operand.vmem [shape: s32[2,8,1], index: 1, kind: input, shape index: {}]   ;;  %s6481_s2 = inlined_call_operand.vmem [shape: s32[2,8,1], index: 2, kind: input, shape index: {}]   ;;  %s6482_s3 = inlined_call_operand.vmem [shape: s32[2,9,8,1], index: 3, kind: input, shape index: {}]   ;;  %s6483_s4 = inlined_call_operand.hbm [shape: f32[512,256], index: 4, kind: input, shape index: {}]   ;;  %s6484_s5 = inlined_call_operand.hbm [shape: f32[1,256], index: 5, kind: input, shape index: {}]   ;;  %s6485_s6 = inlined_call_operand.hbm [shape: f32[3,128], index: 6, kind: input, shape index: {}]   ;;  %s6486_s7 = inlined_call_operand.hbm [shape: f32[3,128], index: 7, kind: input, shape index: {}]   ;;  %s6487_s8 = inlined_call_operand.hbm [shape: f32[9,3,128], index: 8, kind: input, shape index: {}]   ;;  %s6488_s9 = inlined_call_operand.hbm [shape: f32[256,512], index: 9, kind: input, shape index: {}]   ;;  %s6489_s10 = inlined_call_operand.hbm [shape: f32[128,512], index: 10, kind: input, shape index: {}]   ;;  %s6490_s11 = inlined_call_operand.hbm [shape: f32[128,512], index: 11, kind: input, shape index: {}]   ;;  %s6491_s12 = inlined_call_operand.hbm [shape: f32[9,128,512], index: 12, kind: input, shape index: {}]   ;;  %s6492_s13 = inlined_call_operand.hbm [shape: f32[1,512], index: 13, kind: input, shape index: {}]   ;;  %s6493_s14 = inlined_call_operand.hbm [shape: f32[2,8,512], index: 14, kind: output, shape index: {}]  }
   0x1   :  { %6500 = sst [smem:[#allocation29_spill]] %s6479_s0 }
   0x2   :  { %6501 = sst [smem:[#allocation30_spill]] %s6480_s1 }
   0x3   :  { %6502 = sst [smem:[#allocation31_spill]] %s6481_s2 }
   0x4   :  { %6503 = sst [smem:[#allocation32_spill]] %s6482_s3 }
   0x5   :  { %6504 = sst [smem:[#allocation33_spill]] %s6483_s4 }
   0x6   :  { %6505 = sst [smem:[#allocation34_spill]] %s6485_s6 }
   0x7   :  { %6506 = sst [smem:[#allocation35_spill]] %s6493_s14 }
   0x8   :  { %19 = vsyncpa [#allocation3], 0 }
   0x9   :  { %21 = vsyncpa [#allocation3 + $0x1], 0 }
   0xa   :  { %22 = vsyncpa [#allocation6], 0 }
   0xb   :  { %23 = vsyncpa [#allocation9], 0 }
   0xc   :  { %24 = vsyncpa [#allocation12], 0 }
   0xd   :  { %25 = vsyncpa [#allocation15], 0 }
   0xe   :  { %26 = vsyncpa [#allocation18], 0 }
   0xf   :  { %27 = vsyncpa [#allocation4], 0 }
  0x10   :  { %29 = vsyncpa [#allocation4 + $0x1], 0  ;;  %s5843_s29 = smov 0   ;;  %s5845_s30 = smov 0  }
  0x11   :  { %s5847_s15 = smov 0   ;;  %s5849_s16 = smov 0  }
  0x12 LB: > { %s5748_s17 = smov [#allocation5]   ;;  %s5864_s19 = sadd.s32 4294967295, %s5746_s16   ;;  %s5746_s16 = sphi %s5849_s16, %s6542_s16   ;;  %s5742_s15 = sphi %s5847_s15, %s6541_s15   ;;  %s5738_s30 = sphi %s5845_s30, %s6540_s30   ;;  %s5734_s29 = sphi %s5843_s29, %s6539_s29  }
  0x13   : > { %s392_s18 = sshll.u32 %s5748_s17, 4  ;;  %p4146_p0 = scmp.ge.s32.totalorder %s5746_s16, 1  ;;  %s5869_s18 = int_to_ptr.vmem [resolvable:$true] %s392_s18 }
  0x14   : > { %p6497_p1 = scmp.eq.s32.totalorder %s5864_s19, 0  ;;  %p380_p2 = scmp.lt.s32.totalorder %s5746_s16, 3 }
  0x15   : > { %s5749_s21 = smov [#allocation8]   ;;  %s5750_s24 = smov [#allocation11]  }
  0x16   : > { %p5871_p3 = pnand %p4146_p0, %p380_p2  ;;  %s417_s22 = sshll.u32 %s5749_s21, 4  ;;  %s5884_s22 = int_to_ptr.vmem [resolvable:$true] %s417_s22 }
  0x17   : > { %s438_s25 = sshll.u32 %s5750_s24, 4  ;;  %s6510_s4 = sld [smem:[#allocation33_spill]]  ;;  %s5886_s25 = int_to_ptr.vmem [resolvable:$true] %s438_s25 }
  0x18   : > { %s6507_s20 = scalar_select %p5871_p3, 1, 0 }
  0x19   : > { %p5237_p5 = pneg %p5871_p3 }
  0x1a   : > { %6508 = sst [smem:[#allocation28_spill]] %s6507_s20 }
  0x1b   : > { %p5880_p6 = pnand %p5237_p5, %p6497_p1 }
  0x1d   : > { %s5350_s28 = scalar_lea.hbm %s6510_s4, 16384  ;;  %p5896_p8 = pneg %p5880_p6 }
  0x1e   : > { %p5351_p7 = scmp.ne.s32.totalorder %s6510_s4, %s5350_s28  ;;  %p5357_p11 = scmp.lt.u32.totalorder %s5350_s28, %s6510_s4 }
  0x20   : > { %p5353_p9 = pnand %p5896_p8, %p5351_p7 }
  0x22   : > { %p5354_p10 = pneg %p5353_p9 }
  0x24   : > { %p5359_p12 = pnand %p5357_p11, %p5354_p10 }
  0x26   : > { %5362 = shalt.err (!%p5359_p12)
}
  0x27   : > { %s5363_s14 = scalar_lea.vmem %s5869_s18, 16384  ;;  %p5371_p5 = scmp.lt.s32.totalorder %s5869_s18, %s5869_s18 }
  0x28   : > { %p5364_p13 = scmp.ne.s32.totalorder %s5869_s18, %s5363_s14  ;;  %p5372_p4 = scmp.lt.s32.totalorder %s5363_s14, %s5363_s14 }
  0x2a   : > { %p5366_p0 = pnand %p5364_p13, %p5896_p8  ;;  %p5373_p7 = por %p5372_p4, %p5371_p5 }
  0x2c   : > { %p5367_p2 = pneg %p5366_p0 }
  0x2e   : > { %p5374_p9 = pnand %p5373_p7, %p5367_p2 }
  0x30   : > { %5377 = shalt.err (!%p5374_p9)
}
  0x31   : > { %s5751_s26 = smov 256   ;;  %s5752_s3 = smov 16  }
  0x32   : > { %5240 = dma.hbm_to_vmem [thread:$0]  (!%p5880_p6), %s6510_s4, 16384, %s5869_s18, [#allocation6], %s5751_s26, %s5751_s26, %s5752_s3  }
  0x33   : > { %s6512_s6 = sld [smem:[#allocation34_spill]] }
  0x39   : > { %s5378_s2 = scalar_lea.hbm %s6512_s6, 64 }
  0x3a   : > { %p5379_p4 = scmp.ne.s32.totalorder %s6512_s6, %s5378_s2  ;;  %p5385_p12 = scmp.lt.u32.totalorder %s5378_s2, %s6512_s6 }
  0x3c   : > { %p5381_p10 = pnand %p5379_p4, %p5896_p8 }
  0x3e   : > { %p5382_p11 = pneg %p5381_p10 }
  0x40   : > { %p5387_p13 = pnand %p5385_p12, %p5382_p11 }
  0x42   : > { %5390 = shalt.err (!%p5387_p13)
}
  0x43   : > { %s5391_s18 = scalar_lea.vmem %s5884_s22, 64  ;;  %p5399_p7 = scmp.lt.s32.totalorder %s5884_s22, %s5884_s22 }
  0x44   : > { %p5392_p0 = scmp.ne.s32.totalorder %s5884_s22, %s5391_s18  ;;  %p5400_p9 = scmp.lt.s32.totalorder %s5391_s18, %s5391_s18 }
  0x46   : > { %p5394_p2 = pnand %p5392_p0, %p5896_p8  ;;  %p5401_p4 = por %p5400_p9, %p5399_p7 }
  0x48   : > { %p5395_p5 = pneg %p5394_p2 }
  0x4a   : > { %p5402_p10 = pnand %p5401_p4, %p5395_p5 }
  0x4c   : > { %5405 = shalt.err (!%p5402_p10)
}
  0x4d   : > { %5246 = dma.hbm_to_vmem [thread:$0]  (!%p5880_p6), %s6512_s6, 64, %s5884_s22, [#allocation9]  }
  0x4e   : > { %s5406_s26 = scalar_lea.hbm %s6487_s8, 576 }
  0x4f   : > { %p5407_p11 = scmp.ne.s32.totalorder %s6487_s8, %s5406_s26  ;;  %p5413_p0 = scmp.lt.u32.totalorder %s5406_s26, %s6487_s8 }
  0x51   : > { %p5409_p12 = pnand %p5407_p11, %p5896_p8 }
  0x53   : > { %p5410_p13 = pneg %p5409_p12 }
  0x55   : > { %p5415_p2 = pnand %p5413_p0, %p5410_p13 }
  0x57   : > { %5418 = shalt.err (!%p5415_p2)
}
  0x58   : > { %s5419_s22 = scalar_lea.vmem %s5886_s25, 576  ;;  %p5427_p4 = scmp.lt.s32.totalorder %s5886_s25, %s5886_s25 }
  0x59   : > { %p5420_p5 = scmp.ne.s32.totalorder %s5886_s25, %s5419_s22  ;;  %p5428_p10 = scmp.lt.s32.totalorder %s5419_s22, %s5419_s22 }
  0x5b   : > { %p5422_p7 = pnand %p5420_p5, %p5896_p8  ;;  %p5429_p11 = por %p5428_p10, %p5427_p4 }
  0x5d   : > { %p5423_p9 = pneg %p5422_p7 }
  0x5f   : > { %p5430_p12 = pnand %p5429_p11, %p5423_p9 }
  0x61   : > { %5433 = shalt.err (!%p5430_p12)
}
  0x62   : > { %s5753_s24 = smov 64   ;;  %s5754_s14 = smov 4  }
  0x63   : > { %5252 = dma.hbm_to_vmem [thread:$0]  (!%p5880_p6), %s6487_s8, 576, %s5886_s25, [#allocation12], %s5753_s24, %s5753_s24, %s5754_s14  }
  0x64   : > { %s5755_s1 = smov [#allocation14]   ;;  %s5756_s20 = smov [#allocation17]  }
  0x65   : > { %s464_s2 = sshll.u32 %s5755_s1, 4  ;;  %s490_s26 = sshll.u32 %s5756_s20, 4  ;;  %s465_s2 = int_to_ptr.vmem [resolvable:$true] %s464_s2  ;;  %s491_s26 = int_to_ptr.vmem [resolvable:$true] %s490_s26 }
  0x66   : > { %s5434_s28 = scalar_lea.hbm %s6489_s10, 8192 }
  0x67   : > { %p5435_p13 = scmp.ne.s32.totalorder %s6489_s10, %s5434_s28  ;;  %p5441_p5 = scmp.lt.u32.totalorder %s5434_s28, %s6489_s10 }
  0x69   : > { %p5437_p0 = pnand %p5435_p13, %p5896_p8 }
  0x6b   : > { %p5438_p2 = pneg %p5437_p0 }
  0x6d   : > { %p5443_p7 = pnand %p5441_p5, %p5438_p2 }
  0x6f   : > { %5446 = shalt.err (!%p5443_p7)
}
  0x70   : > { %s5447_s25 = scalar_lea.vmem %s465_s2, 8192  ;;  %p5455_p11 = scmp.lt.s32.totalorder %s465_s2, %s465_s2 }
  0x71   : > { %p5448_p9 = scmp.ne.s32.totalorder %s465_s2, %s5447_s25  ;;  %p5456_p12 = scmp.lt.s32.totalorder %s5447_s25, %s5447_s25 }
  0x73   : > { %p5450_p4 = pnand %p5448_p9, %p5896_p8  ;;  %p5457_p1 = por %p5456_p12, %p5455_p11 }
  0x75   : > { %p5451_p10 = pneg %p5450_p4 }
  0x77   : > { %p5458_p3 = pnand %p5457_p1, %p5451_p10 }
  0x79   : > { %5461 = shalt.err (!%p5458_p3)
}
  0x7a   : > { %s5757_s24 = smov 512   ;;  %s5758_s14 = smov 32  }
  0x7b   : > { %5258 = dma.hbm_to_vmem [thread:$0]  (!%p5880_p6), %s6489_s10, 8192, %s465_s2, [#allocation15], %s5757_s24, %s5757_s24, %s5758_s14  }
  0x7c   : > { %s5462_s1 = scalar_lea.hbm %s6491_s12, 73728 }
  0x7d   : > { %p5463_p1 = scmp.ne.s32.totalorder %s6491_s12, %s5462_s1  ;;  %p5469_p0 = scmp.lt.u32.totalorder %s5462_s1, %s6491_s12 }
  0x7f   : > { %p5465_p3 = pnand %p5463_p1, %p5896_p8 }
  0x81   : > { %p5466_p13 = pneg %p5465_p3 }
  0x83   : > { %p5471_p2 = pnand %p5469_p0, %p5466_p13 }
  0x85   : > { %5474 = shalt.err (!%p5471_p2)
}
  0x86   : > { %s5475_s17 = scalar_lea.vmem %s491_s26, 73728  ;;  %p5483_p4 = scmp.lt.s32.totalorder %s491_s26, %s491_s26 }
  0x87   : > { %p5476_p5 = scmp.ne.s32.totalorder %s491_s26, %s5475_s17  ;;  %p5484_p10 = scmp.lt.s32.totalorder %s5475_s17, %s5475_s17 }
  0x89   : > { %p5478_p7 = pnand %p5476_p5, %p5896_p8  ;;  %p5485_p11 = por %p5484_p10, %p5483_p4 }
  0x8b   : > { %p5479_p9 = pneg %p5478_p7 }
  0x8d   : > { %p5486_p12 = pnand %p5485_p11, %p5479_p9 }
  0x8f   : > { %5489 = shalt.err (!%p5486_p12)
}
  0x90   : > { %5264 = dma.hbm_to_vmem [thread:$0]  (!%p5880_p6), %s6491_s12, 73728, %s491_s26, [#allocation18], %s5757_s24, %s5757_s24, %s5758_s14  }
  0x91   : > { %s5759_s25 = smov [#allocation7]   ;;  %s5760_s6 = smov [#allocation10]  }
  0x92   : > { %s406_s4 = sshll.u32 %s5759_s25, 4  ;;  %s428_s18 = sshll.u32 %s5760_s6, 4  ;;  %s407_s4 = int_to_ptr.vmem [resolvable:$true] %s406_s4  ;;  %s429_s18 = int_to_ptr.vmem [resolvable:$true] %s428_s18 }
  0x93   : > { %s5490_s20 = scalar_lea.hbm %s6484_s5, 32 }
  0x94   : > { %p5491_p1 = scmp.ne.s32.totalorder %s6484_s5, %s5490_s20  ;;  %p5497_p0 = scmp.lt.u32.totalorder %s5490_s20, %s6484_s5 }
  0x96   : > { %p5493_p3 = pnand %p5491_p1, %p5896_p8 }
  0x98   : > { %p5494_p13 = pneg %p5493_p3 }
  0x9a   : > { %p5499_p2 = pnand %p5497_p0, %p5494_p13 }
  0x9c   : > { %5502 = shalt.err (!%p5499_p2)
}
  0x9d   : > { %s5503_s26 = scalar_lea.vmem %s407_s4, 32  ;;  %p5511_p4 = scmp.lt.s32.totalorder %s407_s4, %s407_s4 }
  0x9e   : > { %p5504_p5 = scmp.ne.s32.totalorder %s407_s4, %s5503_s26  ;;  %p5512_p10 = scmp.lt.s32.totalorder %s5503_s26, %s5503_s26 }
  0xa0   : > { %p5506_p7 = pnand %p5504_p5, %p5896_p8  ;;  %p5513_p11 = por %p5512_p10, %p5511_p4 }
  0xa2   : > { %p5507_p9 = pneg %p5506_p7 }
  0xa4   : > { %p5514_p12 = pnand %p5513_p11, %p5507_p9 }
  0xa6   : > { %5517 = shalt.err (!%p5514_p12)
}
  0xa7   : > { %5243 = dma.hbm_to_vmem [thread:$0]  (!%p5880_p6), %s6484_s5, 32, %s407_s4, [#allocation6]  }
  0xa8   : > { %s5518_s0 = scalar_lea.hbm %s6486_s7, 64 }
  0xa9   : > { %p5519_p1 = scmp.ne.s32.totalorder %s6486_s7, %s5518_s0  ;;  %p5525_p0 = scmp.lt.u32.totalorder %s5518_s0, %s6486_s7 }
  0xab   : > { %p5521_p3 = pnand %p5519_p1, %p5896_p8 }
  0xad   : > { %p5522_p13 = pneg %p5521_p3 }
  0xaf   : > { %p5527_p2 = pnand %p5525_p0, %p5522_p13 }
  0xb1   : > { %5530 = shalt.err (!%p5527_p2)
}
  0xb2   : > { %s5531_s28 = scalar_lea.vmem %s429_s18, 64  ;;  %p5539_p4 = scmp.lt.s32.totalorder %s429_s18, %s429_s18 }
  0xb3   : > { %p5532_p5 = scmp.ne.s32.totalorder %s429_s18, %s5531_s28  ;;  %p5540_p10 = scmp.lt.s32.totalorder %s5531_s28, %s5531_s28 }
  0xb5   : > { %p5534_p7 = pnand %p5532_p5, %p5896_p8  ;;  %p5541_p11 = por %p5540_p10, %p5539_p4 }
  0xb7   : > { %p5535_p9 = pneg %p5534_p7 }
  0xb9   : > { %p5542_p12 = pnand %p5541_p11, %p5535_p9 }
  0xbb   : > { %5545 = shalt.err (!%p5542_p12)
}
  0xbc   : > { %5249 = dma.hbm_to_vmem [thread:$0]  (!%p5880_p6), %s6486_s7, 64, %s429_s18, [#allocation9]  }
  0xbd   : > { %s5761_s26 = smov [#allocation13]   ;;  %s5762_s22 = smov [#allocation16]  }
  0xbe   : > { %s451_s2 = sshll.u32 %s5761_s26, 4  ;;  %s477_s25 = sshll.u32 %s5762_s22, 4  ;;  %s452_s2 = int_to_ptr.vmem [resolvable:$true] %s451_s2  ;;  %s478_s25 = int_to_ptr.vmem [resolvable:$true] %s477_s25 }
  0xbf   : > { %s5546_s1 = scalar_lea.hbm %s6488_s9, 16384 }
  0xc0   : > { %p5547_p1 = scmp.ne.s32.totalorder %s6488_s9, %s5546_s1  ;;  %p5553_p0 = scmp.lt.u32.totalorder %s5546_s1, %s6488_s9 }
  0xc2   : > { %p5549_p3 = pnand %p5547_p1, %p5896_p8 }
  0xc4   : > { %p5550_p13 = pneg %p5549_p3 }
  0xc6   : > { %p5555_p2 = pnand %p5553_p0, %p5550_p13 }
  0xc8   : > { %5558 = shalt.err (!%p5555_p2)
}
  0xc9   : > { %s5559_s18 = scalar_lea.vmem %s452_s2, 16384  ;;  %p5567_p4 = scmp.lt.s32.totalorder %s452_s2, %s452_s2 }
  0xca   : > { %p5560_p5 = scmp.ne.s32.totalorder %s452_s2, %s5559_s18  ;;  %p5568_p10 = scmp.lt.s32.totalorder %s5559_s18, %s5559_s18 }
  0xcc   : > { %p5562_p7 = pnand %p5560_p5, %p5896_p8  ;;  %p5569_p11 = por %p5568_p10, %p5567_p4 }
  0xce   : > { %p5563_p9 = pneg %p5562_p7 }
  0xd0   : > { %p5570_p12 = pnand %p5569_p11, %p5563_p9 }
  0xd2   : > { %5573 = shalt.err (!%p5570_p12)
}
  0xd3   : > { %5255 = dma.hbm_to_vmem [thread:$0]  (!%p5880_p6), %s6488_s9, 16384, %s452_s2, [#allocation12], %s5757_s24, %s5757_s24, %s5758_s14  }
  0xd4   : > { %s5574_s6 = scalar_lea.hbm %s6490_s11, 8192 }
  0xd5   : > { %p5575_p1 = scmp.ne.s32.totalorder %s6490_s11, %s5574_s6  ;;  %p5581_p0 = scmp.lt.u32.totalorder %s5574_s6, %s6490_s11 }
  0xd7   : > { %p5577_p3 = pnand %p5575_p1, %p5896_p8 }
  0xd9   : > { %p5578_p13 = pneg %p5577_p3 }
  0xdb   : > { %p5583_p2 = pnand %p5581_p0, %p5578_p13 }
  0xdd   : > { %5586 = shalt.err (!%p5583_p2)
}
  0xde   : > { %s5587_s27 = scalar_lea.vmem %s478_s25, 8192  ;;  %p5595_p4 = scmp.lt.s32.totalorder %s478_s25, %s478_s25 }
  0xdf   : > { %p5588_p5 = scmp.ne.s32.totalorder %s478_s25, %s5587_s27  ;;  %p5596_p10 = scmp.lt.s32.totalorder %s5587_s27, %s5587_s27 }
  0xe1   : > { %p5590_p7 = pnand %p5588_p5, %p5896_p8  ;;  %p5597_p11 = por %p5596_p10, %p5595_p4 }
  0xe3   : > { %p5591_p9 = pneg %p5590_p7 }
  0xe5   : > { %p5598_p12 = pnand %p5597_p11, %p5591_p9 }
  0xe7   : > { %5601 = shalt.err (!%p5598_p12)
}
  0xe8   : > { %5261 = dma.hbm_to_vmem [thread:$0]  (!%p5880_p6), %s6490_s11, 8192, %s478_s25, [#allocation15], %s5757_s24, %s5757_s24, %s5758_s14  }
  0xe9   : > { %s5763_s18 = smov [#allocation19]   ;;  %s5602_s22 = scalar_lea.hbm %s6492_s13, 64 }
  0xea   : > { %s504_s4 = sshll.u32 %s5763_s18, 4  ;;  %p5603_p1 = scmp.ne.s32.totalorder %s6492_s13, %s5602_s22  ;;  %s505_s4 = int_to_ptr.vmem [resolvable:$true] %s504_s4 }
  0xeb   : > { %p5609_p0 = scmp.lt.u32.totalorder %s5602_s22, %s6492_s13 }
  0xec   : > { %p5605_p3 = pnand %p5603_p1, %p5896_p8 }
  0xee   : > { %p5606_p13 = pneg %p5605_p3 }
  0xf0   : > { %p5611_p2 = pnand %p5609_p0, %p5606_p13 }
  0xf2   : > { %5614 = shalt.err (!%p5611_p2)
}
  0xf3   : > { %s5615_s24 = scalar_lea.vmem %s505_s4, 64  ;;  %p5623_p4 = scmp.lt.s32.totalorder %s505_s4, %s505_s4 }
  0xf4   : > { %p5616_p5 = scmp.ne.s32.totalorder %s505_s4, %s5615_s24  ;;  %p5624_p10 = scmp.lt.s32.totalorder %s5615_s24, %s5615_s24 }
  0xf6   : > { %p5618_p7 = pnand %p5616_p5, %p5896_p8  ;;  %p5625_p11 = por %p5624_p10, %p5623_p4 }
  0xf8   : > { %p5619_p9 = pneg %p5618_p7 }
  0xfa   : > { %p5626_p12 = pnand %p5625_p11, %p5619_p9 }
  0xfc   : > { %5629 = shalt.err (!%p5626_p12)
}
  0xfd   : > { %5267 = dma.hbm_to_vmem [thread:$0]  (!%p5880_p6), %s6492_s13, 64, %s505_s4, [#allocation18]  }
  0xfe   : > { %s4145_s21 = sadd.s32 4294967294, %s5746_s16   ;;  %s6103_s23 = sadd.s32 1, %s5746_s16  }
  0xff   : > { %s39_s3 = ssub.s32 %s5746_s16, %s6103_s23  ;;  %s42_s27 = sadd.s32 1, %s5742_s15 }
 0x100   : > { %p40_p8 = scmp.eq.s32.totalorder %s39_s3, 0  ;;  %p49_p1 = scmp.ne.s32.totalorder %s5742_s15, %s5738_s30 }
 0x101   : > { %p50_p3 = scmp.eq.s32.totalorder %s5746_s16, 0  ;;  %p55_p13 = scmp.ne.s32.totalorder %s5738_s30, %s5734_s29 }
 0x102   : > { %s6114_s2 = scalar_select %p40_p8, %s5742_s15, %s42_s27  }
 0x103   : > { %p6116_p0 = por %p50_p3, %p49_p1  ;;  %p6514_p2 = scmp.eq.s32.totalorder %s5864_s19, 0 }
 0x104   : > { %p367_p5 = scmp.eq.s32.totalorder %s5864_s19, 1  ;;  %p373_p7 = scmp.eq.s32.totalorder %s4145_s21, 1 }
 0x105   : > { %p6122_p6 = por %p6514_p2, %p55_p13  ;;  %p5286_p9 = scmp.lt.s32.totalorder %s5746_s16, 2 }
 0x106   : > { %s515_s4 = sand.u32 1, %s5742_s15   ;;  %p6129_p4 = por %p367_p5, %p49_p1 }
 0x107   : > { %p6133_p10 = por %p373_p7, %p55_p13  ;;  %s4158_s22 = sshll.u32 %s515_s4, 2 }
 0x108   : > { %s6516_s17 = scalar_select %p6129_p4, 1, 0 }
 0x109   : > { %s6517_s26 = scalar_select %p6133_p10, 1, 0 }
 0x10a   : > { %s4182_s6 = sshll.u32 %s5746_s16, 6  ;;  %s6518_s20 = sld [smem:[#allocation29_spill]] }
 0x10b   : > { %s519_s14 = scalar_lea.vmem [#allocation2], %s4158_s22  ;;  %p6147_p11 = pnand %p5286_p9, %p6116_p0 }
 0x10c   : > { %s527_s25 = sshll.u32 %s519_s14, 4  ;;  %s516_s3 = scalar_lea.sflag [#allocation3], %s515_s4  ;;  %s6143_s25 = int_to_ptr.vmem [resolvable:$true] %s527_s25 }
 0x10d   : > { %p5632_p8 = pneg %p6147_p11 }
 0x110   : > { %s6141_s24 = scalar_lea.hbm %s6518_s20, %s4182_s6  ;;  %s5635_s0 = scalar_lea.hbm %s6518_s20, 128 }
 0x111   : > { %s5630_s27 = scalar_lea.hbm %s6141_s24, 64  ;;  %p5636_p13 = scmp.lt.u32.totalorder %s6141_s24, %s6518_s20 }
 0x112   : > { %p5631_p12 = scmp.ne.s32.totalorder %s6141_s24, %s5630_s27  ;;  %p5637_p0 = scmp.lt.u32.totalorder %s5635_s0, %s5630_s27 }
 0x113   : > { %p5639_p5 = scmp.lt.u32.totalorder %s5630_s27, %s6141_s24 }
 0x114   : > { %p5633_p1 = pnand %p5632_p8, %p5631_p12  ;;  %p5638_p2 = por %p5637_p0, %p5636_p13 }
 0x116   : > { %p5634_p3 = pneg %p5633_p1  ;;  %p5640_p7 = por %p5639_p5, %p5638_p2 }
 0x118   : > { %p5641_p9 = pnand %p5640_p7, %p5634_p3 }
 0x11a   : > { %5644 = shalt.err (!%p5641_p9)
}
 0x11b   : > { %s5645_s4 = scalar_lea.vmem %s6143_s25, 64  ;;  %s5764_s14 = smov [#allocation2]  }
 0x11c   : > { %p5646_p12 = scmp.ne.s32.totalorder %s6143_s25, %s5645_s4  ;;  %s5650_s22 = sshll.u32 %s5764_s14, 4  ;;  %s5651_s22 = int_to_ptr.vmem [resolvable:$false] %s5650_s22 }
 0x11d   : > { %s5652_s6 = scalar_lea.vmem %s5651_s22, 128  ;;  %p5653_p4 = scmp.lt.s32.totalorder %s6143_s25, %s5651_s22 }
 0x11e   : > { %p5648_p1 = pnand %p5646_p12, %p5632_p8  ;;  %p5654_p13 = scmp.lt.s32.totalorder %s5652_s6, %s5645_s4 }
 0x120   : > { %p5649_p10 = pneg %p5648_p1  ;;  %p5655_p0 = por %p5654_p13, %p5653_p4 }
 0x122   : > { %p5656_p2 = pnand %p5655_p0, %p5649_p10 }
 0x124   : > { %5659 = shalt.err (!%p5656_p2)
}
 0x125   : > { %5271 = dma.hbm_to_vmem [thread:$0]  (!%p6147_p11), %s6141_s24, 64, %s6143_s25, %s516_s3  }
 0x126   : > { %s6520_s27 = sld [smem:[#allocation28_spill]] }
 0x12c   : > { %p6521_p3 = scmp.ne.s32.totalorder %s6520_s27, 0 }
 0x12d   : > { %s6179_s0 = sand.u32 (!%p6521_p3), 1, %s5738_s30  }
 0x12e   : > { %558 = sbr.rel (%p6521_p3) target bundleno = 1319 (0x527), region = 76  ;;  %s4162_s28 = sshll.u32 (!%p6521_p3), %s6179_s0, 2 }
 0x12f   : > { %s561_s1 = scalar_lea.sflag (!%p6521_p3), [#allocation3], %s6179_s0  ;;  %s6183_s4 = scalar_lea.vmem (!%p6521_p3), [#allocation2], %s4162_s28 }
 0x135   : > { %5705 = dma.done.wait (%p6122_p6), %s561_s1, 64  }
 0x136   : > { %5707 = vsyncadd (%p6122_p6), %s561_s1, 4294967232  ;;  %p6522_p4 = scmp.eq.s32.totalorder %s5864_s19, 0 }
 0x138   : > { %5709 = dma.done.wait (%p6522_p4), [#allocation6], 16416   ;;  %p6523_p10 = pmov %p6522_p4 }
 0x139   : > { %p6524_p11 = pmov %p6522_p4 }
 0x13a   : > { %5711 = vsyncadd (%p6523_p10), [#allocation6], 4294950880 }
 0x13b   : > { %5713 = dma.done.wait (%p6524_p11), [#allocation9], 128   ;;  %p6525_p8 = pmov %p6522_p4 }
 0x13c   : > { %p6526_p5 = pmov %p6522_p4 }
 0x13d   : > { %5715 = vsyncadd (%p6525_p8), [#allocation9], 4294967168 }
 0x13e   : > { %5717 = dma.done.wait (%p6526_p5), [#allocation12], 16960   ;;  %p6527_p7 = pmov %p6522_p4 }
 0x13f   : > { %p6528_p6 = pmov %p6522_p4 }
 0x140   : > { %5719 = vsyncadd (%p6527_p7), [#allocation12], 4294950336 }
 0x141   : > { %5721 = dma.done.wait (%p6528_p6), [#allocation15], 16384   ;;  %p6529_p9 = pmov %p6522_p4 }
 0x142   : > { %p6530_p12 = pmov %p6522_p4 }
 0x143   : > { %5723 = vsyncadd (%p6529_p9), [#allocation15], 4294950912 }
 0x144   : > { %5725 = dma.done.wait (%p6530_p12), [#allocation18], 73792   ;;  %p6531_p1 = pmov %p6522_p4 }
 0x145   : > { %v5765_v0 = vmov 0   ;;  %p662_p13 = scmp.lt.s32.totalorder %s5864_s19, 1  ;;  %v677_v1 = vld [vmem:[#allocation5 + $0x8] sm:$0xff]  ;;  %v679_v2 = vld [vmem:[#allocation5 + $0x18] sm:$0xff]  ;;  %v676_v3 = vld [vmem:[#allocation5] sm:$0xff]  ;;  %s6532_s3 = sld [smem:[#allocation30_spill]]  ;;  %v806_v28 = vlaneseq }
 0x146   : > { %5727 = vsyncadd (%p6531_p1), [#allocation18], 4294893504  ;;  %5348 = vset.pattern.permute.xlu0 %v5765_v0  ;;  %5349 = vset.pattern.permute.xlu1 %v5765_v0  ;;  %v4184_v4 = vpack.c.bf16 %v679_v2, %v677_v1  ;;  %v678_v5 = vld [vmem:[#allocation5 + $0x10] sm:$0xff]  ;;  %v681_v6 = vld [vmem:[#allocation5 + $0x28] sm:$0xff]  ;;  %s6533_s27 = sld [smem:[#allocation31_spill]]  ;;  %s6534_s25 = sld [smem:[#allocation32_spill]] }
 0x147   : > { %s6213_s18 = scalar_select %p662_p13, %s5864_s19, 1  ;;  %v683_v7 = vld [vmem:[#allocation5 + $0x38] sm:$0xff]  ;;  %v4186_v8 = vpack.c.bf16 %v678_v5, %v676_v3  ;;  %v680_v10 = vld [vmem:[#allocation5 + $0x20] sm:$0xff]  ;;  %v682_v11 = vld [vmem:[#allocation5 + $0x30] sm:$0xff]  ;;  %v6223_v36 = vshrl.u32 %v806_v28, 7 }
 0x148   : > { %v4188_v9 = vpack.c.bf16 %v683_v7, %v681_v6  ;;  %v685_v12 = vld [vmem:[#allocation5 + $0x48] sm:$0xff]  ;;  %4185 = vmatprep.subr.bf16.mxu0 %v4184_v4  ;;  %v687_v13 = vld [vmem:[#allocation5 + $0x58] sm:$0xff]  ;;  %v4190_v14 = vpack.c.bf16 %v682_v11, %v680_v10  ;;  %v684_v16 = vld [vmem:[#allocation5 + $0x40] sm:$0xff]  ;;  %p6536_p2 = scmp.ne.s32.totalorder %s6516_s17, 0 }
 0x149   : > { %s4174_s24 = sshll.u32 %s6213_s18, 3  ;;  %4187 = vmatpush1.bf16.msra.mxu0 %v4186_v8  ;;  %v4192_v15 = vpack.c.bf16 %v687_v13, %v685_v12  ;;  %v686_v17 = vld [vmem:[#allocation5 + $0x50] sm:$0xff]  ;;  %v689_v18 = vld [vmem:[#allocation5 + $0x68] sm:$0xff]  ;;  %v691_v19 = vld [vmem:[#allocation5 + $0x78] sm:$0xff]  ;;  %v6231_v43 = vsub.s32 1, %v6223_v36  ;;  %s5192_s1 = smul.u32 72, %s6213_s18 }
 0x14a   : > { %4189 = vmatprep.subr.bf16.mxu0 %v4188_v9  ;;  %v4194_v20 = vpack.c.bf16 %v686_v17, %v684_v16  ;;  %v4196_v21 = vpack.c.bf16 %v691_v19, %v689_v18  ;;  %v688_v22 = vld [vmem:[#allocation5 + $0x60] sm:$0xff]  ;;  %v690_v23 = vld [vmem:[#allocation5 + $0x70] sm:$0xff]  ;;  %v693_v25 = vld [vmem:[#allocation5 + $0x88] sm:$0xff]  ;;  %s4173_s18 = sshll.u32 %s6179_s0, 5 }
 0x14b   : > { %s665_s14 = scalar_lea.vmem %s6532_s3, %s4174_s24  ;;  %v695_v26 = vld [vmem:[#allocation5 + $0x98] sm:$0xff]  ;;  %v4198_v29 = vpack.c.bf16 %v690_v23, %v688_v22  ;;  %v692_v31 = vld [vmem:[#allocation5 + $0x80] sm:$0xff]  ;;  %v694_v32 = vld [vmem:[#allocation5 + $0x90] sm:$0xff]  ;;  %s6411_s3 = scalar_lea.vmem [#allocation20], %s4173_s18 }
 0x14c   : > { %v1249_v24 = vld [vmem:[%s665_s14] sm:$0xff]  ;;  %v4200_v30 = vpack.c.bf16 %v695_v26, %v693_v25  ;;  %v697_v34 = vld [vmem:[#allocation5 + $0xa8] sm:$0xff]  ;;  %v4202_v37 = vpack.c.bf16 %v694_v32, %v692_v31  ;;  %v696_v39 = vld [vmem:[#allocation5 + $0xa0] sm:$0xff]  ;;  %s669_s28 = scalar_lea.vmem %s6533_s27, %s4174_s24  ;;  %s6244_s21 = scalar_lea.vmem %s6534_s25, %s5192_s1 }
 0x14d   : > { %4191 = vmatpush1.bf16.msra.mxu0 %v4190_v14  ;;  %vm1252_vm0 = vcmp.eq.s32.totalorder %v1249_v24, 1  ;;  %vm1251_vm1 = vcmp.eq.s32.totalorder %v1249_v24, 0  ;;  %v699_v35 = vld [vmem:[#allocation5 + $0xb8] sm:$0xff]  ;;  %v698_v40 = vld [vmem:[#allocation5 + $0xb0] sm:$0xff]  ;;  %v701_v41 = vld [vmem:[#allocation5 + $0xc8] sm:$0xff]  ;;  %s4183_s14 = sshll.u32 %s5864_s19, 9 }
 0x14e   : > { %4193 = vmatprep.subr.bf16.mxu0 %v4192_v15  ;;  %v1253_v27 = vsel %vm1252_vm0, 1, %v5765_v0  ;;  %v1267_v33 = vsel %vm1251_vm1, 1, %v5765_v0  ;;  %v4204_v38 = vpack.c.bf16 %v699_v35, %v697_v34  ;;  %v703_v42 = vld [vmem:[#allocation5 + $0xd8] sm:$0xff]  ;;  %v4206_v44 = vpack.c.bf16 %v698_v40, %v696_v39  ;;  %v700_v47 = vld [vmem:[#allocation5 + $0xc0] sm:$0xff]  ;;  %v702_v48 = vld [vmem:[#allocation5 + $0xd0] sm:$0xff]  ;;  %s3944_s22 = sshll.u32 %s6411_s3, 4  ;;  %s6435_s22 = int_to_ptr.vmem [resolvable:$true] %s3944_s22 }
 0x14f   : > { %1255 = vperm.xlu0 %5348, %v1253_v27   ;;  %v1503_v45 = vld [vmem:[%s669_s28] sm:$0xff]  ;;  %v4208_v46 = vpack.c.bf16 %v703_v42, %v701_v41  ;;  %v705_v49 = vld [vmem:[#allocation5 + $0xe8] sm:$0xff]  ;;  %v4210_v54 = vpack.c.bf16 %v702_v48, %v700_v47  ;;  %v704_v57 = vld [vmem:[#allocation5 + $0xe0] sm:$0xff]  ;;  %s6535_s28 = sld [smem:[#allocation35_spill]]  ;;  %s5660_s24 = scalar_lea.vmem %s6435_s22, 512 }
 0x150   : > { %vm1506_vm2 = vcmp.eq.s32.totalorder %v1503_v45, 1  ;;  %vm1505_vm3 = vcmp.eq.s32.totalorder %v1503_v45, 0  ;;  %v707_v50 = vld [vmem:[#allocation5 + $0xf8] sm:$0xff]  ;;  %v706_v58 = vld [vmem:[#allocation5 + $0xf0] sm:$0xff]  ;;  %v709_v59 = vld [vmem:[#allocation5 + $0x108] sm:$0xff]  ;;  %p5661_p0 = scmp.ne.s32.totalorder %s6435_s22, %s5660_s24  ;;  %s5767_s19 = smov [#allocation20]  }
 0x151   : > { %4195 = vmatpush1.bf16.msra.mxu0 %v4194_v20  ;;  %v1507_v51 = vsel %vm1506_vm2, 1, %v5765_v0  ;;  %v6235_v52 = vld [vmem:[%s6183_s4] sm:$0xf]  ;;  %v1521_v55 = vsel %vm1505_vm3, 1, %v5765_v0  ;;  %v4212_v56 = vpack.c.bf16 %v707_v50, %v705_v49  ;;  %v4214_v61 = vpack.c.bf16 %v706_v58, %v704_v57  ;;  %v708_v63 = vld [vmem:[#allocation5 + $0x100] sm:$0xff]  ;;  %v710_v1 = vld [vmem:[#allocation5 + $0x110] sm:$0xff] }
 0x152   : > { %4197 = vmatprep.subr.bf16.mxu0 %v4196_v21  ;;  %1509 = vperm.xlu1 %5349, %v1507_v51   ;;  %v813_v53 = vrot.slane %v6235_v52, %v6231_v43  ;;  %v711_v60 = vld [vmem:[#allocation5 + $0x118] sm:$0xff]  ;;  %v713_v2 = vld [vmem:[#allocation5 + $0x128] sm:$0xff]  ;;  %v4218_v4 = vpack.c.bf16 %v710_v1, %v708_v63  ;;  %v712_v6 = vld [vmem:[#allocation5 + $0x120] sm:$0xff]  ;;  %v6256_v58 = vsub.s32 0, %v6223_v36  ;;  %s3930_s4 = scalar_lea.sflag [#allocation4], %s6179_s0  ;;  %p5662_p3 = pnand %p5661_p0, %p6536_p2 }
 0x153   : > { %1269 = vperm.xlu0 %5348, %v1267_v33   ;;  %v4216_v62 = vpack.c.bf16 %v711_v60, %v709_v59  ;;  %v715_v3 = vld [vmem:[#allocation5 + $0x138] sm:$0xff]  ;;  %v714_v7 = vld [vmem:[#allocation5 + $0x130] sm:$0xff]  ;;  %v717_v9 = vld [vmem:[#allocation5 + $0x148] sm:$0xff]  ;;  %v820_v60 = vsub.s32 3, %v6223_v36  ;;  %s5664_s25 = sshll.u32 %s5767_s19, 4  ;;  %s5665_s25 = int_to_ptr.vmem [resolvable:$false] %s5664_s25 }
 0x154   : > { %901 = vmatprep.mubr.f32.mxu0 %v813_v53  ;;  %v4220_v5 = vpack.c.bf16 %v715_v3, %v713_v2  ;;  %v1741_v8 = vld [vmem:[%s6244_s21] sm:$0xff]  ;;  %v4222_v13 = vpack.c.bf16 %v714_v7, %v712_v6  ;;  %v716_v15 = vld [vmem:[#allocation5 + $0x140] sm:$0xff]  ;;  %v718_v16 = vld [vmem:[#allocation5 + $0x150] sm:$0xff]  ;;  %v809_v3 = vrot.slane %v6235_v52, %v6256_v58  ;;  %p5663_p4 = pneg %p5662_p3  ;;  %p5667_p10 = scmp.lt.s32.totalorder %s6435_s22, %s5665_s25 }
 0x155   : > { %4199 = vmatpush1.bf16.msra.mxu0 %v4198_v29  ;;  %v719_v10 = vld [vmem:[#allocation5 + $0x158] sm:$0xff]  ;;  %vm1752_vm4 = vcmp.eq.s32.totalorder %v1741_v8, 1  ;;  %vm1751_vm5 = vcmp.eq.s32.totalorder %v1741_v8, 0  ;;  %v721_v17 = vld [vmem:[#allocation5 + $0x168] sm:$0xff]  ;;  %v4226_v19 = vpack.c.bf16 %v718_v16, %v716_v15  ;;  %v720_v21 = vld [vmem:[#allocation5 + $0x160] sm:$0xff]  ;;  %s6433_s1 = scalar_lea.hbm %s6535_s28, %s4183_s14 }
 0x156   : > { %4201 = vmatprep.subr.bf16.mxu0 %v4200_v30  ;;  %1523 = vperm.xlu1 %5349, %v1521_v55   ;;  %v1753_v11 = vsel %vm1752_vm4, 1, %v5765_v0  ;;  %v1767_v12 = vsel %vm1751_vm5, 1, %v5765_v0  ;;  %v4224_v14 = vpack.c.bf16 %v719_v10, %v717_v9  ;;  %v723_v18 = vld [vmem:[#allocation5 + $0x178] sm:$0xff]  ;;  %v722_v22 = vld [vmem:[#allocation5 + $0x170] sm:$0xff]  ;;  %v725_v23 = vld [vmem:[#allocation5 + $0x188] sm:$0xff] }
 0x157   : > { %1755 = vperm.xlu0 %5348, %v1753_v11   ;;  %v4228_v20 = vpack.c.bf16 %v723_v18, %v721_v17  ;;  %v727_v24 = vld [vmem:[#allocation5 + $0x198] sm:$0xff]  ;;  %v4230_v25 = vpack.c.bf16 %v722_v22, %v720_v21  ;;  %v1742_v26 = vld [vmem:[%s6244_s21 + $0x8] sm:$0xff]  ;;  %v726_v29 = vld [vmem:[#allocation5 + $0x190] sm:$0xff] }
 0x158   : > { %v4232_v27 = vpack.c.bf16 %v727_v24, %v725_v23  ;;  %v724_v28 = vld [vmem:[#allocation5 + $0x180] sm:$0xff]  ;;  %vm1990_vm6 = vcmp.eq.s32.totalorder %v1742_v26, 1  ;;  %vm1989_vm7 = vcmp.eq.s32.totalorder %v1742_v26, 0  ;;  %v729_v30 = vld [vmem:[#allocation5 + $0x1a8] sm:$0xff]  ;;  %v731_v31 = vld [vmem:[#allocation5 + $0x1b8] sm:$0xff] }
 0x159   : > { %4203 = vmatpush1.bf16.msra.mxu0 %v4202_v37  ;;  %v1991_v32 = vsel %vm1990_vm6, 1, %v5765_v0  ;;  %v2005_v33 = vsel %vm1989_vm7, 1, %v5765_v0  ;;  %v4234_v34 = vpack.c.bf16 %v726_v29, %v724_v28  ;;  %v4236_v35 = vpack.c.bf16 %v731_v31, %v729_v30  ;;  %v728_v37 = vld [vmem:[#allocation5 + $0x1a0] sm:$0xff]  ;;  %v733_v39 = vld [vmem:[#allocation5 + $0x1c8] sm:$0xff]  ;;  %v735_v40 = vld [vmem:[#allocation5 + $0x1d8] sm:$0xff] }
 0x15a   : > { %4205 = vmatprep.subr.bf16.mxu0 %v4204_v38  ;;  %1769 = vperm.xlu1 %5349, %v1767_v12   ;;  %v730_v38 = vld [vmem:[#allocation5 + $0x1b0] sm:$0xff]  ;;  %v4240_v42 = vpack.c.bf16 %v735_v40, %v733_v39  ;;  %v739_v47 = vld [vmem:[#allocation5 + $0x1f8] sm:$0xff]  ;;  %v1743_v48 = vld [vmem:[%s6244_s21 + $0x10] sm:$0xff] }
 0x15b   : > { %1993 = vperm.xlu0 %5348, %v1991_v32   ;;  %v4238_v41 = vpack.c.bf16 %v730_v38, %v728_v37  ;;  %v734_v45 = vld [vmem:[#allocation5 + $0x1d0] sm:$0xff]  ;;  %vm2229_vm8 = vcmp.eq.s32.totalorder %v1743_v48, 1  ;;  %vm2228_vm9 = vcmp.eq.s32.totalorder %v1743_v48, 0  ;;  %v736_v51 = vld [vmem:[#allocation5 + $0x1e0] sm:$0xff]  ;;  %v743_v57 = vld [vmem:[#allocation5 + $0x218] sm:$0xff] }
 0x15c   : > { %v738_v53 = vld [vmem:[#allocation5 + $0x1f0] sm:$0xff]  ;;  %v2244_v55 = vsel %vm2228_vm9, 1, %v5765_v0  ;;  %v745_v1 = vld [vmem:[#allocation5 + $0x228] sm:$0xff]  ;;  %v747_v2 = vld [vmem:[#allocation5 + $0x238] sm:$0xff] }
 0x15d   : > { %4207 = vmatpush1.bf16.msra.mxu0 %v4206_v44  ;;  %v732_v44 = vld [vmem:[#allocation5 + $0x1c0] sm:$0xff]  ;;  %v4246_v59 = vpack.c.bf16 %v738_v53, %v736_v51  ;;  %v742_v63 = vld [vmem:[#allocation5 + $0x210] sm:$0xff]  ;;  %v4252_v6 = vpack.c.bf16 %v747_v2, %v745_v1  ;;  %v749_v9 = vld [vmem:[#allocation5 + $0x248] sm:$0xff] }
 0x15e   : > { %4209 = vmatprep.subr.bf16.mxu0 %v4208_v46  ;;  %2007 = vperm.xlu1 %5349, %v2005_v33   ;;  %v737_v46 = vld [vmem:[#allocation5 + $0x1e8] sm:$0xff]  ;;  %v4242_v49 = vpack.c.bf16 %v734_v45, %v732_v44  ;;  %v744_v7 = vld [vmem:[#allocation5 + $0x220] sm:$0xff]  ;;  %v746_v8 = vld [vmem:[#allocation5 + $0x230] sm:$0xff] }
 0x15f   : > { %v4244_v50 = vpack.c.bf16 %v739_v47, %v737_v46  ;;  %v751_v10 = vld [vmem:[#allocation5 + $0x258] sm:$0xff]  ;;  %v1744_v11 = vld [vmem:[%s6244_s21 + $0x18] sm:$0xff]  ;;  %v4254_v12 = vpack.c.bf16 %v746_v8, %v744_v7  ;;  %v748_v16 = vld [vmem:[#allocation5 + $0x240] sm:$0xff] }
 0x160   : > { %vm2468_vm10 = vcmp.eq.s32.totalorder %v1744_v11, 1  ;;  %vm2467_vm11 = vcmp.eq.s32.totalorder %v1744_v11, 0  ;;  %v4256_v15 = vpack.c.bf16 %v751_v10, %v749_v9  ;;  %v750_v17 = vld [vmem:[#allocation5 + $0x250] sm:$0xff]  ;;  %v753_v18 = vld [vmem:[#allocation5 + $0x268] sm:$0xff]  ;;  %v752_v22 = vld [vmem:[#allocation5 + $0x260] sm:$0xff] }
 0x161   : > { %4211 = vmatpush1.bf16.msra.mxu0 %v4210_v54  ;;  %v2230_v54 = vsel %vm2229_vm8, 1, %v5765_v0  ;;  %v754_v23 = vld [vmem:[#allocation5 + $0x270] sm:$0xff]  ;;  %v757_v24 = vld [vmem:[#allocation5 + $0x288] sm:$0xff]  ;;  %v756_v28 = vld [vmem:[#allocation5 + $0x280] sm:$0xff] }
 0x162   : > { %4213 = vmatprep.subr.bf16.mxu0 %v4212_v56  ;;  %v741_v56 = vld [vmem:[#allocation5 + $0x208] sm:$0xff]  ;;  %2232 = vperm.xlu0 %5348, %v2230_v54   ;;  %v4262_v26 = vpack.c.bf16 %v754_v23, %v752_v22  ;;  %v758_v29 = vld [vmem:[#allocation5 + $0x290] sm:$0xff]  ;;  %v763_v31 = vld [vmem:[#allocation5 + $0x2b8] sm:$0xff] }
 0x163   : > { %2246 = vperm.xlu1 %5349, %v2244_v55   ;;  %v761_v30 = vld [vmem:[#allocation5 + $0x2a8] sm:$0xff]  ;;  %v4266_v32 = vpack.c.bf16 %v758_v29, %v756_v28  ;;  %v767_v38 = vld [vmem:[#allocation5 + $0x2d8] sm:$0xff]  ;;  %v768_v48 = vld [vmem:[#allocation5 + $0x2e0] sm:$0xff] }
 0x164   : > { %v4268_v33 = vpack.c.bf16 %v763_v31, %v761_v30  ;;  %v765_v37 = vld [vmem:[#allocation5 + $0x2c8] sm:$0xff]  ;;  %v771_v45 = vld [vmem:[#allocation5 + $0x2f8] sm:$0xff]  ;;  %v772_v55 = vld [vmem:[#allocation5 + $0x300] sm:$0xff] }
 0x165   : > { %4215 = vmatpush1.bf16.msra.mxu0 %v4214_v61  ;;  %v4248_v61 = vpack.c.bf16 %v743_v57, %v741_v56  ;;  %v4272_v40 = vpack.c.bf16 %v767_v38, %v765_v37  ;;  %v769_v44 = vld [vmem:[#allocation5 + $0x2e8] sm:$0xff]  ;;  %v775_v51 = vld [vmem:[#allocation5 + $0x318] sm:$0xff]  ;;  %v774_v56 = vld [vmem:[#allocation5 + $0x310] sm:$0xff] }
 0x166   : > { %4217 = vmatprep.subr.bf16.mxu0 %v4216_v62  ;;  %v740_v62 = vld [vmem:[#allocation5 + $0x200] sm:$0xff]  ;;  %v4276_v47 = vpack.c.bf16 %v771_v45, %v769_v44  ;;  %v777_v57 = vld [vmem:[#allocation5 + $0x328] sm:$0xff]  ;;  %v782_v10 = vld [vmem:[#allocation5 + $0x350] sm:$0xff]  ;;  %v6271_v45 = vsub.s32 2, %v6223_v36 }
 0x167   : > { %v776_v2 = vld [vmem:[#allocation5 + $0x320] sm:$0xff]  ;;  %v785_v11 = vld [vmem:[#allocation5 + $0x368] sm:$0xff]  ;;  %v790_v22 = vld [vmem:[#allocation5 + $0x390] sm:$0xff] }
 0x168   : > { %v780_v9 = vld [vmem:[#allocation5 + $0x340] sm:$0xff]  ;;  %v793_v23 = vld [vmem:[#allocation5 + $0x3a8] sm:$0xff]  ;;  %v794_v28 = vld [vmem:[#allocation5 + $0x3b0] sm:$0xff] }
 0x169   : > { %4219 = vmatpush1.bf16.msra.mxu0 %v4218_v4  ;;  %v4250_v4 = vpack.c.bf16 %v742_v63, %v740_v62  ;;  %v4282_v62 = vpack.c.bf16 %v774_v56, %v772_v55  ;;  %v797_v29 = vld [vmem:[#allocation5 + $0x3c8] sm:$0xff]  ;;  %v799_v30 = vld [vmem:[#allocation5 + $0x3d8] sm:$0xff] }
 0x16a   : > { %4221 = vmatprep.subr.bf16.mxu0 %v4220_v5  ;;  %v821_v5 = vrot.slane %v6235_v52, %v820_v60  ;;  %v803_v37 = vld [vmem:[#allocation5 + $0x3f8] sm:$0xff] }
 0x16b   : > { %v1282_v44 = vld [vmem:[#allocation14 + $0x28] sm:$0xff] }
 0x16d   : > { %4223 = vmatpush1.bf16.msra.mxu0 %v4222_v13  ;;  %v2469_v13 = vsel %vm2468_vm10, 1, %v5765_v0 }
 0x16e   : > { %4225 = vmatprep.subr.bf16.mxu0 %v4224_v14  ;;  %v2483_v14 = vsel %vm2467_vm11, 1, %v5765_v0  ;;  %2471 = vperm.xlu0 %5348, %v2469_v13   ;;  %v4290_v13 = vpack.c.bf16 %v782_v10, %v780_v9  ;;  %v1301_v10 = vld [vmem:[#allocation14 + $0xc0] sm:$0xff] }
 0x16f   : > { %2485 = vperm.xlu1 %5349, %v2483_v14  }
 0x171   : > { %4227 = vmatpush1.bf16.msra.mxu0 %v4226_v19  ;;  %v755_v19 = vld [vmem:[#allocation5 + $0x278] sm:$0xff] }
 0x172   : > { %4229 = vmatprep.subr.bf16.mxu0 %v4228_v20  ;;  %v4258_v20 = vpack.c.bf16 %v750_v17, %v748_v16  ;;  %v4260_v21 = vpack.c.bf16 %v755_v19, %v753_v18  ;;  %v786_v16 = vld [vmem:[#allocation5 + $0x370] sm:$0xff]  ;;  %v789_v17 = vld [vmem:[#allocation5 + $0x388] sm:$0xff]  ;;  %v791_v18 = vld [vmem:[#allocation5 + $0x398] sm:$0xff] }
 0x175   : > { %4231 = vmatpush1.bf16.msra.mxu0 %v4230_v25  ;;  %v759_v25 = vld [vmem:[#allocation5 + $0x298] sm:$0xff] }
 0x176   : > { %4233 = vmatprep.subr.bf16.mxu0 %v4232_v27  ;;  %v4264_v27 = vpack.c.bf16 %v759_v25, %v757_v24  ;;  %v795_v24 = vld [vmem:[#allocation5 + $0x3b8] sm:$0xff] }
 0x179   : > { %4235 = vmatpush1.bf16.msra.mxu0 %v4234_v34  ;;  %v760_v34 = vld [vmem:[#allocation5 + $0x2a0] sm:$0xff] }
 0x17a   : > { %4237 = vmatprep.subr.bf16.mxu0 %v4236_v35  ;;  %v762_v35 = vld [vmem:[#allocation5 + $0x2b0] sm:$0xff] }
 0x17b   : > { %v4270_v39 = vpack.c.bf16 %v762_v35, %v760_v34  ;;  %v798_v34 = vld [vmem:[#allocation5 + $0x3d0] sm:$0xff]  ;;  %v801_v35 = vld [vmem:[#allocation5 + $0x3e8] sm:$0xff] }
 0x17d   : > { %4239 = vmatpush1.bf16.msra.mxu0 %v4238_v41  ;;  %v764_v41 = vld [vmem:[#allocation5 + $0x2c0] sm:$0xff] }
 0x17e   : > { %4241 = vmatprep.subr.bf16.mxu0 %v4240_v42  ;;  %v766_v42 = vld [vmem:[#allocation5 + $0x2d0] sm:$0xff] }
 0x17f   : > { %v4274_v46 = vpack.c.bf16 %v766_v42, %v764_v41  ;;  %v802_v41 = vld [vmem:[#allocation5 + $0x3f0] sm:$0xff] }
 0x180   : > { %v1278_v42 = vld [vmem:[#allocation14 + $0x8] sm:$0xff] }
 0x181   : > { %4243 = vmatpush1.bf16.msra.mxu0 %v4242_v49  ;;  %v770_v49 = vld [vmem:[#allocation5 + $0x2f0] sm:$0xff] }
 0x182   : > { %4245 = vmatprep.subr.bf16.mxu0 %v4244_v50  ;;  %v773_v50 = vld [vmem:[#allocation5 + $0x308] sm:$0xff]  ;;  %v4278_v53 = vpack.c.bf16 %v770_v49, %v768_v48 }
 0x183   : > { %v4280_v54 = vpack.c.bf16 %v775_v51, %v773_v50  ;;  %v1277_v48 = vld [vmem:[#allocation14] sm:$0xff]  ;;  %v1286_v50 = vld [vmem:[#allocation14 + $0x48] sm:$0xff] }
 0x184   : > { %v1281_v49 = vld [vmem:[#allocation14 + $0x20] sm:$0xff]  ;;  %v1290_v51 = vld [vmem:[#allocation14 + $0x68] sm:$0xff] }
 0x185   : > { %4247 = vmatpush1.bf16.msra.mxu0 %v4246_v59  ;;  %v779_v59 = vld [vmem:[#allocation5 + $0x338] sm:$0xff]  ;;  %v4442_v55 = vpack.c.bf16 %v1281_v49, %v1277_v48 }
 0x186   : > { %4249 = vmatprep.subr.bf16.mxu0 %v4248_v61  ;;  %v1745_v61 = vld [vmem:[%s6244_s21 + $0x20] sm:$0xff]  ;;  %v4284_v1 = vpack.c.bf16 %v779_v59, %v777_v57  ;;  %v4444_v57 = vpack.c.bf16 %v1290_v51, %v1286_v50  ;;  %v1285_v59 = vld [vmem:[#allocation14 + $0x40] sm:$0xff] }
 0x187   : > { %vm2707_vm12 = vcmp.eq.s32.totalorder %v1745_v61, 1  ;;  %vm2706_vm13 = vcmp.eq.s32.totalorder %v1745_v61, 0  ;;  %v1289_v61 = vld [vmem:[#allocation14 + $0x60] sm:$0xff]  ;;  %v1532_v50 = vld [vmem:[#allocation16 + $0x8] sm:$0xff] }
 0x188   : > { %902 = vmatmul.mubr.f32.vlgmr.msra.gmra.mrb[0].mxu0 %v809_v3  ;;  %v2708_v63 = vsel %vm2707_vm12, 1, %v5765_v0  ;;  %v778_v3 = vld [vmem:[#allocation5 + $0x330] sm:$0xff] }
 0x189   : > { %4251 = vmatpush1.bf16.msra.mxu0 %v4250_v4  ;;  %972 = vmatprep.mubr.f32.mxu0 %v821_v5  ;;  %v2722_v4 = vsel %vm2706_vm13, 1, %v5765_v0  ;;  %v781_v5 = vld [vmem:[#allocation5 + $0x348] sm:$0xff]  ;;  %v4286_v7 = vpack.c.bf16 %v778_v3, %v776_v2  ;;  %v4446_v2 = vpack.c.bf16 %v1289_v61, %v1285_v59  ;;  %v1536_v51 = vld [vmem:[#allocation16 + $0x28] sm:$0xff] }
 0x18a   : > { %4253 = vmatprep.subr.bf16.mxu0 %v4252_v6  ;;  %2710 = vperm.xlu0 %5348, %v2708_v63   ;;  %v783_v6 = vld [vmem:[#allocation5 + $0x358] sm:$0xff]  ;;  %v1535_v59 = vld [vmem:[#allocation16 + $0x20] sm:$0xff] }
 0x18b   : > { %2724 = vperm.xlu1 %5349, %v2722_v4   ;;  %v4288_v8 = vpack.c.bf16 %v783_v6, %v781_v5  ;;  %v1294_v63 = vld [vmem:[#allocation14 + $0x88] sm:$0xff]  ;;  %v1293_v4 = vld [vmem:[#allocation14 + $0x80] sm:$0xff] }
 0x18c   : > { %v1297_v5 = vld [vmem:[#allocation14 + $0xa0] sm:$0xff]  ;;  %v1302_v6 = vld [vmem:[#allocation14 + $0xc8] sm:$0xff] }
 0x18d   : > { %4255 = vmatpush1.bf16.msra.mxu0 %v4254_v12  ;;  %v787_v12 = vld [vmem:[#allocation5 + $0x378] sm:$0xff] }
 0x18e   : > { %4257 = vmatprep.subr.bf16.mxu0 %v4256_v15  ;;  %v4292_v14 = vpack.c.bf16 %v787_v12, %v785_v11  ;;  %v784_v15 = vld [vmem:[#allocation5 + $0x360] sm:$0xff]  ;;  %v1305_v11 = vld [vmem:[#allocation14 + $0xe0] sm:$0xff]  ;;  %v1310_v12 = vld [vmem:[#allocation14 + $0x108] sm:$0xff] }
 0x18f   : > { %v4294_v19 = vpack.c.bf16 %v786_v16, %v784_v15  ;;  %v1309_v16 = vld [vmem:[#allocation14 + $0x100] sm:$0xff] }
 0x191   : > { %4259 = vmatpush1.bf16.msra.mxu0 %v4258_v20  ;;  %v4296_v20 = vpack.c.bf16 %v791_v18, %v789_v17  ;;  %v1313_v17 = vld [vmem:[#allocation14 + $0x120] sm:$0xff]  ;;  %v1318_v18 = vld [vmem:[#allocation14 + $0x148] sm:$0xff] }
 0x192   : > { %4261 = vmatprep.subr.bf16.mxu0 %v4260_v21  ;;  %v788_v21 = vld [vmem:[#allocation5 + $0x380] sm:$0xff] }
 0x193   : > { %v4298_v25 = vpack.c.bf16 %v790_v22, %v788_v21  ;;  %v1317_v22 = vld [vmem:[#allocation14 + $0x140] sm:$0xff] }
 0x195   : > { %4263 = vmatpush1.bf16.msra.mxu0 %v4262_v26  ;;  %v4300_v26 = vpack.c.bf16 %v795_v24, %v793_v23  ;;  %v1321_v23 = vld [vmem:[#allocation14 + $0x160] sm:$0xff]  ;;  %v1326_v24 = vld [vmem:[#allocation14 + $0x188] sm:$0xff] }
 0x196   : > { %4265 = vmatprep.subr.bf16.mxu0 %v4264_v27  ;;  %v792_v27 = vld [vmem:[#allocation5 + $0x3a0] sm:$0xff] }
 0x197   : > { %v4302_v31 = vpack.c.bf16 %v794_v28, %v792_v27 }
 0x199   : > { %4267 = vmatpush1.bf16.msra.mxu0 %v4266_v32  ;;  %v4304_v32 = vpack.c.bf16 %v799_v30, %v797_v29  ;;  %v1325_v29 = vld [vmem:[#allocation14 + $0x180] sm:$0xff] }
 0x19a   : > { %4269 = vmatprep.subr.bf16.mxu0 %v4268_v33  ;;  %v796_v33 = vld [vmem:[#allocation5 + $0x3c0] sm:$0xff]  ;;  %v1329_v30 = vld [vmem:[#allocation14 + $0x1a0] sm:$0xff] }
 0x19b   : > { %v4306_v38 = vpack.c.bf16 %v798_v34, %v796_v33  ;;  %v1338_v33 = vld [vmem:[#allocation14 + $0x1e8] sm:$0xff] }
 0x19c   : > { %v980_v34 = vld [vmem:[#allocation13 + $0x8] sm:$0xff] }
 0x19d   : > { %4271 = vmatpush1.bf16.msra.mxu0 %v4270_v39  ;;  %v4308_v39 = vpack.c.bf16 %v803_v37, %v801_v35  ;;  %v984_v35 = vld [vmem:[#allocation13 + $0x28] sm:$0xff]  ;;  %v4466_v37 = vpack.c.bf16 %v1329_v30, %v1325_v29  ;;  %v1547_v29 = vld [vmem:[#allocation16 + $0x80] sm:$0xff] }
 0x19e   : > { %4273 = vmatprep.subr.bf16.mxu0 %v4272_v40  ;;  %v800_v40 = vld [vmem:[#allocation5 + $0x3e0] sm:$0xff]  ;;  %v1551_v30 = vld [vmem:[#allocation16 + $0xa0] sm:$0xff] }
 0x1a1   : > { %4275 = vmatpush1.bf16.msra.mxu0 %v4274_v46  ;;  %v4310_v46 = vpack.c.bf16 %v802_v41, %v800_v40  ;;  %v983_v40 = vld [vmem:[#allocation13 + $0x20] sm:$0xff] }
 0x1a2   : > { %4277 = vmatprep.subr.bf16.mxu0 %v4276_v47  ;;  %v4440_v47 = vpack.c.bf16 %v1282_v44, %v1278_v42 }
 0x1a5   : > { %4279 = vmatpush1.bf16.msra.mxu0 %v4278_v53  ;;  %v1746_v53 = vld [vmem:[%s6244_s21 + $0x28] sm:$0xff] }
 0x1a6   : > { %4281 = vmatprep.subr.bf16.mxu0 %v4280_v54  ;;  %v817_v54 = vrot.slane %v6235_v52, %v6271_v45  ;;  %vm2946_vm14 = vcmp.eq.s32.totalorder %v1746_v53, 1  ;;  %vm2945_vm15 = vcmp.eq.s32.totalorder %v1746_v53, 0  ;;  %v5766_v52 = vmov 0.0   ;;  %v1531_v53 = vld [vmem:[#allocation16] sm:$0xff] }
 0x1a7   : > { %v2947_v56 = vsel %vm2946_vm14, 1, %v5765_v0 }
 0x1a8   : > { %2949 = vperm.xlu0 %5348, %v2947_v56  }
 0x1a9   : > { %4283 = vmatpush1.bf16.msra.mxu0 %v4282_v62  ;;  %v2961_v62 = vsel %vm2945_vm15, 1, %v5765_v0 }
 0x1aa   : > { %4285 = vmatprep.subr.bf16.mxu0 %v4284_v1  ;;  %v1298_v1 = vld [vmem:[#allocation14 + $0xa8] sm:$0xff]  ;;  %2963 = vperm.xlu1 %5349, %v2961_v62   ;;  %v987_v62 = vld [vmem:[#allocation13 + $0x40] sm:$0xff] }
 0x1ab   : > { %v4448_v3 = vpack.c.bf16 %v1298_v1, %v1294_v63  ;;  %v991_v63 = vld [vmem:[#allocation13 + $0x60] sm:$0xff] }
 0x1ad   : > { %4287 = vmatpush1.bf16.msra.mxu0 %v4286_v7  ;;  %v1306_v7 = vld [vmem:[#allocation14 + $0xe8] sm:$0xff] }
 0x1ae   : > { %4289 = vmatprep.subr.bf16.mxu0 %v4288_v8  ;;  %v4450_v8 = vpack.c.bf16 %v1297_v5, %v1293_v4  ;;  %v4452_v9 = vpack.c.bf16 %v1306_v7, %v1302_v6  ;;  %v1540_v4 = vld [vmem:[#allocation16 + $0x48] sm:$0xff]  ;;  %v1747_v6 = vld [vmem:[%s6244_s21 + $0x30] sm:$0xff]  ;;  %v4506_v7 = vpack.c.bf16 %v1535_v59, %v1531_v53 }
 0x1af   : > { %v1544_v5 = vld [vmem:[#allocation16 + $0x68] sm:$0xff]  ;;  %vm3185_vm2 = vcmp.eq.s32.totalorder %v1747_v6, 1  ;;  %vm3184_vm3 = vcmp.eq.s32.totalorder %v1747_v6, 0  ;;  %v1567_v59 = vld [vmem:[#allocation16 + $0x120] sm:$0xff] }
 0x1b1   : > { %4291 = vmatpush1.bf16.msra.mxu0 %v4290_v13  ;;  %v1314_v13 = vld [vmem:[#allocation14 + $0x128] sm:$0xff] }
 0x1b2   : > { %4293 = vmatprep.subr.bf16.mxu0 %v4292_v14  ;;  %v4454_v14 = vpack.c.bf16 %v1305_v11, %v1301_v10  ;;  %v4456_v15 = vpack.c.bf16 %v1314_v13, %v1310_v12  ;;  %v3186_v11 = vsel %vm3185_vm2, 1, %v5765_v0  ;;  %v995_v13 = vld [vmem:[#allocation13 + $0x80] sm:$0xff] }
 0x1b3   : > { %3188 = vperm.xlu0 %5348, %v3186_v11   ;;  %v1571_v11 = vld [vmem:[#allocation16 + $0x140] sm:$0xff] }
 0x1b5   : > { %4295 = vmatpush1.bf16.msra.mxu0 %v4294_v19  ;;  %v1322_v19 = vld [vmem:[#allocation14 + $0x168] sm:$0xff] }
 0x1b6   : > { %4297 = vmatprep.subr.bf16.mxu0 %v4296_v20  ;;  %v4458_v20 = vpack.c.bf16 %v1313_v17, %v1309_v16  ;;  %v4460_v21 = vpack.c.bf16 %v1322_v19, %v1318_v18  ;;  %v1539_v16 = vld [vmem:[#allocation16 + $0x40] sm:$0xff]  ;;  %v3200_v18 = vsel %vm3184_vm3, 1, %v5765_v0 }
 0x1b7   : > { %v1543_v17 = vld [vmem:[#allocation16 + $0x60] sm:$0xff]  ;;  %3202 = vperm.xlu1 %5349, %v3200_v18   ;;  %v1036_v18 = vld [vmem:[#allocation13 + $0x1c8] sm:$0xff] }
 0x1b9   : > { %4299 = vmatpush1.bf16.msra.mxu0 %v4298_v25  ;;  %v1330_v25 = vld [vmem:[#allocation14 + $0x1a8] sm:$0xff] }
 0x1ba   : > { %4301 = vmatprep.subr.bf16.mxu0 %v4300_v26  ;;  %v4462_v26 = vpack.c.bf16 %v1321_v23, %v1317_v22  ;;  %v4464_v28 = vpack.c.bf16 %v1330_v25, %v1326_v24  ;;  %v1004_v22 = vld [vmem:[#allocation13 + $0xc8] sm:$0xff]  ;;  %v4510_v24 = vpack.c.bf16 %v1543_v17, %v1539_v16 }
 0x1bb   : > { %v1008_v23 = vld [vmem:[#allocation13 + $0xe8] sm:$0xff] }
 0x1bc   : > { %v4324_v25 = vpack.c.bf16 %v1008_v23, %v1004_v22  ;;  %v1584_v16 = vld [vmem:[#allocation16 + $0x1a8] sm:$0xff] }
 0x1bd   : > { %4303 = vmatpush1.bf16.msra.mxu0 %v4302_v31  ;;  %v1250_v31 = vld [vmem:[#allocation8] sm:$0x7]  ;;  %v1749_v17 = vld [vmem:[%s6244_s21 + $0x40] sm:$0xff] }
 0x1be   : > { %4305 = vmatprep.subr.bf16.mxu0 %v4304_v32  ;;  %v1334_v32 = vld [vmem:[#allocation14 + $0x1c8] sm:$0xff]  ;;  %v1261_v41 = vrot.slane %v1250_v31, %v6231_v43  ;;  %v1265_v42 = vrot.slane %v1250_v31, %v6271_v45  ;;  %vm3663_vm6 = vcmp.eq.s32.totalorder %v1749_v17, 1  ;;  %vm3662_vm7 = vcmp.eq.s32.totalorder %v1749_v17, 0 }
 0x1bf   : > { %v4468_v44 = vpack.c.bf16 %v1338_v33, %v1334_v32  ;;  %v1556_v32 = vld [vmem:[#allocation16 + $0xc8] sm:$0xff]  ;;  %v3664_v22 = vsel %vm3663_vm6, 1, %v5765_v0 }
 0x1c0   : > { %v1560_v33 = vld [vmem:[#allocation16 + $0xe8] sm:$0xff] }
 0x1c1   : > { %4307 = vmatpush1.bf16.msra.mxu0 %v4306_v38  ;;  %v4312_v38 = vpack.c.bf16 %v984_v35, %v980_v34  ;;  %v1012_v34 = vld [vmem:[#allocation13 + $0x108] sm:$0xff] }
 0x1c2   : > { %4309 = vmatprep.subr.bf16.mxu0 %v4308_v39  ;;  %v979_v39 = vld [vmem:[#allocation13] sm:$0xff]  ;;  %v1016_v35 = vld [vmem:[#allocation13 + $0x128] sm:$0xff] }
 0x1c3   : > { %v4314_v48 = vpack.c.bf16 %v983_v40, %v979_v39  ;;  %4313 = vmatprep.subr.bf16.mxu1 %v4312_v38  ;;  %v4328_v38 = vpack.c.bf16 %v1016_v35, %v1012_v34  ;;  %v1011_v39 = vld [vmem:[#allocation13 + $0x100] sm:$0xff]  ;;  %v1044_v34 = vld [vmem:[#allocation13 + $0x208] sm:$0xff] }
 0x1c4   : > { %v1015_v40 = vld [vmem:[#allocation13 + $0x120] sm:$0xff]  ;;  %v1048_v35 = vld [vmem:[#allocation13 + $0x228] sm:$0xff] }
 0x1c5   : > { %4311 = vmatpush1.bf16.msra.mxu0 %v4310_v46  ;;  %v1333_v46 = vld [vmem:[#allocation14 + $0x1c0] sm:$0xff]  ;;  %4315 = vmatpush1.bf16.msra.mxu1 %v4314_v48  ;;  %v1568_v48 = vld [vmem:[#allocation16 + $0x128] sm:$0xff] }
 0x1c6   : > { %4441 = vmatprep.subr.bf16.mxu0 %v4440_v47  ;;  %v1337_v47 = vld [vmem:[#allocation14 + $0x1e0] sm:$0xff]  ;;  %v1794_v17 = vld [vmem:[#allocation17 + $0x88] sm:$0xff] }
 0x1c7   : > { %v4470_v56 = vpack.c.bf16 %v1337_v47, %v1333_v46  ;;  %v4330_v46 = vpack.c.bf16 %v1015_v40, %v1011_v39  ;;  %v1564_v47 = vld [vmem:[#allocation16 + $0x108] sm:$0xff]  ;;  %v1043_v39 = vld [vmem:[#allocation13 + $0x200] sm:$0xff] }
 0x1c8   : > { %973 = vmatmul.mubr.f32.vlgmr.msra.gmra.mrb[0].mxu0 %v817_v54  ;;  %v988_v54 = vld [vmem:[#allocation13 + $0x48] sm:$0xff]  ;;  %v1047_v40 = vld [vmem:[#allocation13 + $0x220] sm:$0xff] }
 0x1c9   : > { %4443 = vmatpush1.bf16.msra.mxu0 %v4442_v55  ;;  %1405 = vmatprep.mubr.f32.mxu0 %v5766_v52  ;;  %v992_v55 = vld [vmem:[#allocation13 + $0x68] sm:$0xff] }
 0x1ca   : > { %4445 = vmatprep.subr.bf16.mxu0 %v4444_v57  ;;  %v1275_v57 = vrot.slane %v1250_v31, %v6256_v58  ;;  %v4316_v61 = vpack.c.bf16 %v992_v55, %v988_v54  ;;  %v1019_v54 = vld [vmem:[#allocation13 + $0x140] sm:$0xff] }
 0x1cb   : > { %v1023_v55 = vld [vmem:[#allocation13 + $0x160] sm:$0xff] }
 0x1cc   : > { %4317 = vmatprep.subr.bf16.mxu1 %v4316_v61  ;;  %v4334_v61 = vpack.c.bf16 %v1023_v55, %v1019_v54 }
 0x1cd   : > { %4447 = vmatpush1.bf16.msra.mxu0 %v4446_v2  ;;  %v4504_v2 = vpack.c.bf16 %v1536_v51, %v1532_v50  ;;  %v1024_v50 = vld [vmem:[#allocation13 + $0x168] sm:$0xff] }
 0x1ce   : > { %4449 = vmatprep.subr.bf16.mxu0 %v4448_v3  ;;  %v1256_v27 = vpop.permute.xlu0 %1255  ;;  %v4318_v3 = vpack.c.bf16 %v991_v63, %v987_v62  ;;  %v1572_v62 = vld [vmem:[#allocation16 + $0x148] sm:$0xff] }
 0x1cf   : > { %vm1257_vm0 = vcmp.eq.s32.totalorder %v1256_v27, 1  ;;  %v1007_v27 = vld [vmem:[#allocation13 + $0xe0] sm:$0xff]  ;;  %v1576_v63 = vld [vmem:[#allocation16 + $0x168] sm:$0xff] }
 0x1d0   : > { %v1266_v1 = vsel %vm1257_vm0, %v1261_v41, %v1265_v42  ;;  %4319 = vmatpush1.bf16.msra.mxu1 %v4318_v3  ;;  %v4516_v41 = vpack.c.bf16 %v1560_v33, %v1556_v32  ;;  %v1555_v42 = vld [vmem:[#allocation16 + $0xc0] sm:$0xff]  ;;  %v1032_v3 = vld [vmem:[#allocation13 + $0x1a8] sm:$0xff] }
 0x1d1   : > { %4451 = vmatpush1.bf16.msra.mxu0 %v4450_v8  ;;  %v996_v8 = vld [vmem:[#allocation13 + $0x88] sm:$0xff] }
 0x1d2   : > { %4453 = vmatprep.subr.bf16.mxu0 %v4452_v9  ;;  %v1270_v49 = vpop.permute.xlu0 %1269  ;;  %v1000_v9 = vld [vmem:[#allocation13 + $0xa8] sm:$0xff] }
 0x1d3   : > { %vm1271_vm1 = vcmp.eq.s32.totalorder %v1270_v49, 1  ;;  %v4320_v12 = vpack.c.bf16 %v1000_v9, %v996_v8  ;;  %v1020_v49 = vld [vmem:[#allocation13 + $0x148] sm:$0xff]  ;;  %v1031_v8 = vld [vmem:[#allocation13 + $0x1a0] sm:$0xff]  ;;  %v4524_v9 = vpack.c.bf16 %v1576_v63, %v1572_v62 }
 0x1d4   : > { %v6284_v10 = vsel %vm1271_vm1, %v1275_v57, %v1266_v1  ;;  %v4332_v53 = vpack.c.bf16 %v1024_v50, %v1020_v49  ;;  %v1563_v57 = vld [vmem:[#allocation16 + $0x100] sm:$0xff]  ;;  %v1588_v32 = vld [vmem:[#allocation16 + $0x1c8] sm:$0xff] }
 0x1d5   : > { %4455 = vmatpush1.bf16.msra.mxu0 %v4454_v14  ;;  %v999_v14 = vld [vmem:[#allocation13 + $0xa0] sm:$0xff]  ;;  %4321 = vmatprep.subr.bf16.mxu1 %v4320_v12  ;;  %v1592_v33 = vld [vmem:[#allocation16 + $0x1e8] sm:$0xff] }
 0x1d6   : > { %4457 = vmatprep.subr.bf16.mxu0 %v4456_v15  ;;  %v4508_v15 = vpack.c.bf16 %v1544_v5, %v1540_v4  ;;  %v4322_v19 = vpack.c.bf16 %v999_v14, %v995_v13  ;;  %v1748_v1 = vld [vmem:[%s6244_s21 + $0x38] sm:$0xff]  ;;  %v4522_v4 = vpack.c.bf16 %v1567_v59, %v1563_v57  ;;  %s5666_s21 = scalar_lea.vmem %s5665_s25, 1024 }
 0x1d7   : > { %vm3424_vm4 = vcmp.eq.s32.totalorder %v1748_v1, 1  ;;  %vm3423_vm5 = vcmp.eq.s32.totalorder %v1748_v1, 0  ;;  %v1575_v12 = vld [vmem:[#allocation16 + $0x160] sm:$0xff]  ;;  %v1778_v49 = vld [vmem:[#allocation17 + $0x8] sm:$0xff]  ;;  %p5668_p11 = scmp.lt.s32.totalorder %s5666_s21, %s5660_s24 }
 0x1d8   : > { %4323 = vmatpush1.bf16.msra.mxu1 %v4322_v19  ;;  %v3425_v5 = vsel %vm3424_vm4, 1, %v5765_v0  ;;  %v3439_v13 = vsel %vm3423_vm5, 1, %v5765_v0  ;;  %v1040_v19 = vld [vmem:[#allocation13 + $0x1e8] sm:$0xff]  ;;  %v1051_v57 = vld [vmem:[#allocation13 + $0x240] sm:$0xff] }
 0x1d9   : > { %4459 = vmatpush1.bf16.msra.mxu0 %v4458_v20  ;;  %v1548_v20 = vld [vmem:[#allocation16 + $0x88] sm:$0xff]  ;;  %4325 = vmatprep.subr.bf16.mxu1 %v4324_v25  ;;  %v4340_v23 = vpack.c.bf16 %v1040_v19, %v1036_v18  ;;  %v1039_v25 = vld [vmem:[#allocation13 + $0x1e0] sm:$0xff]  ;;  %p5669_p8 = por %p5668_p11, %p5667_p10 }
 0x1da   : > { %4461 = vmatprep.subr.bf16.mxu0 %v4460_v21  ;;  %v1552_v21 = vld [vmem:[#allocation16 + $0xa8] sm:$0xff]  ;;  %3427 = vperm.xlu0 %5348, %v3425_v5   ;;  %v1055_v59 = vld [vmem:[#allocation13 + $0x260] sm:$0xff] }
 0x1db   : > { %3441 = vperm.xlu1 %5349, %v3439_v13   ;;  %v1782_v50 = vld [vmem:[#allocation17 + $0x28] sm:$0xff]  ;;  %v1777_v63 = vld [vmem:[#allocation17] sm:$0xff]  ;;  %p5670_p5 = pnand %p5669_p8, %p5663_p4 }
 0x1dc   : > { %v4568_v62 = vpack.c.bf16 %v1782_v50, %v1778_v49  ;;  %v1781_v1 = vld [vmem:[#allocation17 + $0x20] sm:$0xff]  ;;  %v1060_v5 = vld [vmem:[#allocation13 + $0x288] sm:$0xff] }
 0x1dd   : > { %4463 = vmatpush1.bf16.msra.mxu0 %v4462_v26  ;;  %v1003_v26 = vld [vmem:[#allocation13 + $0xc0] sm:$0xff]  ;;  %v1798_v18 = vld [vmem:[#allocation17 + $0xa8] sm:$0xff] }
 0x1de   : > { %4465 = vmatprep.subr.bf16.mxu0 %v4464_v28  ;;  %v4512_v28 = vpack.c.bf16 %v1552_v21, %v1548_v20  ;;  %v4326_v31 = vpack.c.bf16 %v1007_v27, %v1003_v26  ;;  %v4526_v20 = vpack.c.bf16 %v1575_v12, %v1571_v11  ;;  %v1510_v21 = vpop.permute.xlu1 %1509  ;;  %v1579_v27 = vld [vmem:[#allocation16 + $0x180] sm:$0xff]  ;;  %3666 = vperm.xlu0 %5348, %v3664_v22   ;;  %v1068_v19 = vld [vmem:[#allocation13 + $0x2c8] sm:$0xff] }
 0x1df   : > { %vm1511_vm8 = vcmp.eq.s32.totalorder %v1510_v21, 1  ;;  %v1059_v11 = vld [vmem:[#allocation13 + $0x280] sm:$0xff] }
 0x1e0   : > { %4327 = vmatpush1.bf16.msra.mxu1 %v4326_v31  ;;  %v1504_v31 = vld [vmem:[#allocation10] sm:$0x7]  ;;  %v1063_v12 = vld [vmem:[#allocation13 + $0x2a0] sm:$0xff] }
 0x1e1   : > { %4467 = vmatpush1.bf16.msra.mxu0 %v4466_v37  ;;  %v4514_v37 = vpack.c.bf16 %v1551_v30, %v1547_v29  ;;  %4329 = vmatprep.subr.bf16.mxu1 %v4328_v38  ;;  %v3678_v29 = vsel %vm3662_vm7, 1, %v5765_v0  ;;  %v4344_v38 = vpack.c.bf16 %v1048_v35, %v1044_v34  ;;  %v4532_v0 = vpack.c.bf16 %v1592_v33, %v1588_v32  ;;  %v1080_v32 = vld [vmem:[#allocation13 + $0x328] sm:$0xff]  ;;  %v1075_v35 = vld [vmem:[#allocation13 + $0x300] sm:$0xff] }
 0x1e2   : > { %4469 = vmatprep.subr.bf16.mxu0 %v4468_v44  ;;  %v1559_v44 = vld [vmem:[#allocation16 + $0xe0] sm:$0xff]  ;;  %3680 = vperm.xlu1 %5349, %v3678_v29   ;;  %v1529_v55 = vrot.slane %v1504_v31, %v6256_v58  ;;  %v1802_v29 = vld [vmem:[#allocation17 + $0xc8] sm:$0xff] }
 0x1e3   : > { %v4518_v51 = vpack.c.bf16 %v1559_v44, %v1555_v42  ;;  %v1519_v42 = vrot.slane %v1504_v31, %v6271_v45  ;;  %v1587_v44 = vld [vmem:[#allocation16 + $0x1c0] sm:$0xff] }
 0x1e4   : > { %4331 = vmatpush1.bf16.msra.mxu1 %v4330_v46  ;;  %v1591_v46 = vld [vmem:[#allocation16 + $0x1e0] sm:$0xff] }
 0x1e5   : > { %4471 = vmatpush1.bf16.msra.mxu0 %v4470_v56  ;;  %v4520_v56 = vpack.c.bf16 %v1568_v48, %v1564_v47  ;;  %4333 = vmatprep.subr.bf16.mxu1 %v4332_v53  ;;  %v4346_v47 = vpack.c.bf16 %v1047_v40, %v1043_v39  ;;  %v1524_v48 = vpop.permute.xlu1 %1523  ;;  %v1056_v53 = vld [vmem:[#allocation13 + $0x268] sm:$0xff]  ;;  %v4534_v54 = vpack.c.bf16 %v1591_v46, %v1587_v44  ;;  %v1801_v39 = vld [vmem:[#allocation17 + $0xc0] sm:$0xff] }
 0x1e6   : > { %4505 = vmatprep.subr.bf16.mxu0 %v4504_v2  ;;  %v1028_v2 = vld [vmem:[#allocation13 + $0x188] sm:$0xff]  ;;  %vm1525_vm9 = vcmp.eq.s32.totalorder %v1524_v48, 1  ;;  %v1805_v40 = vld [vmem:[#allocation17 + $0xe0] sm:$0xff] }
 0x1e7   : > { %v4336_v6 = vpack.c.bf16 %v1032_v3, %v1028_v2  ;;  %v4350_v2 = vpack.c.bf16 %v1055_v59, %v1051_v57  ;;  %v1786_v3 = vld [vmem:[#allocation17 + $0x48] sm:$0xff]  ;;  %v1083_v49 = vld [vmem:[#allocation13 + $0x340] sm:$0xff] }
 0x1e8   : > { %1406 = vmatmul.mubr.f32.vlgmr.msra.gmra.mrb[2].mxu0 %v6284_v10  ;;  %4335 = vmatpush1.bf16.msra.mxu1 %v4334_v61  ;;  %v1084_v44 = vld [vmem:[#allocation13 + $0x348] sm:$0xff]  ;;  %v1087_v50 = vld [vmem:[#allocation13 + $0x360] sm:$0xff] }
 0x1e9   : > { %4507 = vmatpush1.bf16.msra.mxu0 %v4506_v7  ;;  %1659 = vmatprep.mubr.f32.mxu0 %v5766_v52  ;;  %v1027_v7 = vld [vmem:[#allocation13 + $0x180] sm:$0xff]  ;;  %v1088_v46 = vld [vmem:[#allocation13 + $0x368] sm:$0xff] }
 0x1ea   : > { %4509 = vmatprep.subr.bf16.mxu0 %v4508_v15  ;;  %v4338_v14 = vpack.c.bf16 %v1031_v8, %v1027_v7  ;;  %v1580_v15 = vld [vmem:[#allocation16 + $0x188] sm:$0xff]  ;;  %4337 = vmatprep.subr.bf16.mxu1 %v4336_v6  ;;  %v4570_v8 = vpack.c.bf16 %v1781_v1, %v1777_v63  ;;  %v4364_v48 = vpack.c.bf16 %v1088_v46, %v1084_v44  ;;  %v1091_v1 = vld [vmem:[#allocation13 + $0x380] sm:$0xff] }
 0x1eb   : > { %v4528_v26 = vpack.c.bf16 %v1584_v16, %v1580_v15  ;;  %v1064_v6 = vld [vmem:[#allocation13 + $0x2a8] sm:$0xff]  ;;  %v1789_v15 = vld [vmem:[#allocation17 + $0x60] sm:$0xff]  ;;  %v4354_v16 = vpack.c.bf16 %v1063_v12, %v1059_v11 }
 0x1ec   : > { %4339 = vmatpush1.bf16.msra.mxu1 %v4338_v14  ;;  %v1785_v14 = vld [vmem:[#allocation17 + $0x40] sm:$0xff]  ;;  %v1822_v57 = vld [vmem:[#allocation17 + $0x168] sm:$0xff] }
 0x1ed   : > { %4511 = vmatpush1.bf16.msra.mxu0 %v4510_v24  ;;  %v1035_v24 = vld [vmem:[#allocation13 + $0x1c0] sm:$0xff]  ;;  %4341 = vmatprep.subr.bf16.mxu1 %v4340_v23  ;;  %v4574_v21 = vpack.c.bf16 %v1789_v15, %v1785_v14  ;;  %v1092_v59 = vld [vmem:[#allocation13 + $0x388] sm:$0xff] }
 0x1ee   : > { %4513 = vmatprep.subr.bf16.mxu0 %v4512_v28  ;;  %v1583_v28 = vld [vmem:[#allocation16 + $0x1a0] sm:$0xff]  ;;  %v4342_v30 = vpack.c.bf16 %v1039_v25, %v1035_v24  ;;  %v4576_v25 = vpack.c.bf16 %v1798_v18, %v1794_v17  ;;  %v1100_v11 = vld [vmem:[#allocation13 + $0x3c8] sm:$0xff] }
 0x1ef   : > { %v1067_v23 = vld [vmem:[#allocation13 + $0x2c0] sm:$0xff]  ;;  %v1104_v12 = vld [vmem:[#allocation13 + $0x3e8] sm:$0xff] }
 0x1f0   : > { %4343 = vmatpush1.bf16.msra.mxu1 %v4342_v30  ;;  %v1071_v24 = vld [vmem:[#allocation13 + $0x2e0] sm:$0xff]  ;;  %v1806_v30 = vld [vmem:[#allocation17 + $0xe8] sm:$0xff]  ;;  %v4372_v14 = vpack.c.bf16 %v1104_v12, %v1100_v11 }
 0x1f1   : > { %4515 = vmatpush1.bf16.msra.mxu0 %v4514_v37  ;;  %v4530_v37 = vpack.c.bf16 %v1583_v28, %v1579_v27  ;;  %4345 = vmatprep.subr.bf16.mxu1 %v4344_v38  ;;  %v1797_v27 = vld [vmem:[#allocation17 + $0xa0] sm:$0xff]  ;;  %v4358_v28 = vpack.c.bf16 %v1071_v24, %v1067_v23  ;;  %v4580_v38 = vpack.c.bf16 %v1806_v30, %v1802_v29  ;;  %v1750_v23 = vld [vmem:[#allocation11] sm:$0x7]  ;;  %v1756_v24 = vpop.permute.xlu0 %1755  ;;  %v2025_v44 = vld [vmem:[#allocation17 + $0x248] sm:$0xff] }
 0x1f2   : > { %4517 = vmatprep.subr.bf16.mxu0 %v4516_v41  ;;  %v1515_v41 = vrot.slane %v1504_v31, %v6231_v43  ;;  %v1076_v31 = vld [vmem:[#allocation13 + $0x308] sm:$0xff]  ;;  %v1099_v15 = vld [vmem:[#allocation13 + $0x3c0] sm:$0xff]  ;;  %v1761_v30 = vrot.slane %v1750_v23, %v6231_v43  ;;  %vm1757_vm10 = vcmp.eq.s32.totalorder %v1756_v24, 1 }
 0x1f3   : > { %v4360_v34 = vpack.c.bf16 %v1080_v32, %v1076_v31  ;;  %v1825_v18 = vld [vmem:[#allocation17 + $0x180] sm:$0xff]  ;;  %v1765_v31 = vrot.slane %v1750_v23, %v6271_v45  ;;  %v2029_v46 = vld [vmem:[#allocation17 + $0x268] sm:$0xff] }
 0x1f4   : > { %4347 = vmatpush1.bf16.msra.mxu1 %v4346_v47  ;;  %v1520_v61 = vsel %vm1511_vm8, %v1515_v41, %v1519_v42  ;;  %v1810_v42 = vld [vmem:[#allocation17 + $0x108] sm:$0xff]  ;;  %v4582_v47 = vpack.c.bf16 %v1805_v40, %v1801_v39  ;;  %v1833_v32 = vld [vmem:[#allocation17 + $0x1c0] sm:$0xff]  ;;  %v1775_v39 = vrot.slane %v1750_v23, %v6256_v58 }
 0x1f5   : > { %4519 = vmatpush1.bf16.msra.mxu0 %v4518_v51  ;;  %v1052_v51 = vld [vmem:[#allocation13 + $0x248] sm:$0xff]  ;;  %v6299_v7 = vsel %vm1525_vm9, %v1529_v55, %v1520_v61  ;;  %v4366_v55 = vpack.c.bf16 %v1087_v50, %v1083_v49  ;;  %v1766_v40 = vsel %vm1757_vm10, %v1761_v30, %v1765_v31  ;;  %v4636_v49 = vpack.c.bf16 %v2029_v46, %v2025_v44  ;;  %v2024_v50 = vld [vmem:[#allocation17 + $0x240] sm:$0xff] }
 0x1f6   : > { %4521 = vmatprep.subr.bf16.mxu0 %v4520_v56  ;;  %v4348_v56 = vpack.c.bf16 %v1056_v53, %v1052_v51  ;;  %v1809_v53 = vld [vmem:[#allocation17 + $0x100] sm:$0xff]  ;;  %v1096_v61 = vld [vmem:[#allocation13 + $0x3a8] sm:$0xff] }
 0x1f7   : > { %v4368_v63 = vpack.c.bf16 %v1096_v61, %v1092_v59  ;;  %v2036_v59 = vld [vmem:[#allocation17 + $0x2a0] sm:$0xff]  ;;  %v2041_v61 = vld [vmem:[#allocation17 + $0x2c8] sm:$0xff] }
 0x1f8   : > { %4349 = vmatprep.subr.bf16.mxu1 %v4348_v56  ;;  %v1818_v56 = vld [vmem:[#allocation17 + $0x148] sm:$0xff]  ;;  %v2052_v11 = vld [vmem:[#allocation17 + $0x320] sm:$0xff] }
 0x1f9   : > { %4523 = vmatpush1.bf16.msra.mxu0 %v4522_v4  ;;  %v1790_v4 = vld [vmem:[#allocation17 + $0x68] sm:$0xff]  ;;  %4351 = vmatpush1.bf16.msra.mxu1 %v4350_v2  ;;  %v1095_v2 = vld [vmem:[#allocation13 + $0x3a0] sm:$0xff] }
 0x1fa   : > { %4525 = vmatprep.subr.bf16.mxu0 %v4524_v9  ;;  %v4352_v9 = vpack.c.bf16 %v1064_v6, %v1060_v5  ;;  %v4572_v13 = vpack.c.bf16 %v1790_v4, %v1786_v3  ;;  %v4588_v3 = vpack.c.bf16 %v1822_v57, %v1818_v56  ;;  %v1817_v4 = vld [vmem:[#allocation17 + $0x140] sm:$0xff]  ;;  %v4370_v6 = vpack.c.bf16 %v1095_v2, %v1091_v1  ;;  %v2057_v12 = vld [vmem:[#allocation17 + $0x348] sm:$0xff] }
 0x1fb   : > { %v1821_v5 = vld [vmem:[#allocation17 + $0x160] sm:$0xff]  ;;  %v2073_v24 = vld [vmem:[#allocation17 + $0x3c8] sm:$0xff] }
 0x1fc   : > { %4353 = vmatprep.subr.bf16.mxu1 %v4352_v9  ;;  %v1830_v9 = vld [vmem:[#allocation17 + $0x1a8] sm:$0xff]  ;;  %v2032_v57 = vld [vmem:[#allocation17 + $0x280] sm:$0xff] }
 0x1fd   : > { %4527 = vmatpush1.bf16.msra.mxu0 %v4526_v20  ;;  %4355 = vmatpush1.bf16.msra.mxu1 %v4354_v16  ;;  %v1072_v20 = vld [vmem:[#allocation13 + $0x2e8] sm:$0xff]  ;;  %v1103_v16 = vld [vmem:[#allocation13 + $0x3e0] sm:$0xff] }
 0x1fe   : > { %4529 = vmatprep.subr.bf16.mxu0 %v4528_v26  ;;  %v4356_v22 = vpack.c.bf16 %v1072_v20, %v1068_v19  ;;  %v1793_v26 = vld [vmem:[#allocation17 + $0x80] sm:$0xff]  ;;  %v4374_v20 = vpack.c.bf16 %v1103_v16, %v1099_v15  ;;  %v2264_v44 = vld [vmem:[#allocation17 + $0x448] sm:$0xff] }
 0x1ff   : > { %v4578_v33 = vpack.c.bf16 %v1797_v27, %v1793_v26  ;;  %v1829_v19 = vld [vmem:[#allocation17 + $0x1a0] sm:$0xff]  ;;  %v986_v26 = vld [vmem:[#allocation13 + $0x38] sm:$0xff]  ;;  %v2268_v46 = vld [vmem:[#allocation17 + $0x468] sm:$0xff] }
 0x200   : > { %4357 = vmatprep.subr.bf16.mxu1 %v4356_v22  ;;  %v1838_v22 = vld [vmem:[#allocation17 + $0x1e8] sm:$0xff]  ;;  %v4594_v27 = vpack.c.bf16 %v1829_v19, %v1825_v18  ;;  %v2040_v2 = vld [vmem:[#allocation17 + $0x2c0] sm:$0xff] }
 0x201   : > { %4531 = vmatpush1.bf16.msra.mxu0 %v4530_v37  ;;  %4359 = vmatpush1.bf16.msra.mxu1 %v4358_v28  ;;  %v1079_v37 = vld [vmem:[#allocation13 + $0x320] sm:$0xff]  ;;  %v2065_v18 = vld [vmem:[#allocation17 + $0x388] sm:$0xff] }
 0x202   : > { %4533 = vmatprep.subr.bf16.mxu0 %v4532_v0  ;;  %v4362_v41 = vpack.c.bf16 %v1079_v37, %v1075_v35  ;;  %v1814_v0 = vld [vmem:[#allocation17 + $0x128] sm:$0xff]  ;;  %4361 = vmatprep.subr.bf16.mxu1 %v4360_v34  ;;  %v1770_v34 = vpop.permute.xlu1 %1769  ;;  %v2056_v16 = vld [vmem:[#allocation17 + $0x340] sm:$0xff] }
 0x203   : > { %v4584_v51 = vpack.c.bf16 %v1814_v0, %v1810_v42  ;;  %v2017_v35 = vld [vmem:[#allocation17 + $0x208] sm:$0xff]  ;;  %vm1771_vm11 = vcmp.eq.s32.totalorder %v1770_v34, 1  ;;  %v2016_v42 = vld [vmem:[#allocation17 + $0x200] sm:$0xff] }
 0x204   : > { %v2021_v37 = vld [vmem:[#allocation17 + $0x228] sm:$0xff]  ;;  %v2020_v0 = vld [vmem:[#allocation17 + $0x220] sm:$0xff] }
 0x205   : > { %4535 = vmatpush1.bf16.msra.mxu0 %v4534_v54  ;;  %4363 = vmatpush1.bf16.msra.mxu1 %v4362_v41  ;;  %v1813_v54 = vld [vmem:[#allocation17 + $0x120] sm:$0xff]  ;;  %v4632_v41 = vpack.c.bf16 %v2021_v37, %v2017_v35  ;;  %v2069_v19 = vld [vmem:[#allocation17 + $0x3a8] sm:$0xff] }
 0x206   : > { %4569 = vmatprep.subr.bf16.mxu0 %v4568_v62  ;;  %4365 = vmatprep.subr.bf16.mxu1 %v4364_v48  ;;  %v4586_v62 = vpack.c.bf16 %v1813_v54, %v1809_v53  ;;  %v4634_v48 = vpack.c.bf16 %v2020_v0, %v2016_v42  ;;  %v2033_v53 = vld [vmem:[#allocation17 + $0x288] sm:$0xff]  ;;  %v2068_v23 = vld [vmem:[#allocation17 + $0x3a0] sm:$0xff]  ;;  %v2008_v34 = vpop.permute.xlu1 %2007 }
 0x207   : > { %v2037_v54 = vld [vmem:[#allocation17 + $0x2a8] sm:$0xff]  ;;  %vm2009_vm13 = vcmp.eq.s32.totalorder %v2008_v34, 1  ;;  %v2255_v42 = vld [vmem:[#allocation17 + $0x400] sm:$0xff] }
 0x208   : > { %1660 = vmatmul.mubr.f32.vlgmr.msra.gmra.mrb[2].mxu0 %v6299_v7  ;;  %v4640_v56 = vpack.c.bf16 %v2037_v54, %v2033_v53  ;;  %v2256_v35 = vld [vmem:[#allocation17 + $0x408] sm:$0xff]  ;;  %v2259_v0 = vld [vmem:[#allocation17 + $0x420] sm:$0xff] }
 0x209   : > { %4571 = vmatpush1.bf16.msra.mxu0 %v4570_v8  ;;  %1905 = vmatprep.mubr.f32.mxu0 %v5766_v52  ;;  %v1826_v8 = vld [vmem:[#allocation17 + $0x188] sm:$0xff]  ;;  %v2267_v53 = vld [vmem:[#allocation17 + $0x460] sm:$0xff] }
 0x20a   : > { %4573 = vmatprep.subr.bf16.mxu0 %v4572_v13  ;;  %4367 = vmatpush1.bf16.msra.mxu1 %v4366_v55  ;;  %v4590_v13 = vpack.c.bf16 %v1821_v5, %v1817_v4  ;;  %v4592_v17 = vpack.c.bf16 %v1830_v9, %v1826_v8  ;;  %v2049_v4 = vld [vmem:[#allocation17 + $0x308] sm:$0xff]  ;;  %v2048_v9 = vld [vmem:[#allocation17 + $0x300] sm:$0xff] }
 0x20b   : > { %4369 = vmatprep.subr.bf16.mxu1 %v4368_v63  ;;  %v4642_v63 = vpack.c.bf16 %v2036_v59, %v2032_v57  ;;  %v2053_v5 = vld [vmem:[#allocation17 + $0x328] sm:$0xff]  ;;  %v2271_v59 = vld [vmem:[#allocation17 + $0x480] sm:$0xff] }
 0x20c   : > { %v4648_v8 = vpack.c.bf16 %v2053_v5, %v2049_v4  ;;  %v2260_v37 = vld [vmem:[#allocation17 + $0x428] sm:$0xff]  ;;  %v2283_v4 = vld [vmem:[#allocation17 + $0x4e0] sm:$0xff] }
 0x20d   : > { %4575 = vmatpush1.bf16.msra.mxu0 %v4574_v21  ;;  %v1834_v21 = vld [vmem:[#allocation17 + $0x1c8] sm:$0xff]  ;;  %v2315_v34 = vld [vmem:[#allocation17 + $0x5e0] sm:$0xff] }
 0x20e   : > { %4577 = vmatprep.subr.bf16.mxu0 %v4576_v25  ;;  %4371 = vmatpush1.bf16.msra.mxu1 %v4370_v6  ;;  %v982_v25 = vld [vmem:[#allocation13 + $0x18] sm:$0xff]  ;;  %v4596_v29 = vpack.c.bf16 %v1838_v22, %v1834_v21  ;;  %v4656_v21 = vpack.c.bf16 %v2069_v19, %v2065_v18  ;;  %v2064_v22 = vld [vmem:[#allocation17 + $0x380] sm:$0xff]  ;;  %v2272_v54 = vld [vmem:[#allocation17 + $0x488] sm:$0xff] }
 0x20f   : > { %4373 = vmatprep.subr.bf16.mxu1 %v4372_v14  ;;  %v4376_v28 = vpack.c.bf16 %v986_v26, %v982_v25  ;;  %v4650_v14 = vpack.c.bf16 %v2052_v11, %v2048_v9  ;;  %v2077_v25 = vld [vmem:[#allocation17 + $0x3e8] sm:$0xff]  ;;  %v1988_v26 = vld [vmem:[#allocation11 + $0x4] sm:$0x7] }
 0x210   : > { %v1999_v30 = vrot.slane %v1988_v26, %v6231_v43  ;;  %v2003_v31 = vrot.slane %v1988_v26, %v6271_v45  ;;  %v2288_v5 = vld [vmem:[#allocation17 + $0x508] sm:$0xff]  ;;  %v2287_v11 = vld [vmem:[#allocation17 + $0x500] sm:$0xff] }
 0x211   : > { %4579 = vmatpush1.bf16.msra.mxu0 %v4578_v33  ;;  %v1837_v33 = vld [vmem:[#allocation17 + $0x1e0] sm:$0xff]  ;;  %v2304_v19 = vld [vmem:[#allocation17 + $0x588] sm:$0xff] }
 0x212   : > { %4581 = vmatprep.subr.bf16.mxu0 %v4580_v38  ;;  %4375 = vmatpush1.bf16.msra.mxu1 %v4374_v20  ;;  %v4598_v38 = vpack.c.bf16 %v1837_v33, %v1833_v32  ;;  %v2072_v32 = vld [vmem:[#allocation17 + $0x3c0] sm:$0xff] }
 0x213   : > { %4377 = vmatprep.subr.bf16.mxu1 %v4376_v28  ;;  %v4658_v28 = vpack.c.bf16 %v2068_v23, %v2064_v22  ;;  %v2076_v33 = vld [vmem:[#allocation17 + $0x3e0] sm:$0xff] }
 0x214   : > { %v2299_v18 = vld [vmem:[#allocation17 + $0x560] sm:$0xff] }
 0x215   : > { %4583 = vmatpush1.bf16.msra.mxu0 %v4582_v47  ;;  %v6306_v47 = vsel %vm1771_vm11, %v1775_v39, %v1766_v40  ;;  %v2013_v39 = vrot.slane %v1988_v26, %v6256_v58  ;;  %v2303_v23 = vld [vmem:[#allocation17 + $0x580] sm:$0xff]  ;;  %v2316_v26 = vld [vmem:[#allocation17 + $0x5e8] sm:$0xff] }
 0x216   : > { %4585 = vmatprep.subr.bf16.mxu0 %v4584_v51  ;;  %v2028_v51 = vld [vmem:[#allocation17 + $0x260] sm:$0xff] }
 0x217   : > { %v4638_v55 = vpack.c.bf16 %v2028_v51, %v2024_v50  ;;  %v4700_v50 = vpack.c.bf16 %v2268_v46, %v2264_v44  ;;  %v2263_v51 = vld [vmem:[#allocation17 + $0x440] sm:$0xff]  ;;  %v2503_v46 = vld [vmem:[#allocation17 + $0x648] sm:$0xff] }
 0x218   : > { %v2498_v44 = vld [vmem:[#allocation17 + $0x620] sm:$0xff] }
 0x219   : > { %4587 = vmatpush1.bf16.msra.mxu0 %v4586_v62  ;;  %v2045_v62 = vld [vmem:[#allocation17 + $0x2e8] sm:$0xff] }
 0x21a   : > { %4589 = vmatprep.subr.bf16.mxu0 %v4588_v3  ;;  %v4644_v1 = vpack.c.bf16 %v2045_v62, %v2041_v61  ;;  %v2044_v3 = vld [vmem:[#allocation17 + $0x2e0] sm:$0xff]  ;;  %v2280_v62 = vld [vmem:[#allocation17 + $0x4c8] sm:$0xff] }
 0x21b   : > { %v4646_v6 = vpack.c.bf16 %v2044_v3, %v2040_v2  ;;  %v2275_v61 = vld [vmem:[#allocation17 + $0x4a0] sm:$0xff] }
 0x21c   : > { %v2279_v3 = vld [vmem:[#allocation17 + $0x4c0] sm:$0xff] }
 0x21d   : > { %4591 = vmatpush1.bf16.msra.mxu0 %v4590_v13  ;;  %v2061_v13 = vld [vmem:[#allocation17 + $0x368] sm:$0xff] }
 0x21e   : > { %4593 = vmatprep.subr.bf16.mxu0 %v4592_v17  ;;  %v4652_v15 = vpack.c.bf16 %v2061_v13, %v2057_v12  ;;  %v2060_v17 = vld [vmem:[#allocation17 + $0x360] sm:$0xff]  ;;  %v2296_v13 = vld [vmem:[#allocation17 + $0x548] sm:$0xff] }
 0x21f   : > { %v4654_v20 = vpack.c.bf16 %v2060_v17, %v2056_v16  ;;  %v2291_v12 = vld [vmem:[#allocation17 + $0x520] sm:$0xff] }
 0x220   : > { %v2295_v17 = vld [vmem:[#allocation17 + $0x540] sm:$0xff] }
 0x221   : > { %4595 = vmatpush1.bf16.msra.mxu0 %v4594_v27  ;;  %v1994_v27 = vpop.permute.xlu0 %1993 }
 0x222   : > { %4597 = vmatprep.subr.bf16.mxu0 %v4596_v29  ;;  %v4660_v29 = vpack.c.bf16 %v2077_v25, %v2073_v24  ;;  %vm1995_vm12 = vcmp.eq.s32.totalorder %v1994_v27, 1  ;;  %v2307_v24 = vld [vmem:[#allocation17 + $0x5a0] sm:$0xff]  ;;  %v2312_v25 = vld [vmem:[#allocation17 + $0x5c8] sm:$0xff] }
 0x223   : > { %v2004_v40 = vsel %vm1995_vm12, %v1999_v30, %v2003_v31  ;;  %v2227_v27 = vld [vmem:[#allocation11 + $0x8] sm:$0x7]  ;;  %v4724_v30 = vpack.c.bf16 %v2316_v26, %v2312_v25 }
 0x224   : > { %v2238_v31 = vrot.slane %v2227_v27, %v6231_v43  ;;  %v2542_v25 = vld [vmem:[#allocation17 + $0x780] sm:$0xff] }
 0x225   : > { %4599 = vmatpush1.bf16.msra.mxu0 %v4598_v38  ;;  %v4662_v38 = vpack.c.bf16 %v2076_v33, %v2072_v32  ;;  %v2242_v32 = vrot.slane %v2227_v27, %v6271_v45  ;;  %v2311_v33 = vld [vmem:[#allocation17 + $0x5c0] sm:$0xff] }
 0x226   : > { %4633 = vmatprep.subr.bf16.mxu0 %v4632_v41  ;;  %v4696_v41 = vpack.c.bf16 %v2260_v37, %v2256_v35  ;;  %v2247_v35 = vpop.permute.xlu1 %2246  ;;  %v2495_v37 = vld [vmem:[#allocation17 + $0x608] sm:$0xff]  ;;  %v2546_v26 = vld [vmem:[#allocation17 + $0x7a0] sm:$0xff] }
 0x227   : > { %vm2248_vm15 = vcmp.eq.s32.totalorder %v2247_v35, 1  ;;  %v2550_v35 = vld [vmem:[#allocation17 + $0x7c0] sm:$0xff] }
 0x228   : > { %1906 = vmatmul.mubr.f32.vlgmr.msra.gmra.mrb[2].mxu0 %v6306_v47 }
 0x229   : > { %4635 = vmatpush1.bf16.msra.mxu0 %v4634_v48  ;;  %2144 = vmatprep.mubr.f32.mxu0 %v5766_v52  ;;  %v6313_v48 = vsel %vm2009_vm13, %v2013_v39, %v2004_v40  ;;  %v4726_v39 = vpack.c.bf16 %v2315_v34, %v2311_v33  ;;  %v2252_v40 = vrot.slane %v2227_v27, %v6256_v58  ;;  %v2551_v27 = vld [vmem:[#allocation17 + $0x7c8] sm:$0xff] }
 0x22a   : > { %4637 = vmatprep.subr.bf16.mxu0 %v4636_v49  ;;  %v4698_v49 = vpack.c.bf16 %v2259_v0, %v2255_v42  ;;  %v2494_v0 = vld [vmem:[#allocation17 + $0x600] sm:$0xff] }
 0x22d   : > { %4639 = vmatpush1.bf16.msra.mxu0 %v4638_v55  ;;  %v2276_v55 = vld [vmem:[#allocation17 + $0x4a8] sm:$0xff] }
 0x22e   : > { %4641 = vmatprep.subr.bf16.mxu0 %v4640_v56  ;;  %v4702_v56 = vpack.c.bf16 %v2267_v53, %v2263_v51  ;;  %v4704_v57 = vpack.c.bf16 %v2276_v55, %v2272_v54  ;;  %v4762_v51 = vpack.c.bf16 %v2498_v44, %v2494_v0  ;;  %v2502_v54 = vld [vmem:[#allocation17 + $0x640] sm:$0xff] }
 0x22f   : > { %v2506_v55 = vld [vmem:[#allocation17 + $0x660] sm:$0xff] }
 0x231   : > { %4643 = vmatpush1.bf16.msra.mxu0 %v4642_v63  ;;  %v2284_v63 = vld [vmem:[#allocation17 + $0x4e8] sm:$0xff] }
 0x232   : > { %4645 = vmatprep.subr.bf16.mxu0 %v4644_v1  ;;  %v4706_v1 = vpack.c.bf16 %v2275_v61, %v2271_v59  ;;  %v4708_v2 = vpack.c.bf16 %v2284_v63, %v2280_v62  ;;  %v4766_v59 = vpack.c.bf16 %v2506_v55, %v2502_v54  ;;  %v2510_v62 = vld [vmem:[#allocation17 + $0x680] sm:$0xff] }
 0x233   : > { %v2514_v63 = vld [vmem:[#allocation17 + $0x6a0] sm:$0xff] }
 0x235   : > { %4647 = vmatpush1.bf16.msra.mxu0 %v4646_v6  ;;  %v2292_v6 = vld [vmem:[#allocation17 + $0x528] sm:$0xff] }
 0x236   : > { %4649 = vmatprep.subr.bf16.mxu0 %v4648_v8  ;;  %v4710_v8 = vpack.c.bf16 %v2283_v4, %v2279_v3  ;;  %v4712_v9 = vpack.c.bf16 %v2292_v6, %v2288_v5  ;;  %v4770_v3 = vpack.c.bf16 %v2514_v63, %v2510_v62  ;;  %v2518_v5 = vld [vmem:[#allocation17 + $0x6c0] sm:$0xff]  ;;  %v2754_v62 = vld [vmem:[#allocation17 + $0x8a8] sm:$0xff] }
 0x237   : > { %v2522_v6 = vld [vmem:[#allocation17 + $0x6e0] sm:$0xff] }
 0x239   : > { %4651 = vmatpush1.bf16.msra.mxu0 %v4650_v14  ;;  %v2300_v14 = vld [vmem:[#allocation17 + $0x568] sm:$0xff] }
 0x23a   : > { %4653 = vmatprep.subr.bf16.mxu0 %v4652_v15  ;;  %v4714_v15 = vpack.c.bf16 %v2291_v12, %v2287_v11  ;;  %v4716_v16 = vpack.c.bf16 %v2300_v14, %v2296_v13  ;;  %v4774_v11 = vpack.c.bf16 %v2522_v6, %v2518_v5  ;;  %v2526_v13 = vld [vmem:[#allocation17 + $0x700] sm:$0xff]  ;;  %v2762_v5 = vld [vmem:[#allocation17 + $0x8e8] sm:$0xff] }
 0x23b   : > { %v2530_v14 = vld [vmem:[#allocation17 + $0x720] sm:$0xff] }
 0x23d   : > { %4655 = vmatpush1.bf16.msra.mxu0 %v4654_v20  ;;  %v2308_v20 = vld [vmem:[#allocation17 + $0x5a8] sm:$0xff] }
 0x23e   : > { %4657 = vmatprep.subr.bf16.mxu0 %v4656_v21  ;;  %v4718_v21 = vpack.c.bf16 %v2299_v18, %v2295_v17  ;;  %v4720_v22 = vpack.c.bf16 %v2308_v20, %v2304_v19  ;;  %v4778_v17 = vpack.c.bf16 %v2530_v14, %v2526_v13  ;;  %v2534_v19 = vld [vmem:[#allocation17 + $0x740] sm:$0xff]  ;;  %v2770_v13 = vld [vmem:[#allocation17 + $0x928] sm:$0xff] }
 0x23f   : > { %v2538_v20 = vld [vmem:[#allocation17 + $0x760] sm:$0xff] }
 0x241   : > { %4659 = vmatpush1.bf16.msra.mxu0 %v4658_v28  ;;  %v2233_v28 = vpop.permute.xlu0 %2232 }
 0x242   : > { %4661 = vmatprep.subr.bf16.mxu0 %v4660_v29  ;;  %v4722_v29 = vpack.c.bf16 %v2307_v24, %v2303_v23  ;;  %vm2234_vm14 = vcmp.eq.s32.totalorder %v2233_v28, 1  ;;  %v4782_v23 = vpack.c.bf16 %v2538_v20, %v2534_v19  ;;  %v2555_v28 = vld [vmem:[#allocation17 + $0x7e8] sm:$0xff] }
 0x243   : > { %v2778_v19 = vld [vmem:[#allocation17 + $0x968] sm:$0xff] }
 0x245   : > { %4663 = vmatpush1.bf16.msra.mxu0 %v4662_v38  ;;  %v2499_v38 = vld [vmem:[#allocation17 + $0x628] sm:$0xff] }
 0x246   : > { %4697 = vmatprep.subr.bf16.mxu0 %v4696_v41  ;;  %v2243_v41 = vsel %vm2234_vm14, %v2238_v31, %v2242_v32  ;;  %v4760_v42 = vpack.c.bf16 %v2499_v38, %v2495_v37  ;;  %v4786_v31 = vpack.c.bf16 %v2546_v26, %v2542_v25  ;;  %v4788_v32 = vpack.c.bf16 %v2555_v28, %v2551_v27  ;;  %v2554_v37 = vld [vmem:[#allocation17 + $0x7e0] sm:$0xff]  ;;  %v2486_v38 = vpop.permute.xlu1 %2485  ;;  %v2782_v25 = vld [vmem:[#allocation17 + $0x988] sm:$0xff] }
 0x247   : > { %vm2487_vm1 = vcmp.eq.s32.totalorder %v2486_v38, 1  ;;  %v2786_v26 = vld [vmem:[#allocation17 + $0x9a8] sm:$0xff]  ;;  %v994_v38 = vld [vmem:[#allocation13 + $0x78] sm:$0xff] }
 0x248   : > { %2145 = vmatmul.mubr.f32.vlgmr.msra.gmra.mrb[2].mxu0 %v6313_v48 }
 0x249   : > { %4699 = vmatpush1.bf16.msra.mxu0 %v4698_v49  ;;  %2383 = vmatprep.mubr.f32.mxu0 %v5766_v52  ;;  %v2507_v49 = vld [vmem:[#allocation17 + $0x668] sm:$0xff] }
 0x24a   : > { %4701 = vmatprep.subr.bf16.mxu0 %v4700_v50  ;;  %v6320_v50 = vsel %vm2248_vm15, %v2252_v40, %v2243_v41  ;;  %v4764_v53 = vpack.c.bf16 %v2507_v49, %v2503_v46  ;;  %v2738_v40 = vld [vmem:[#allocation17 + $0x828] sm:$0xff]  ;;  %v4790_v41 = vpack.c.bf16 %v2554_v37, %v2550_v35  ;;  %v2733_v46 = vld [vmem:[#allocation17 + $0x800] sm:$0xff]  ;;  %v990_v37 = vld [vmem:[#allocation13 + $0x58] sm:$0xff] }
 0x24b   : > { %v2737_v49 = vld [vmem:[#allocation17 + $0x820] sm:$0xff] }
 0x24c   : > { %v4826_v55 = vpack.c.bf16 %v2737_v49, %v2733_v46  ;;  %v2785_v35 = vld [vmem:[#allocation17 + $0x9a0] sm:$0xff] }
 0x24d   : > { %4703 = vmatpush1.bf16.msra.mxu0 %v4702_v56  ;;  %v2511_v56 = vld [vmem:[#allocation17 + $0x688] sm:$0xff] }
 0x24e   : > { %4705 = vmatprep.subr.bf16.mxu0 %v4704_v57  ;;  %v2515_v57 = vld [vmem:[#allocation17 + $0x6a8] sm:$0xff] }
 0x24f   : > { %v4768_v61 = vpack.c.bf16 %v2515_v57, %v2511_v56  ;;  %v2741_v57 = vld [vmem:[#allocation17 + $0x840] sm:$0xff] }
 0x251   : > { %4707 = vmatpush1.bf16.msra.mxu0 %v4706_v1  ;;  %v2519_v1 = vld [vmem:[#allocation17 + $0x6c8] sm:$0xff] }
 0x252   : > { %4709 = vmatprep.subr.bf16.mxu0 %v4708_v2  ;;  %v2523_v2 = vld [vmem:[#allocation17 + $0x6e8] sm:$0xff] }
 0x253   : > { %v4772_v4 = vpack.c.bf16 %v2523_v2, %v2519_v1  ;;  %v2749_v2 = vld [vmem:[#allocation17 + $0x880] sm:$0xff] }
 0x255   : > { %4711 = vmatpush1.bf16.msra.mxu0 %v4710_v8  ;;  %v2527_v8 = vld [vmem:[#allocation17 + $0x708] sm:$0xff] }
 0x256   : > { %4713 = vmatprep.subr.bf16.mxu0 %v4712_v9  ;;  %v2531_v9 = vld [vmem:[#allocation17 + $0x728] sm:$0xff] }
 0x257   : > { %v4776_v12 = vpack.c.bf16 %v2531_v9, %v2527_v8  ;;  %v2757_v9 = vld [vmem:[#allocation17 + $0x8c0] sm:$0xff] }
 0x259   : > { %4715 = vmatpush1.bf16.msra.mxu0 %v4714_v15  ;;  %v2535_v15 = vld [vmem:[#allocation17 + $0x748] sm:$0xff] }
 0x25a   : > { %4717 = vmatprep.subr.bf16.mxu0 %v4716_v16  ;;  %v2539_v16 = vld [vmem:[#allocation17 + $0x768] sm:$0xff] }
 0x25b   : > { %v4780_v18 = vpack.c.bf16 %v2539_v16, %v2535_v15  ;;  %v2765_v16 = vld [vmem:[#allocation17 + $0x900] sm:$0xff] }
 0x25d   : > { %4719 = vmatpush1.bf16.msra.mxu0 %v4718_v21  ;;  %v2543_v21 = vld [vmem:[#allocation17 + $0x788] sm:$0xff] }
 0x25e   : > { %4721 = vmatprep.subr.bf16.mxu0 %v4720_v22  ;;  %v2547_v22 = vld [vmem:[#allocation17 + $0x7a8] sm:$0xff] }
 0x25f   : > { %v4784_v24 = vpack.c.bf16 %v2547_v22, %v2543_v21  ;;  %v804_v21 = vld [vmem:[#allocation7] sm:$0x3] }
 0x260   : > { %v834_v27 = vrot.slane %v804_v21, %v6231_v43 }
 0x261   : > { %4723 = vmatpush1.bf16.msra.mxu0 %v4722_v29  ;;  %v2466_v29 = vld [vmem:[#allocation11 + $0xc] sm:$0x7] }
 0x262   : > { %4725 = vmatprep.subr.bf16.mxu0 %v4724_v30  ;;  %v2472_v30 = vpop.permute.xlu0 %2471  ;;  %v2477_v33 = vrot.slane %v2466_v29, %v6231_v43  ;;  %v2481_v34 = vrot.slane %v2466_v29, %v6271_v45 }
 0x263   : > { %vm2473_vm0 = vcmp.eq.s32.totalorder %v2472_v30, 1  ;;  %v981_v30 = vld [vmem:[#allocation13 + $0x10] sm:$0xff] }
 0x264   : > { %v2482_v0 = vsel %vm2473_vm0, %v2477_v33, %v2481_v34  ;;  %v2781_v33 = vld [vmem:[#allocation17 + $0x980] sm:$0xff] }
 0x265   : > { %4727 = vmatpush1.bf16.msra.mxu0 %v4726_v39  ;;  %v2734_v39 = vld [vmem:[#allocation17 + $0x808] sm:$0xff] }
 0x266   : > { %4761 = vmatprep.subr.bf16.mxu0 %v4760_v42  ;;  %v2491_v42 = vrot.slane %v2466_v29, %v6256_v58  ;;  %v4824_v44 = vpack.c.bf16 %v2738_v40, %v2734_v39  ;;  %v830_v29 = vrot.slane %v804_v21, %v6256_v58  ;;  %v2790_v40 = vld [vmem:[#allocation17 + $0x9c8] sm:$0xff]  ;;  %v2711_v46 = vpop.permute.xlu0 %2710 }
 0x267   : > { %vm2712_vm2 = vcmp.eq.s32.totalorder %v2711_v46, 1  ;;  %v2985_v21 = vld [vmem:[#allocation17 + $0xa68] sm:$0xff]  ;;  %v1026_v46 = vld [vmem:[#allocation13 + $0x178] sm:$0xff] }
 0x268   : > { %2384 = vmatmul.mubr.f32.vlgmr.msra.gmra.mrb[2].mxu0 %v6320_v50  ;;  %v6327_v54 = vsel %vm2487_vm1, %v2491_v42, %v2482_v0  ;;  %v2705_v42 = vld [vmem:[#allocation11 + $0x10] sm:$0x7] }
 0x269   : > { %4763 = vmatpush1.bf16.msra.mxu0 %v4762_v51  ;;  %2622 = vmatprep.mubr.f32.mxu0 %v5766_v52  ;;  %v2742_v51 = vld [vmem:[#allocation17 + $0x848] sm:$0xff] }
 0x26a   : > { %4765 = vmatprep.subr.bf16.mxu0 %v4764_v53  ;;  %v2746_v53 = vld [vmem:[#allocation17 + $0x868] sm:$0xff] }
 0x26b   : > { %v4828_v56 = vpack.c.bf16 %v2746_v53, %v2742_v51  ;;  %v4850_v51 = vpack.c.bf16 %v2785_v35, %v2781_v33  ;;  %v4380_v53 = vpack.c.bf16 %v994_v38, %v990_v37  ;;  %v2989_v33 = vld [vmem:[#allocation17 + $0xa88] sm:$0xff] }
 0x26d   : > { %4767 = vmatpush1.bf16.msra.mxu0 %v4766_v59  ;;  %v2745_v59 = vld [vmem:[#allocation17 + $0x860] sm:$0xff] }
 0x26e   : > { %4769 = vmatprep.subr.bf16.mxu0 %v4768_v61  ;;  %v2750_v61 = vld [vmem:[#allocation17 + $0x888] sm:$0xff]  ;;  %v4830_v63 = vpack.c.bf16 %v2745_v59, %v2741_v57  ;;  %v2789_v57 = vld [vmem:[#allocation17 + $0x9c0] sm:$0xff] }
 0x26f   : > { %v4832_v1 = vpack.c.bf16 %v2754_v62, %v2750_v61  ;;  %v2716_v61 = vrot.slane %v2705_v42, %v6231_v43  ;;  %v2720_v62 = vrot.slane %v2705_v42, %v6271_v45 }
 0x271   : > { %4771 = vmatpush1.bf16.msra.mxu0 %v4770_v3  ;;  %v2753_v3 = vld [vmem:[#allocation17 + $0x8a0] sm:$0xff] }
 0x272   : > { %4773 = vmatprep.subr.bf16.mxu0 %v4772_v4  ;;  %v2758_v4 = vld [vmem:[#allocation17 + $0x8c8] sm:$0xff]  ;;  %v4834_v6 = vpack.c.bf16 %v2753_v3, %v2749_v2  ;;  %v1002_v2 = vld [vmem:[#allocation13 + $0xb8] sm:$0xff]  ;;  %v2725_v3 = vpop.permute.xlu1 %2724 }
 0x273   : > { %v4836_v8 = vpack.c.bf16 %v2762_v5, %v2758_v4  ;;  %v2973_v4 = vld [vmem:[#allocation17 + $0xa08] sm:$0xff]  ;;  %vm2726_vm3 = vcmp.eq.s32.totalorder %v2725_v3, 1  ;;  %v1034_v3 = vld [vmem:[#allocation13 + $0x1b8] sm:$0xff] }
 0x274   : > { %v2977_v5 = vld [vmem:[#allocation17 + $0xa28] sm:$0xff] }
 0x275   : > { %4775 = vmatpush1.bf16.msra.mxu0 %v4774_v11  ;;  %v2761_v11 = vld [vmem:[#allocation17 + $0x8e0] sm:$0xff] }
 0x276   : > { %4777 = vmatprep.subr.bf16.mxu0 %v4776_v12  ;;  %v2766_v12 = vld [vmem:[#allocation17 + $0x908] sm:$0xff]  ;;  %v4838_v14 = vpack.c.bf16 %v2761_v11, %v2757_v9  ;;  %v2730_v9 = vrot.slane %v2705_v42, %v6256_v58 }
 0x277   : > { %v4840_v15 = vpack.c.bf16 %v2770_v13, %v2766_v12  ;;  %v997_v12 = vld [vmem:[#allocation13 + $0x90] sm:$0xff] }
 0x278   : > { %v1001_v13 = vld [vmem:[#allocation13 + $0xb0] sm:$0xff] }
 0x279   : > { %4779 = vmatpush1.bf16.msra.mxu0 %v4778_v17  ;;  %v2769_v17 = vld [vmem:[#allocation17 + $0x920] sm:$0xff] }
 0x27a   : > { %4781 = vmatprep.subr.bf16.mxu0 %v4780_v18  ;;  %v2774_v18 = vld [vmem:[#allocation17 + $0x948] sm:$0xff]  ;;  %v4842_v20 = vpack.c.bf16 %v2769_v17, %v2765_v16  ;;  %v4888_v16 = vpack.c.bf16 %v2977_v5, %v2973_v4  ;;  %v2976_v17 = vld [vmem:[#allocation17 + $0xa20] sm:$0xff] }
 0x27b   : > { %v4844_v22 = vpack.c.bf16 %v2778_v19, %v2774_v18  ;;  %v1006_v18 = vld [vmem:[#allocation13 + $0xd8] sm:$0xff]  ;;  %v3005_v4 = vld [vmem:[#allocation17 + $0xb08] sm:$0xff] }
 0x27c   : > { %v1010_v19 = vld [vmem:[#allocation13 + $0xf8] sm:$0xff]  ;;  %v3009_v5 = vld [vmem:[#allocation17 + $0xb28] sm:$0xff] }
 0x27d   : > { %4783 = vmatpush1.bf16.msra.mxu0 %v4782_v23  ;;  %v2773_v23 = vld [vmem:[#allocation17 + $0x940] sm:$0xff] }
 0x27e   : > { %4785 = vmatprep.subr.bf16.mxu0 %v4784_v24  ;;  %v2777_v24 = vld [vmem:[#allocation17 + $0x960] sm:$0xff] }
 0x27f   : > { %v4846_v28 = vpack.c.bf16 %v2777_v24, %v2773_v23 }
 0x281   : > { %4787 = vmatpush1.bf16.msra.mxu0 %v4786_v31  ;;  %v985_v31 = vld [vmem:[#allocation13 + $0x30] sm:$0xff] }
 0x282   : > { %4789 = vmatprep.subr.bf16.mxu0 %v4788_v32  ;;  %v4848_v32 = vpack.c.bf16 %v2786_v26, %v2782_v25  ;;  %v4388_v25 = vpack.c.bf16 %v1010_v19, %v1006_v18  ;;  %v1005_v26 = vld [vmem:[#allocation13 + $0xd0] sm:$0xff]  ;;  %v3013_v18 = vld [vmem:[#allocation17 + $0xb48] sm:$0xff] }
 0x283   : > { %v3017_v19 = vld [vmem:[#allocation17 + $0xb68] sm:$0xff] }
 0x285   : > { %4791 = vmatpush1.bf16.msra.mxu0 %v4790_v41  ;;  %v2794_v41 = vld [vmem:[#allocation17 + $0x9e8] sm:$0xff] }
 0x286   : > { %4825 = vmatprep.subr.bf16.mxu0 %v4824_v44  ;;  %v4378_v44 = vpack.c.bf16 %v985_v31, %v981_v30  ;;  %v4852_v59 = vpack.c.bf16 %v2794_v41, %v2790_v40  ;;  %v2984_v30 = vld [vmem:[#allocation17 + $0xa60] sm:$0xff]  ;;  %v1014_v31 = vld [vmem:[#allocation13 + $0x118] sm:$0xff]  ;;  %v1017_v40 = vld [vmem:[#allocation13 + $0x130] sm:$0xff] }
 0x287   : > { %v2988_v41 = vld [vmem:[#allocation17 + $0xa80] sm:$0xff] }
 0x288   : > { %2623 = vmatmul.mubr.f32.vlgmr.msra.gmra.mrb[2].mxu0 %v6327_v54 }
 0x289   : > { %4827 = vmatpush1.bf16.msra.mxu0 %v4826_v55  ;;  %2861 = vmatprep.mubr.f32.mxu0 %v5766_v52  ;;  %v989_v55 = vld [vmem:[#allocation13 + $0x50] sm:$0xff] }
 0x28a   : > { %4829 = vmatprep.subr.bf16.mxu0 %v4828_v56  ;;  %v993_v56 = vld [vmem:[#allocation13 + $0x70] sm:$0xff] }
 0x28d   : > { %4831 = vmatpush1.bf16.msra.mxu0 %v4830_v63  ;;  %v2793_v63 = vld [vmem:[#allocation17 + $0x9e0] sm:$0xff] }
 0x28e   : > { %4833 = vmatprep.subr.bf16.mxu0 %v4832_v1  ;;  %v998_v1 = vld [vmem:[#allocation13 + $0x98] sm:$0xff] }
 0x28f   : > { %v4384_v11 = vpack.c.bf16 %v1002_v2, %v998_v1  ;;  %v3000_v1 = vld [vmem:[#allocation17 + $0xae0] sm:$0xff]  ;;  %v1030_v2 = vld [vmem:[#allocation13 + $0x198] sm:$0xff] }
 0x291   : > { %4835 = vmatpush1.bf16.msra.mxu0 %v4834_v6  ;;  %v4382_v6 = vpack.c.bf16 %v993_v56, %v989_v55 }
 0x292   : > { %4837 = vmatprep.subr.bf16.mxu0 %v4836_v8  ;;  %v4854_v8 = vpack.c.bf16 %v2793_v63, %v2789_v57 }
 0x295   : > { %4839 = vmatpush1.bf16.msra.mxu0 %v4838_v14  ;;  %v2972_v14 = vld [vmem:[#allocation17 + $0xa00] sm:$0xff] }
 0x296   : > { %4841 = vmatprep.subr.bf16.mxu0 %v4840_v15  ;;  %v2721_v15 = vsel %vm2712_vm2, %v2716_v61, %v2720_v62  ;;  %v4890_v24 = vpack.c.bf16 %v2976_v17, %v2972_v14  ;;  %v1025_v61 = vld [vmem:[#allocation13 + $0x170] sm:$0xff]  ;;  %v2996_v62 = vld [vmem:[#allocation17 + $0xac0] sm:$0xff]  ;;  %v4904_v14 = vpack.c.bf16 %v3009_v5, %v3005_v4  ;;  %v1042_v17 = vld [vmem:[#allocation13 + $0x1f8] sm:$0xff] }
 0x297   : > { %v6340_v23 = vsel %vm2726_vm3, %v2730_v9, %v2721_v15  ;;  %v4400_v9 = vpack.c.bf16 %v1034_v3, %v1030_v2  ;;  %v3008_v15 = vld [vmem:[#allocation17 + $0xb20] sm:$0xff]  ;;  %v1062_v4 = vld [vmem:[#allocation13 + $0x298] sm:$0xff] }
 0x298   : > { %v3032_v3 = vld [vmem:[#allocation17 + $0xbe0] sm:$0xff]  ;;  %v1066_v5 = vld [vmem:[#allocation13 + $0x2b8] sm:$0xff] }
 0x299   : > { %4843 = vmatpush1.bf16.msra.mxu0 %v4842_v20  ;;  %v2981_v20 = vld [vmem:[#allocation17 + $0xa48] sm:$0xff] }
 0x29a   : > { %4845 = vmatprep.subr.bf16.mxu0 %v4844_v22  ;;  %v4386_v22 = vpack.c.bf16 %v1001_v13, %v997_v12  ;;  %v1033_v12 = vld [vmem:[#allocation13 + $0x1b0] sm:$0xff]  ;;  %v3004_v13 = vld [vmem:[#allocation17 + $0xb00] sm:$0xff] }
 0x29b   : > { %v974_v34 = vpop.f32.mrb[0].mxu0 }
 0x29c   : > { %v976_v39 = vpop.f32.mrb[1].mxu0  ;;  %v6333_v49 = vadd.f32 %v974_v34, %v830_v29  ;;  %v4892_v29 = vpack.c.bf16 %v2985_v21, %v2981_v20  ;;  %v2993_v34 = vld [vmem:[#allocation17 + $0xaa8] sm:$0xff]  ;;  %v4906_v21 = vpack.c.bf16 %v3008_v15, %v3004_v13  ;;  %v1061_v15 = vld [vmem:[#allocation13 + $0x290] sm:$0xff] }
 0x29d   : > { %v5145_v0 = vadd.f32 %v976_v39, %v834_v27  ;;  %4847 = vmatpush1.bf16.msra.mxu0 %v4846_v28  ;;  %v1009_v27 = vld [vmem:[#allocation13 + $0xf0] sm:$0xff]  ;;  %v2980_v28 = vld [vmem:[#allocation17 + $0xa40] sm:$0xff]  ;;  %v4896_v42 = vpack.c.bf16 %v2993_v34, %v2989_v33 }
 0x29e   : > { %4849 = vmatprep.subr.bf16.mxu0 %v4848_v32  ;;  %v1018_v32 = vld [vmem:[#allocation13 + $0x138] sm:$0xff]  ;;  %v4390_v35 = vpack.c.bf16 %v1009_v27, %v1005_v26  ;;  %v4894_v37 = vpack.c.bf16 %v2984_v30, %v2980_v28  ;;  %v1013_v39 = vld [vmem:[#allocation13 + $0x110] sm:$0xff]  ;;  %v3012_v26 = vld [vmem:[#allocation17 + $0xb40] sm:$0xff]  ;;  %v4908_v27 = vpack.c.bf16 %v3017_v19, %v3013_v18 }
 0x29f   : > { %1171 = vmatprep.mubr.f32.mxu1 %v5145_v0  ;;  %v4392_v38 = vpack.c.bf16 %v1018_v32, %v1014_v31  ;;  %v4394_v55 = vpack.c.bf16 %v1017_v40, %v1013_v39  ;;  %v3016_v28 = vld [vmem:[#allocation17 + $0xb60] sm:$0xff]  ;;  %v1050_v30 = vld [vmem:[#allocation13 + $0x238] sm:$0xff]  ;;  %v3021_v31 = vld [vmem:[#allocation17 + $0xb88] sm:$0xff] }
 0x2a0   : > { %1172 = vmatmul.mubr.f32.vlgmr.msra.gmra.mrb[0].mxu1 %v6333_v49  ;;  %v3025_v32 = vld [vmem:[#allocation17 + $0xba8] sm:$0xff]  ;;  %v4910_v34 = vpack.c.bf16 %v3016_v28, %v3012_v26  ;;  %v3020_v39 = vld [vmem:[#allocation17 + $0xb80] sm:$0xff] }
 0x2a1   : > { %4379 = vmatpush1.bf16.msra.mxu1 %v4378_v44  ;;  %1242 = vmatprep.mubr.f32.mxu1 %v5145_v0  ;;  %v2992_v0 = vld [vmem:[#allocation17 + $0xaa0] sm:$0xff]  ;;  %v1022_v44 = vld [vmem:[#allocation13 + $0x158] sm:$0xff]  ;;  %v4912_v40 = vpack.c.bf16 %v3025_v32, %v3021_v31  ;;  %v1073_v31 = vld [vmem:[#allocation13 + $0x2f0] sm:$0xff] }
 0x2a2   : > { %4851 = vmatpush1.bf16.msra.mxu0 %v4850_v51  ;;  %4381 = vmatprep.subr.bf16.mxu1 %v4380_v53  ;;  %v2997_v51 = vld [vmem:[#allocation17 + $0xac8] sm:$0xff]  ;;  %v4898_v56 = vpack.c.bf16 %v2992_v0, %v2988_v41  ;;  %v4396_v57 = vpack.c.bf16 %v1026_v46, %v1022_v44  ;;  %v3024_v41 = vld [vmem:[#allocation17 + $0xba0] sm:$0xff]  ;;  %v1058_v0 = vld [vmem:[#allocation13 + $0x278] sm:$0xff] }
 0x2a3   : > { %4853 = vmatprep.subr.bf16.mxu0 %v4852_v59  ;;  %v3001_v53 = vld [vmem:[#allocation17 + $0xae8] sm:$0xff]  ;;  %v1021_v59 = vld [vmem:[#allocation13 + $0x150] sm:$0xff]  ;;  %v3219_v32 = vld [vmem:[#allocation17 + $0xc40] sm:$0xff] }
 0x2a4   : > { %v4900_v63 = vpack.c.bf16 %v3001_v53, %v2997_v51  ;;  %v3029_v44 = vld [vmem:[#allocation17 + $0xbc8] sm:$0xff]  ;;  %v2944_v51 = vld [vmem:[#allocation11 + $0x14] sm:$0x7] }
 0x2a5   : > { %4383 = vmatpush1.bf16.msra.mxu1 %v4382_v6  ;;  %v4398_v6 = vpack.c.bf16 %v1025_v61, %v1021_v59  ;;  %v3033_v46 = vld [vmem:[#allocation17 + $0xbe8] sm:$0xff]  ;;  %v1053_v59 = vld [vmem:[#allocation13 + $0x250] sm:$0xff]  ;;  %v2959_v2 = vrot.slane %v2944_v51, %v6271_v45  ;;  %v2969_v13 = vrot.slane %v2944_v51, %v6256_v58 }
 0x2a6   : > { %4855 = vmatpush1.bf16.msra.mxu0 %v4854_v8  ;;  %4385 = vmatprep.subr.bf16.mxu1 %v4384_v11  ;;  %v4902_v8 = vpack.c.bf16 %v3000_v1, %v2996_v62  ;;  %v1029_v11 = vld [vmem:[#allocation13 + $0x190] sm:$0xff]  ;;  %v3028_v62 = vld [vmem:[#allocation17 + $0xbc0] sm:$0xff]  ;;  %v2955_v1 = vrot.slane %v2944_v51, %v6231_v43 }
 0x2a7   : > { %4889 = vmatprep.subr.bf16.mxu0 %v4888_v16  ;;  %v1038_v16 = vld [vmem:[#allocation13 + $0x1d8] sm:$0xff]  ;;  %v4402_v20 = vpack.c.bf16 %v1033_v12, %v1029_v11  ;;  %v1057_v61 = vld [vmem:[#allocation13 + $0x270] sm:$0xff]  ;;  %v4918_v12 = vpack.c.bf16 %v3032_v3, %v3028_v62  ;;  %v3235_v3 = vld [vmem:[#allocation17 + $0xcc0] sm:$0xff] }
 0x2a8   : > { %v4414_v11 = vpack.c.bf16 %v1057_v61, %v1053_v59  ;;  %v3240_v59 = vld [vmem:[#allocation17 + $0xce8] sm:$0xff] }
 0x2a9   : > { %4387 = vmatpush1.bf16.msra.mxu1 %v4386_v22  ;;  %2862 = vmatmul.mubr.f32.vlgmr.msra.gmra.mrb[2].mxu0 %v6340_v23  ;;  %v4404_v22 = vpack.c.bf16 %v1042_v17, %v1038_v16  ;;  %v1065_v16 = vld [vmem:[#allocation13 + $0x2b0] sm:$0xff]  ;;  %v3211_v17 = vld [vmem:[#allocation17 + $0xc00] sm:$0xff] }
 0x2aa   : > { %4891 = vmatpush1.bf16.msra.mxu0 %v4890_v24  ;;  %4389 = vmatprep.subr.bf16.mxu1 %v4388_v25  ;;  %v1037_v24 = vld [vmem:[#allocation13 + $0x1d0] sm:$0xff]  ;;  %v4418_v26 = vpack.c.bf16 %v1065_v16, %v1061_v15 }
 0x2ab   : > { %4893 = vmatprep.subr.bf16.mxu0 %v4892_v29  ;;  %3100 = vmatprep.mubr.f32.mxu0 %v5766_v52  ;;  %v1041_v25 = vld [vmem:[#allocation13 + $0x1f0] sm:$0xff]  ;;  %v1046_v29 = vld [vmem:[#allocation13 + $0x218] sm:$0xff] }
 0x2ac   : > { %v4406_v33 = vpack.c.bf16 %v1041_v25, %v1037_v24  ;;  %v3220_v24 = vld [vmem:[#allocation17 + $0xc48] sm:$0xff]  ;;  %v1093_v15 = vld [vmem:[#allocation13 + $0x390] sm:$0xff] }
 0x2ad   : > { %4391 = vmatpush1.bf16.msra.mxu1 %v4390_v35  ;;  %v4408_v35 = vpack.c.bf16 %v1050_v30, %v1046_v29  ;;  %v3224_v25 = vld [vmem:[#allocation17 + $0xc68] sm:$0xff]  ;;  %v1069_v30 = vld [vmem:[#allocation13 + $0x2d0] sm:$0xff] }
 0x2ae   : > { %4895 = vmatpush1.bf16.msra.mxu0 %v4894_v37  ;;  %4393 = vmatprep.subr.bf16.mxu1 %v4392_v38  ;;  %v1045_v37 = vld [vmem:[#allocation13 + $0x210] sm:$0xff] }
 0x2af   : > { %4897 = vmatprep.subr.bf16.mxu0 %v4896_v42  ;;  %v1049_v38 = vld [vmem:[#allocation13 + $0x230] sm:$0xff]  ;;  %v1054_v42 = vld [vmem:[#allocation13 + $0x258] sm:$0xff] }
 0x2b0   : > { %v4410_v53 = vpack.c.bf16 %v1049_v38, %v1045_v37  ;;  %v1082_v37 = vld [vmem:[#allocation13 + $0x338] sm:$0xff]  ;;  %v3228_v38 = vld [vmem:[#allocation17 + $0xc88] sm:$0xff]  ;;  %v1097_v16 = vld [vmem:[#allocation13 + $0x3b0] sm:$0xff] }
 0x2b1   : > { %4395 = vmatpush1.bf16.msra.mxu1 %v4394_v55  ;;  %v2950_v55 = vpop.permute.xlu0 %2949 }
 0x2b2   : > { %4899 = vmatpush1.bf16.msra.mxu0 %v4898_v56  ;;  %4397 = vmatprep.subr.bf16.mxu1 %v4396_v57  ;;  %v4914_v56 = vpack.c.bf16 %v3024_v41, %v3020_v39  ;;  %v4412_v57 = vpack.c.bf16 %v1058_v0, %v1054_v42  ;;  %vm2951_vm4 = vcmp.eq.s32.totalorder %v2950_v55, 1  ;;  %v3232_v39 = vld [vmem:[#allocation17 + $0xca8] sm:$0xff]  ;;  %v1077_v0 = vld [vmem:[#allocation13 + $0x310] sm:$0xff]  ;;  %v1086_v55 = vld [vmem:[#allocation13 + $0x358] sm:$0xff] }
 0x2b3   : > { %4901 = vmatprep.subr.bf16.mxu0 %v4900_v63  ;;  %v4916_v63 = vpack.c.bf16 %v3033_v46, %v3029_v44  ;;  %v2960_v18 = vsel %vm2951_vm4, %v2955_v1, %v2959_v2  ;;  %v1081_v44 = vld [vmem:[#allocation13 + $0x330] sm:$0xff]  ;;  %v3227_v46 = vld [vmem:[#allocation17 + $0xc80] sm:$0xff]  ;;  %v4960_v51 = vpack.c.bf16 %v3232_v39, %v3228_v38  ;;  %v3264_v38 = vld [vmem:[#allocation17 + $0xda8] sm:$0xff] }
 0x2b4   : > { %v4426_v61 = vpack.c.bf16 %v1081_v44, %v1077_v0  ;;  %v1085_v1 = vld [vmem:[#allocation13 + $0x350] sm:$0xff]  ;;  %v3259_v44 = vld [vmem:[#allocation17 + $0xd80] sm:$0xff] }
 0x2b5   : > { %4399 = vmatpush1.bf16.msra.mxu1 %v4398_v6  ;;  %v2964_v6 = vpop.permute.xlu1 %2963  ;;  %v1089_v2 = vld [vmem:[#allocation13 + $0x370] sm:$0xff] }
 0x2b6   : > { %4903 = vmatpush1.bf16.msra.mxu0 %v4902_v8  ;;  %4401 = vmatprep.subr.bf16.mxu1 %v4400_v9  ;;  %v3212_v8 = vld [vmem:[#allocation17 + $0xc08] sm:$0xff]  ;;  %vm2965_vm5 = vcmp.eq.s32.totalorder %v2964_v6, 1  ;;  %v1094_v6 = vld [vmem:[#allocation13 + $0x398] sm:$0xff]  ;;  %v1283_v0 = vld [vmem:[#allocation14 + $0x30] sm:$0xff] }
 0x2b7   : > { %4905 = vmatprep.subr.bf16.mxu0 %v4904_v14  ;;  %v3216_v9 = vld [vmem:[#allocation17 + $0xc28] sm:$0xff]  ;;  %v4416_v14 = vpack.c.bf16 %v1066_v5, %v1062_v4  ;;  %v3239_v5 = vld [vmem:[#allocation17 + $0xce0] sm:$0xff] }
 0x2b8   : > { %v4952_v19 = vpack.c.bf16 %v3216_v9, %v3212_v8  ;;  %v1098_v8 = vld [vmem:[#allocation13 + $0x3b8] sm:$0xff]  ;;  %v3244_v9 = vld [vmem:[#allocation17 + $0xd08] sm:$0xff] }
 0x2b9   : > { %4403 = vmatpush1.bf16.msra.mxu1 %v4402_v20  ;;  %v3215_v20 = vld [vmem:[#allocation17 + $0xc20] sm:$0xff] }
 0x2ba   : > { %4907 = vmatpush1.bf16.msra.mxu0 %v4906_v21  ;;  %4405 = vmatprep.subr.bf16.mxu1 %v4404_v22  ;;  %v1070_v21 = vld [vmem:[#allocation13 + $0x2d8] sm:$0xff]  ;;  %v4954_v28 = vpack.c.bf16 %v3215_v20, %v3211_v17  ;;  %v3243_v17 = vld [vmem:[#allocation17 + $0xd00] sm:$0xff] }
 0x2bb   : > { %4909 = vmatprep.subr.bf16.mxu0 %v4908_v27  ;;  %v1074_v22 = vld [vmem:[#allocation13 + $0x2f8] sm:$0xff]  ;;  %v6347_v27 = vsel %vm2965_vm5, %v2969_v13, %v2960_v18  ;;  %v4966_v13 = vpack.c.bf16 %v3239_v5, %v3235_v3  ;;  %v1291_v3 = vld [vmem:[#allocation14 + $0x70] sm:$0xff] }
 0x2bc   : > { %v4420_v29 = vpack.c.bf16 %v1074_v22, %v1070_v21  ;;  %v1102_v20 = vld [vmem:[#allocation13 + $0x3d8] sm:$0xff]  ;;  %v3252_v22 = vld [vmem:[#allocation17 + $0xd48] sm:$0xff] }
 0x2bd   : > { %4407 = vmatpush1.bf16.msra.mxu1 %v4406_v33  ;;  %v4956_v33 = vpack.c.bf16 %v3224_v25, %v3220_v24  ;;  %v1106_v21 = vld [vmem:[#allocation13 + $0x3f8] sm:$0xff]  ;;  %v3256_v24 = vld [vmem:[#allocation17 + $0xd68] sm:$0xff]  ;;  %v4434_v25 = vpack.c.bf16 %v1097_v16, %v1093_v15 }
 0x2be   : > { %4911 = vmatpush1.bf16.msra.mxu0 %v4910_v34  ;;  %4409 = vmatprep.subr.bf16.mxu1 %v4408_v35  ;;  %v3223_v34 = vld [vmem:[#allocation17 + $0xc60] sm:$0xff]  ;;  %v1078_v35 = vld [vmem:[#allocation13 + $0x318] sm:$0xff]  ;;  %v3455_v15 = vld [vmem:[#allocation17 + $0xe28] sm:$0xff] }
 0x2bf   : > { %4913 = vmatprep.subr.bf16.mxu0 %v4912_v40  ;;  %v4422_v40 = vpack.c.bf16 %v1073_v31, %v1069_v30  ;;  %v4958_v41 = vpack.c.bf16 %v3223_v34, %v3219_v32  ;;  %v4424_v42 = vpack.c.bf16 %v1082_v37, %v1078_v35  ;;  %v1105_v30 = vld [vmem:[#allocation13 + $0x3f0] sm:$0xff]  ;;  %v3251_v31 = vld [vmem:[#allocation17 + $0xd40] sm:$0xff]  ;;  %v4972_v32 = vpack.c.bf16 %v3256_v24, %v3252_v22  ;;  %v1280_v34 = vld [vmem:[#allocation14 + $0x18] sm:$0xff] }
 0x2c0   : > { %v1284_v35 = vld [vmem:[#allocation14 + $0x38] sm:$0xff]  ;;  %v3260_v37 = vld [vmem:[#allocation17 + $0xd88] sm:$0xff]  ;;  %v3450_v22 = vld [vmem:[#allocation17 + $0xe00] sm:$0xff] }
 0x2c1   : > { %4411 = vmatpush1.bf16.msra.mxu1 %v4410_v53  ;;  %v3231_v53 = vld [vmem:[#allocation17 + $0xca0] sm:$0xff] }
 0x2c2   : > { %4915 = vmatpush1.bf16.msra.mxu0 %v4914_v56  ;;  %4413 = vmatprep.subr.bf16.mxu1 %v4412_v57  ;;  %v1090_v56 = vld [vmem:[#allocation13 + $0x378] sm:$0xff]  ;;  %v3236_v57 = vld [vmem:[#allocation17 + $0xcc8] sm:$0xff]  ;;  %v4962_v62 = vpack.c.bf16 %v3231_v53, %v3227_v46  ;;  %v4976_v46 = vpack.c.bf16 %v3264_v38, %v3260_v37  ;;  %v1307_v37 = vld [vmem:[#allocation14 + $0xf0] sm:$0xff] }
 0x2c3   : > { %4917 = vmatprep.subr.bf16.mxu0 %v4916_v63  ;;  %v4428_v63 = vpack.c.bf16 %v1090_v56, %v1086_v55  ;;  %v4964_v4 = vpack.c.bf16 %v3240_v59, %v3236_v57  ;;  %v1288_v53 = vld [vmem:[#allocation14 + $0x58] sm:$0xff]  ;;  %v3268_v56 = vld [vmem:[#allocation17 + $0xdc8] sm:$0xff]  ;;  %v3183_v59 = vld [vmem:[#allocation11 + $0x18] sm:$0x7] }
 0x2c4   : > { %v1292_v55 = vld [vmem:[#allocation14 + $0x78] sm:$0xff]  ;;  %v3272_v57 = vld [vmem:[#allocation17 + $0xde8] sm:$0xff]  ;;  %v3458_v38 = vld [vmem:[#allocation17 + $0xe40] sm:$0xff] }
 0x2c5   : > { %4415 = vmatpush1.bf16.msra.mxu1 %v4414_v11  ;;  %v3248_v11 = vld [vmem:[#allocation17 + $0xd28] sm:$0xff]  ;;  %v4980_v5 = vpack.c.bf16 %v3272_v57, %v3268_v56  ;;  %v1315_v56 = vld [vmem:[#allocation14 + $0x130] sm:$0xff]  ;;  %v3466_v57 = vld [vmem:[#allocation17 + $0xe80] sm:$0xff] }
 0x2c6   : > { %4919 = vmatpush1.bf16.msra.mxu0 %v4918_v12  ;;  %4417 = vmatprep.subr.bf16.mxu1 %v4416_v14  ;;  %v4430_v12 = vpack.c.bf16 %v1089_v2, %v1085_v1  ;;  %v4432_v14 = vpack.c.bf16 %v1098_v8, %v1094_v6  ;;  %v4968_v18 = vpack.c.bf16 %v3248_v11, %v3244_v9  ;;  %v1287_v2 = vld [vmem:[#allocation14 + $0x50] sm:$0xff]  ;;  %v3271_v9 = vld [vmem:[#allocation17 + $0xde0] sm:$0xff]  ;;  %v1296_v11 = vld [vmem:[#allocation14 + $0x98] sm:$0xff] }
 0x2c7   : > { %4953 = vmatprep.subr.bf16.mxu0 %v4952_v19  ;;  %v3247_v19 = vld [vmem:[#allocation17 + $0xd20] sm:$0xff]  ;;  %v4476_v1 = vpack.c.bf16 %v1292_v55, %v1288_v53  ;;  %v3194_v6 = vrot.slane %v3183_v59, %v6231_v43  ;;  %v3198_v8 = vrot.slane %v3183_v59, %v6271_v45  ;;  %v4478_v16 = vpack.c.bf16 %v1291_v3, %v1287_v2  ;;  %v1311_v55 = vld [vmem:[#allocation14 + $0x110] sm:$0xff]  ;;  %v3479_v2 = vld [vmem:[#allocation17 + $0xee8] sm:$0xff] }
 0x2c8   : > { %v4490_v3 = vpack.c.bf16 %v1315_v56, %v1311_v55  ;;  %v1537_v55 = vld [vmem:[#allocation16 + $0x30] sm:$0xff]  ;;  %v3498_v56 = vld [vmem:[#allocation17 + $0xf80] sm:$0xff] }
 0x2c9   : > { %4419 = vmatpush1.bf16.msra.mxu1 %v4418_v26  ;;  %3101 = vmatmul.mubr.f32.vlgmr.msra.gmra.mrb[2].mxu0 %v6347_v27  ;;  %v4970_v26 = vpack.c.bf16 %v3247_v19, %v3243_v17 }
 0x2ca   : > { %4955 = vmatpush1.bf16.msra.mxu0 %v4954_v28  ;;  %4421 = vmatprep.subr.bf16.mxu1 %v4420_v29  ;;  %v4436_v28 = vpack.c.bf16 %v1106_v21, %v1102_v20  ;;  %v1101_v29 = vld [vmem:[#allocation13 + $0x3d0] sm:$0xff] }
 0x2cb   : > { %4957 = vmatprep.subr.bf16.mxu0 %v4956_v33  ;;  %3339 = vmatprep.mubr.f32.mxu0 %v5766_v52  ;;  %v3255_v33 = vld [vmem:[#allocation17 + $0xd60] sm:$0xff]  ;;  %v4438_v39 = vpack.c.bf16 %v1105_v30, %v1101_v29  ;;  %v1295_v20 = vld [vmem:[#allocation14 + $0x90] sm:$0xff]  ;;  %v3459_v29 = vld [vmem:[#allocation17 + $0xe48] sm:$0xff] }
 0x2cc   : > { %v1299_v21 = vld [vmem:[#allocation14 + $0xb0] sm:$0xff]  ;;  %v3463_v30 = vld [vmem:[#allocation17 + $0xe68] sm:$0xff] }
 0x2cd   : > { %4423 = vmatpush1.bf16.msra.mxu1 %v4422_v40  ;;  %v4974_v40 = vpack.c.bf16 %v3255_v33, %v3251_v31  ;;  %v4482_v31 = vpack.c.bf16 %v1299_v21, %v1295_v20  ;;  %v1327_v20 = vld [vmem:[#allocation14 + $0x190] sm:$0xff] }
 0x2ce   : > { %4959 = vmatpush1.bf16.msra.mxu0 %v4958_v41  ;;  %4425 = vmatprep.subr.bf16.mxu1 %v4424_v42  ;;  %v4472_v41 = vpack.c.bf16 %v1284_v35, %v1280_v34  ;;  %v1279_v42 = vld [vmem:[#allocation14 + $0x10] sm:$0xff] }
 0x2cf   : > { %4961 = vmatprep.subr.bf16.mxu0 %v4960_v51  ;;  %v3263_v51 = vld [vmem:[#allocation17 + $0xda0] sm:$0xff]  ;;  %v1303_v35 = vld [vmem:[#allocation14 + $0xd0] sm:$0xff] }
 0x2d0   : > { %v1331_v21 = vld [vmem:[#allocation14 + $0x1b0] sm:$0xff] }
 0x2d1   : > { %4427 = vmatpush1.bf16.msra.mxu1 %v4426_v61  ;;  %v4474_v61 = vpack.c.bf16 %v1283_v0, %v1279_v42  ;;  %v1316_v42 = vld [vmem:[#allocation14 + $0x138] sm:$0xff]  ;;  %v3467_v0 = vld [vmem:[#allocation17 + $0xe88] sm:$0xff] }
 0x2d2   : > { %4963 = vmatpush1.bf16.msra.mxu0 %v4962_v62  ;;  %4429 = vmatprep.subr.bf16.mxu1 %v4428_v63  ;;  %v3189_v62 = vpop.permute.xlu0 %3188  ;;  %v4978_v63 = vpack.c.bf16 %v3263_v51, %v3259_v44  ;;  %v3471_v44 = vld [vmem:[#allocation17 + $0xea8] sm:$0xff] }
 0x2d3   : > { %4965 = vmatprep.subr.bf16.mxu0 %v4964_v4  ;;  %v3267_v4 = vld [vmem:[#allocation17 + $0xdc0] sm:$0xff]  ;;  %vm3190_vm6 = vcmp.eq.s32.totalorder %v3189_v62, 1  ;;  %v1320_v62 = vld [vmem:[#allocation14 + $0x158] sm:$0xff] }
 0x2d4   : > { %v4982_v17 = vpack.c.bf16 %v3271_v9, %v3267_v4  ;;  %v3474_v9 = vld [vmem:[#allocation17 + $0xec0] sm:$0xff] }
 0x2d5   : > { %4431 = vmatpush1.bf16.msra.mxu1 %v4430_v12  ;;  %v1300_v12 = vld [vmem:[#allocation14 + $0xb8] sm:$0xff] }
 0x2d6   : > { %4967 = vmatpush1.bf16.msra.mxu0 %v4966_v13  ;;  %4433 = vmatprep.subr.bf16.mxu1 %v4432_v14  ;;  %v3203_v13 = vpop.permute.xlu1 %3202  ;;  %v3451_v14 = vld [vmem:[#allocation17 + $0xe08] sm:$0xff]  ;;  %v4480_v19 = vpack.c.bf16 %v1300_v12, %v1296_v11  ;;  %v3478_v12 = vld [vmem:[#allocation17 + $0xee0] sm:$0xff] }
 0x2d7   : > { %4969 = vmatprep.subr.bf16.mxu0 %v4968_v18  ;;  %v3208_v18 = vrot.slane %v3183_v59, %v6256_v58  ;;  %vm3204_vm7 = vcmp.eq.s32.totalorder %v3203_v13, 1  ;;  %v5016_v24 = vpack.c.bf16 %v3455_v15, %v3451_v14  ;;  %v5024_v59 = vpack.c.bf16 %v3471_v44, %v3467_v0  ;;  %v1328_v13 = vld [vmem:[#allocation14 + $0x198] sm:$0xff]  ;;  %v3483_v15 = vld [vmem:[#allocation17 + $0xf08] sm:$0xff] }
 0x2d8   : > { %v1332_v14 = vld [vmem:[#allocation14 + $0x1b8] sm:$0xff]  ;;  %v3503_v0 = vld [vmem:[#allocation17 + $0xfa8] sm:$0xff] }
 0x2d9   : > { %4435 = vmatpush1.bf16.msra.mxu1 %v4434_v25  ;;  %v3454_v25 = vld [vmem:[#allocation17 + $0xe20] sm:$0xff] }
 0x2da   : > { %4971 = vmatpush1.bf16.msra.mxu0 %v4970_v26  ;;  %4437 = vmatprep.subr.bf16.mxu1 %v4436_v28  ;;  %v1304_v26 = vld [vmem:[#allocation14 + $0xd8] sm:$0xff]  ;;  %v5018_v33 = vpack.c.bf16 %v3454_v25, %v3450_v22  ;;  %v3482_v22 = vld [vmem:[#allocation17 + $0xf00] sm:$0xff] }
 0x2db   : > { %4973 = vmatprep.subr.bf16.mxu0 %v4972_v32  ;;  %v1308_v28 = vld [vmem:[#allocation14 + $0xf8] sm:$0xff] }
 0x2dc   : > { %v4484_v34 = vpack.c.bf16 %v1308_v28, %v1304_v26  ;;  %v1336_v25 = vld [vmem:[#allocation14 + $0x1d8] sm:$0xff]  ;;  %v3491_v28 = vld [vmem:[#allocation17 + $0xf48] sm:$0xff] }
 0x2dd   : > { %4439 = vmatpush1.bf16.msra.mxu1 %v4438_v39  ;;  %v5020_v39 = vpack.c.bf16 %v3463_v30, %v3459_v29  ;;  %v1340_v26 = vld [vmem:[#allocation14 + $0x1f8] sm:$0xff]  ;;  %v3495_v29 = vld [vmem:[#allocation17 + $0xf68] sm:$0xff]  ;;  %v4498_v30 = vpack.c.bf16 %v1331_v21, %v1327_v20 }
 0x2de   : > { %4975 = vmatpush1.bf16.msra.mxu0 %v4974_v40  ;;  %4473 = vmatprep.subr.bf16.mxu1 %v4472_v41  ;;  %v3462_v40 = vld [vmem:[#allocation17 + $0xe60] sm:$0xff]  ;;  %v1312_v41 = vld [vmem:[#allocation14 + $0x118] sm:$0xff] }
 0x2df   : > { %4977 = vmatprep.subr.bf16.mxu0 %v4976_v46  ;;  %v4486_v46 = vpack.c.bf16 %v1307_v37, %v1303_v35  ;;  %v5022_v51 = vpack.c.bf16 %v3462_v40, %v3458_v38  ;;  %v4488_v53 = vpack.c.bf16 %v1316_v42, %v1312_v41  ;;  %v1339_v35 = vld [vmem:[#allocation14 + $0x1f0] sm:$0xff]  ;;  %v3490_v37 = vld [vmem:[#allocation17 + $0xf40] sm:$0xff]  ;;  %v5036_v38 = vpack.c.bf16 %v3495_v29, %v3491_v28  ;;  %v1534_v40 = vld [vmem:[#allocation16 + $0x18] sm:$0xff] }
 0x2e0   : > { %1243 = vmatmul.mubr.f32.vlgmr.msra.gmra.mrb[2].mxu1 %v6333_v49  ;;  %v3199_v49 = vsel %vm3190_vm6, %v3194_v6, %v3198_v8  ;;  %v1319_v6 = vld [vmem:[#allocation14 + $0x150] sm:$0xff]  ;;  %v1538_v41 = vld [vmem:[#allocation16 + $0x38] sm:$0xff]  ;;  %v3499_v42 = vld [vmem:[#allocation17 + $0xf88] sm:$0xff] }
 0x2e1   : > { %4475 = vmatpush1.bf16.msra.mxu1 %v4474_v61  ;;  %1476 = vmatprep.mubr.f32.mxu1 %v5766_v52  ;;  %v6357_v32 = vsel %vm3204_vm7, %v3208_v18, %v3199_v49  ;;  %v3470_v61 = vld [vmem:[#allocation17 + $0xea0] sm:$0xff]  ;;  %v1323_v8 = vld [vmem:[#allocation14 + $0x170] sm:$0xff]  ;;  %v5030_v18 = vpack.c.bf16 %v3478_v12, %v3474_v9  ;;  %v1558_v28 = vld [vmem:[#allocation16 + $0xd8] sm:$0xff] }
 0x2e2   : > { %4979 = vmatpush1.bf16.msra.mxu0 %v4978_v63  ;;  %4477 = vmatprep.subr.bf16.mxu1 %v4476_v1  ;;  %v1324_v63 = vld [vmem:[#allocation14 + $0x178] sm:$0xff]  ;;  %v3475_v1 = vld [vmem:[#allocation17 + $0xec8] sm:$0xff]  ;;  %v5026_v4 = vpack.c.bf16 %v3470_v61, %v3466_v57  ;;  %v5040_v57 = vpack.c.bf16 %v3503_v0, %v3499_v42  ;;  %v3506_v9 = vld [vmem:[#allocation17 + $0xfc0] sm:$0xff] }
 0x2e3   : > { %4981 = vmatprep.subr.bf16.mxu0 %v4980_v5  ;;  %v4492_v5 = vpack.c.bf16 %v1324_v63, %v1320_v62  ;;  %v5028_v11 = vpack.c.bf16 %v3479_v2, %v3475_v1  ;;  %v1542_v61 = vld [vmem:[#allocation16 + $0x58] sm:$0xff]  ;;  %v3507_v63 = vld [vmem:[#allocation17 + $0xfc8] sm:$0xff]  ;;  %v3510_v12 = vld [vmem:[#allocation17 + $0xfe0] sm:$0xff] }
 0x2e4   : > { %v1546_v62 = vld [vmem:[#allocation16 + $0x78] sm:$0xff]  ;;  %v3511_v1 = vld [vmem:[#allocation17 + $0xfe8] sm:$0xff]  ;;  %v5046_v21 = vpack.c.bf16 %v3510_v12, %v3506_v9  ;;  %v3697_v42 = vld [vmem:[#allocation17 + $0x1040] sm:$0xff] }
 0x2e5   : > { %4479 = vmatpush1.bf16.msra.mxu1 %v4478_v16  ;;  %v3487_v16 = vld [vmem:[#allocation17 + $0xf28] sm:$0xff]  ;;  %v3422_v2 = vld [vmem:[#allocation11 + $0x1c] sm:$0x7] }
 0x2e6   : > { %4983 = vmatpush1.bf16.msra.mxu0 %v4982_v17  ;;  %4481 = vmatprep.subr.bf16.mxu1 %v4480_v19  ;;  %v4494_v17 = vpack.c.bf16 %v1323_v8, %v1319_v6  ;;  %v4496_v19 = vpack.c.bf16 %v1332_v14, %v1328_v13  ;;  %v5032_v49 = vpack.c.bf16 %v3487_v16, %v3483_v15  ;;  %v1541_v6 = vld [vmem:[#allocation16 + $0x50] sm:$0xff]  ;;  %v1550_v13 = vld [vmem:[#allocation16 + $0x98] sm:$0xff]  ;;  %v3690_v15 = vld [vmem:[#allocation17 + $0x1008] sm:$0xff] }
 0x2e7   : > { %5017 = vmatprep.subr.bf16.mxu0 %v5016_v24  ;;  %v3486_v24 = vld [vmem:[#allocation17 + $0xf20] sm:$0xff]  ;;  %v1545_v8 = vld [vmem:[#allocation16 + $0x70] sm:$0xff]  ;;  %v1554_v14 = vld [vmem:[#allocation16 + $0xb8] sm:$0xff] }
 0x2e8   : > { %v3694_v16 = vld [vmem:[#allocation17 + $0x1028] sm:$0xff]  ;;  %v4542_v20 = vpack.c.bf16 %v1545_v8, %v1541_v6  ;;  %v1562_v29 = vld [vmem:[#allocation16 + $0xf8] sm:$0xff] }
 0x2e9   : > { %4483 = vmatpush1.bf16.msra.mxu1 %v4482_v31  ;;  %3340 = vmatmul.mubr.f32.vlgmr.msra.gmra.mrb[2].mxu0 %v6357_v32  ;;  %v5034_v31 = vpack.c.bf16 %v3486_v24, %v3482_v22  ;;  %v4544_v22 = vpack.c.bf16 %v1554_v14, %v1550_v13  ;;  %v1553_v24 = vld [vmem:[#allocation16 + $0xb0] sm:$0xff]  ;;  %v3714_v6 = vld [vmem:[#allocation17 + $0x10c8] sm:$0xff] }
 0x2ea   : > { %5019 = vmatpush1.bf16.msra.mxu0 %v5018_v33  ;;  %4485 = vmatprep.subr.bf16.mxu1 %v4484_v34  ;;  %v4500_v33 = vpack.c.bf16 %v1340_v26, %v1336_v25  ;;  %v1335_v34 = vld [vmem:[#allocation14 + $0x1d0] sm:$0xff]  ;;  %v3689_v25 = vld [vmem:[#allocation17 + $0x1000] sm:$0xff]  ;;  %v3718_v8 = vld [vmem:[#allocation17 + $0x10e8] sm:$0xff] }
 0x2eb   : > { %5021 = vmatprep.subr.bf16.mxu0 %v5020_v39  ;;  %3578 = vmatprep.mubr.f32.mxu0 %v5766_v52  ;;  %v3494_v39 = vld [vmem:[#allocation17 + $0xf60] sm:$0xff]  ;;  %v4502_v44 = vpack.c.bf16 %v1339_v35, %v1335_v34  ;;  %v3702_v34 = vld [vmem:[#allocation17 + $0x1068] sm:$0xff]  ;;  %v1573_v13 = vld [vmem:[#allocation16 + $0x150] sm:$0xff] }
 0x2ec   : > { %v3693_v26 = vld [vmem:[#allocation17 + $0x1020] sm:$0xff]  ;;  %v1577_v14 = vld [vmem:[#allocation16 + $0x170] sm:$0xff] }
 0x2ed   : > { %4487 = vmatpush1.bf16.msra.mxu1 %v4486_v46  ;;  %v5038_v46 = vpack.c.bf16 %v3494_v39, %v3490_v37  ;;  %v4548_v39 = vpack.c.bf16 %v1562_v29, %v1558_v28  ;;  %v3725_v29 = vld [vmem:[#allocation17 + $0x1120] sm:$0xff] }
 0x2ee   : > { %5023 = vmatpush1.bf16.msra.mxu0 %v5022_v51  ;;  %4489 = vmatprep.subr.bf16.mxu1 %v4488_v53  ;;  %v4536_v51 = vpack.c.bf16 %v1538_v41, %v1534_v40  ;;  %v1533_v53 = vld [vmem:[#allocation16 + $0x10] sm:$0xff] }
 0x2ef   : > { %5025 = vmatprep.subr.bf16.mxu0 %v5024_v59  ;;  %v3502_v59 = vld [vmem:[#allocation17 + $0xfa0] sm:$0xff]  ;;  %v1557_v40 = vld [vmem:[#allocation16 + $0xd0] sm:$0xff] }
 0x2f0   : > { %v1561_v41 = vld [vmem:[#allocation16 + $0xf0] sm:$0xff] }
 0x2f1   : > { %4491 = vmatpush1.bf16.msra.mxu1 %v4490_v3  ;;  %v4538_v3 = vpack.c.bf16 %v1537_v55, %v1533_v53  ;;  %v3706_v55 = vld [vmem:[#allocation17 + $0x1088] sm:$0xff] }
 0x2f2   : > { %5027 = vmatpush1.bf16.msra.mxu0 %v5026_v4  ;;  %4493 = vmatprep.subr.bf16.mxu1 %v4492_v5  ;;  %v5042_v4 = vpack.c.bf16 %v3502_v59, %v3498_v56  ;;  %v4540_v5 = vpack.c.bf16 %v1546_v62, %v1542_v61  ;;  %v3710_v56 = vld [vmem:[#allocation17 + $0x10a8] sm:$0xff]  ;;  %v1565_v62 = vld [vmem:[#allocation16 + $0x110] sm:$0xff] }
 0x2f3   : > { %5029 = vmatprep.subr.bf16.mxu0 %v5028_v11  ;;  %v5044_v11 = vpack.c.bf16 %v3511_v1, %v3507_v63  ;;  %v1569_v63 = vld [vmem:[#allocation16 + $0x130] sm:$0xff]  ;;  %v3705_v1 = vld [vmem:[#allocation17 + $0x1080] sm:$0xff] }
 0x2f4   : > { %v4554_v9 = vpack.c.bf16 %v1569_v63, %v1565_v62  ;;  %v1783_v62 = vld [vmem:[#allocation17 + $0x30] sm:$0xff]  ;;  %v3737_v63 = vld [vmem:[#allocation17 + $0x1180] sm:$0xff] }
 0x2f5   : > { %4495 = vmatpush1.bf16.msra.mxu1 %v4494_v17  ;;  %v3433_v17 = vrot.slane %v3422_v2, %v6231_v43 }
 0x2f6   : > { %5031 = vmatpush1.bf16.msra.mxu0 %v5030_v18  ;;  %4497 = vmatprep.subr.bf16.mxu1 %v4496_v19  ;;  %v3437_v18 = vrot.slane %v3422_v2, %v6271_v45  ;;  %v3428_v19 = vpop.permute.xlu0 %3427 }
 0x2f7   : > { %5033 = vmatprep.subr.bf16.mxu0 %v5032_v49  ;;  %vm3429_vm8 = vcmp.eq.s32.totalorder %v3428_v19, 1  ;;  %v1549_v49 = vld [vmem:[#allocation16 + $0x90] sm:$0xff]  ;;  %v1586_v19 = vld [vmem:[#allocation16 + $0x1b8] sm:$0xff] }
 0x2f8   : > { %v3438_v35 = vsel %vm3429_vm8, %v3433_v17, %v3437_v18  ;;  %v4546_v37 = vpack.c.bf16 %v1553_v24, %v1549_v49  ;;  %v3717_v17 = vld [vmem:[#allocation17 + $0x10e0] sm:$0xff]  ;;  %v1582_v18 = vld [vmem:[#allocation16 + $0x198] sm:$0xff] }
 0x2f9   : > { %4499 = vmatpush1.bf16.msra.mxu1 %v4498_v30  ;;  %v3447_v30 = vrot.slane %v3422_v2, %v6256_v58  ;;  %v5088_v2 = vpack.c.bf16 %v3710_v56, %v3706_v55  ;;  %v4560_v24 = vpack.c.bf16 %v1586_v19, %v1582_v18  ;;  %v3742_v55 = vld [vmem:[#allocation17 + $0x11a8] sm:$0xff]  ;;  %v3749_v18 = vld [vmem:[#allocation17 + $0x11e0] sm:$0xff]  ;;  %v1796_v19 = vld [vmem:[#allocation17 + $0x98] sm:$0xff] }
 0x2fa   : > { %5035 = vmatpush1.bf16.msra.mxu0 %v5034_v31  ;;  %4501 = vmatprep.subr.bf16.mxu1 %v4500_v33  ;;  %v3442_v31 = vpop.permute.xlu1 %3441  ;;  %v3698_v33 = vld [vmem:[#allocation17 + $0x1048] sm:$0xff] }
 0x2fb   : > { %5037 = vmatprep.subr.bf16.mxu0 %v5036_v38  ;;  %vm3443_vm9 = vcmp.eq.s32.totalorder %v3442_v31, 1  ;;  %v5082_v38 = vpack.c.bf16 %v3693_v26, %v3689_v25  ;;  %v5084_v0 = vpack.c.bf16 %v3702_v34, %v3698_v33  ;;  %v1581_v25 = vld [vmem:[#allocation16 + $0x190] sm:$0xff]  ;;  %v3721_v26 = vld [vmem:[#allocation17 + $0x1100] sm:$0xff]  ;;  %v1594_v31 = vld [vmem:[#allocation16 + $0x1f8] sm:$0xff] }
 0x2fc   : > { %v6367_v53 = vsel %vm3443_vm9, %v3447_v30, %v3438_v35  ;;  %v1590_v30 = vld [vmem:[#allocation16 + $0x1d8] sm:$0xff]  ;;  %v3730_v33 = vld [vmem:[#allocation17 + $0x1148] sm:$0xff] }
 0x2fd   : > { %4503 = vmatpush1.bf16.msra.mxu1 %v4502_v44  ;;  %v3701_v44 = vld [vmem:[#allocation17 + $0x1060] sm:$0xff]  ;;  %v3734_v34 = vld [vmem:[#allocation17 + $0x1168] sm:$0xff] }
 0x2fe   : > { %5039 = vmatpush1.bf16.msra.mxu0 %v5038_v46  ;;  %4537 = vmatprep.subr.bf16.mxu1 %v4536_v51  ;;  %v1566_v46 = vld [vmem:[#allocation16 + $0x118] sm:$0xff]  ;;  %v5086_v59 = vpack.c.bf16 %v3701_v44, %v3697_v42  ;;  %v5100_v42 = vpack.c.bf16 %v3734_v34, %v3730_v33 }
 0x2ff   : > { %5041 = vmatprep.subr.bf16.mxu0 %v5040_v57  ;;  %v1570_v51 = vld [vmem:[#allocation16 + $0x138] sm:$0xff]  ;;  %v4550_v57 = vpack.c.bf16 %v1561_v41, %v1557_v40  ;;  %v1593_v40 = vld [vmem:[#allocation16 + $0x1f0] sm:$0xff]  ;;  %v3729_v41 = vld [vmem:[#allocation17 + $0x1140] sm:$0xff] }
 0x300   : > { %1477 = vmatmul.mubr.f32.vlgmr.msra.gmra.mrb[4].mxu1 %v6284_v10  ;;  %v5080_v10 = vpack.c.bf16 %v3694_v16, %v3690_v15  ;;  %v4552_v61 = vpack.c.bf16 %v1570_v51, %v1566_v46  ;;  %v3713_v15 = vld [vmem:[#allocation17 + $0x10c0] sm:$0xff]  ;;  %v5092_v16 = vpack.c.bf16 %v3718_v8, %v3714_v6  ;;  %v1780_v44 = vld [vmem:[#allocation17 + $0x18] sm:$0xff]  ;;  %v3738_v51 = vld [vmem:[#allocation17 + $0x1188] sm:$0xff] }
 0x301   : > { %4539 = vmatpush1.bf16.msra.mxu1 %v4538_v3  ;;  %1730 = vmatprep.mubr.f32.mxu1 %v5766_v52  ;;  %v3709_v3 = vld [vmem:[#allocation17 + $0x10a0] sm:$0xff]  ;;  %v5094_v49 = vpack.c.bf16 %v3717_v17, %v3713_v15  ;;  %v1784_v46 = vld [vmem:[#allocation17 + $0x38] sm:$0xff]  ;;  %v3750_v6 = vld [vmem:[#allocation17 + $0x11e8] sm:$0xff] }
 0x302   : > { %5043 = vmatpush1.bf16.msra.mxu0 %v5042_v4  ;;  %4541 = vmatprep.subr.bf16.mxu1 %v4540_v5  ;;  %v1574_v4 = vld [vmem:[#allocation16 + $0x158] sm:$0xff]  ;;  %v3745_v15 = vld [vmem:[#allocation17 + $0x11c0] sm:$0xff] }
 0x303   : > { %5045 = vmatprep.subr.bf16.mxu0 %v5044_v11  ;;  %v1578_v5 = vld [vmem:[#allocation16 + $0x178] sm:$0xff]  ;;  %v5090_v11 = vpack.c.bf16 %v3709_v3, %v3705_v1  ;;  %v5104_v1 = vpack.c.bf16 %v3742_v55, %v3738_v51 }
 0x304   : > { %v4556_v12 = vpack.c.bf16 %v1578_v5, %v1574_v4  ;;  %v1788_v3 = vld [vmem:[#allocation17 + $0x58] sm:$0xff]  ;;  %v3746_v5 = vld [vmem:[#allocation17 + $0x11c8] sm:$0xff] }
 0x305   : > { %4543 = vmatpush1.bf16.msra.mxu1 %v4542_v20  ;;  %v3722_v20 = vld [vmem:[#allocation17 + $0x1108] sm:$0xff]  ;;  %v1792_v4 = vld [vmem:[#allocation17 + $0x78] sm:$0xff]  ;;  %v5108_v17 = vpack.c.bf16 %v3750_v6, %v3746_v5 }
 0x306   : > { %5047 = vmatpush1.bf16.msra.mxu0 %v5046_v21  ;;  %4545 = vmatprep.subr.bf16.mxu1 %v4544_v22  ;;  %v3726_v21 = vld [vmem:[#allocation17 + $0x1128] sm:$0xff]  ;;  %v4558_v22 = vpack.c.bf16 %v1577_v14, %v1573_v13  ;;  %v3661_v8 = vld [vmem:[#allocation11 + $0x20] sm:$0x7]  ;;  %v1787_v13 = vld [vmem:[#allocation17 + $0x50] sm:$0xff] }
 0x307   : > { %5081 = vmatprep.subr.bf16.mxu0 %v5080_v10  ;;  %v1585_v10 = vld [vmem:[#allocation16 + $0x1b0] sm:$0xff]  ;;  %v5096_v28 = vpack.c.bf16 %v3726_v21, %v3722_v20  ;;  %v1800_v20 = vld [vmem:[#allocation17 + $0xb8] sm:$0xff]  ;;  %v3672_v21 = vrot.slane %v3661_v8, %v6231_v43 }
 0x308   : > { %v4562_v35 = vpack.c.bf16 %v1585_v10, %v1581_v25  ;;  %v1791_v14 = vld [vmem:[#allocation17 + $0x70] sm:$0xff]  ;;  %v5110_v25 = vpack.c.bf16 %v3749_v18, %v3745_v15  ;;  %v4608_v10 = vpack.c.bf16 %v1800_v20, %v1796_v19  ;;  %v1824_v51 = vld [vmem:[#allocation17 + $0x178] sm:$0xff] }
 0x309   : > { %4547 = vmatpush1.bf16.msra.mxu1 %v4546_v37  ;;  %3579 = vmatmul.mubr.f32.vlgmr.msra.gmra.mrb[2].mxu0 %v6367_v53  ;;  %v5098_v37 = vpack.c.bf16 %v3725_v29, %v3721_v26  ;;  %v1795_v26 = vld [vmem:[#allocation17 + $0x90] sm:$0xff]  ;;  %v1804_v29 = vld [vmem:[#allocation17 + $0xd8] sm:$0xff] }
 0x30a   : > { %5083 = vmatpush1.bf16.msra.mxu0 %v5082_v38  ;;  %4549 = vmatprep.subr.bf16.mxu1 %v4548_v39  ;;  %v4564_v38 = vpack.c.bf16 %v1594_v31, %v1590_v30  ;;  %v1589_v39 = vld [vmem:[#allocation16 + $0x1d0] sm:$0xff]  ;;  %v1808_v30 = vld [vmem:[#allocation17 + $0xf8] sm:$0xff] }
 0x30b   : > { %5085 = vmatprep.subr.bf16.mxu0 %v5084_v0  ;;  %3817 = vmatprep.mubr.f32.mxu0 %v5766_v52  ;;  %v3733_v0 = vld [vmem:[#allocation17 + $0x1160] sm:$0xff]  ;;  %v4566_v56 = vpack.c.bf16 %v1593_v40, %v1589_v39  ;;  %v4612_v34 = vpack.c.bf16 %v1808_v30, %v1804_v29  ;;  %v1816_v39 = vld [vmem:[#allocation17 + $0x138] sm:$0xff]  ;;  %v2038_v29 = vld [vmem:[#allocation17 + $0x2b0] sm:$0xff] }
 0x30c   : > { %v1840_v5 = vld [vmem:[#allocation17 + $0x1f8] sm:$0xff] }
 0x30d   : > { %4551 = vmatpush1.bf16.msra.mxu1 %v4550_v57  ;;  %v5102_v57 = vpack.c.bf16 %v3733_v0, %v3729_v41  ;;  %v1811_v0 = vld [vmem:[#allocation17 + $0x110] sm:$0xff]  ;;  %v2027_v18 = vld [vmem:[#allocation17 + $0x258] sm:$0xff] }
 0x30e   : > { %5087 = vmatpush1.bf16.msra.mxu0 %v5086_v59  ;;  %4553 = vmatprep.subr.bf16.mxu1 %v4552_v61  ;;  %v4600_v59 = vpack.c.bf16 %v1784_v46, %v1780_v44  ;;  %v1779_v61 = vld [vmem:[#allocation17 + $0x10] sm:$0xff]  ;;  %v1820_v46 = vld [vmem:[#allocation17 + $0x158] sm:$0xff] }
 0x30f   : > { %5089 = vmatprep.subr.bf16.mxu0 %v5088_v2  ;;  %v3741_v2 = vld [vmem:[#allocation17 + $0x11a0] sm:$0xff]  ;;  %v1815_v44 = vld [vmem:[#allocation17 + $0x130] sm:$0xff]  ;;  %v2031_v19 = vld [vmem:[#allocation17 + $0x278] sm:$0xff] }
 0x310   : > { %v4618_v55 = vpack.c.bf16 %v1815_v44, %v1811_v0  ;;  %v2043_v30 = vld [vmem:[#allocation17 + $0x2d8] sm:$0xff] }
 0x311   : > { %4555 = vmatpush1.bf16.msra.mxu1 %v4554_v9  ;;  %v4602_v9 = vpack.c.bf16 %v1783_v62, %v1779_v61  ;;  %v1828_v61 = vld [vmem:[#allocation17 + $0x198] sm:$0xff] }
 0x312   : > { %5091 = vmatpush1.bf16.msra.mxu0 %v5090_v11  ;;  %4557 = vmatprep.subr.bf16.mxu1 %v4556_v12  ;;  %v5106_v11 = vpack.c.bf16 %v3741_v2, %v3737_v63  ;;  %v4604_v12 = vpack.c.bf16 %v1792_v4, %v1788_v3  ;;  %v1832_v62 = vld [vmem:[#allocation17 + $0x1b8] sm:$0xff]  ;;  %v1827_v2 = vld [vmem:[#allocation17 + $0x190] sm:$0xff] }
 0x313   : > { %5093 = vmatprep.subr.bf16.mxu0 %v5092_v16  ;;  %v3667_v16 = vpop.permute.xlu0 %3666  ;;  %v1831_v3 = vld [vmem:[#allocation17 + $0x1b0] sm:$0xff]  ;;  %v1836_v4 = vld [vmem:[#allocation17 + $0x1d8] sm:$0xff] }
 0x314   : > { %vm3668_vm10 = vcmp.eq.s32.totalorder %v3667_v16, 1  ;;  %v4626_v6 = vpack.c.bf16 %v1831_v3, %v1827_v2  ;;  %v2018_v16 = vld [vmem:[#allocation17 + $0x210] sm:$0xff]  ;;  %v2059_v0 = vld [vmem:[#allocation17 + $0x358] sm:$0xff] }
 0x315   : > { %4559 = vmatpush1.bf16.msra.mxu1 %v4558_v22  ;;  %v3676_v22 = vrot.slane %v3661_v8, %v6271_v45  ;;  %v2063_v44 = vld [vmem:[#allocation17 + $0x378] sm:$0xff] }
 0x316   : > { %5095 = vmatpush1.bf16.msra.mxu0 %v5094_v49  ;;  %4561 = vmatprep.subr.bf16.mxu1 %v4560_v24  ;;  %v4606_v49 = vpack.c.bf16 %v1791_v14, %v1787_v13  ;;  %v3681_v24 = vpop.permute.xlu1 %3680  ;;  %v2023_v13 = vld [vmem:[#allocation17 + $0x238] sm:$0xff] }
 0x317   : > { %5097 = vmatprep.subr.bf16.mxu0 %v5096_v28  ;;  %v1799_v28 = vld [vmem:[#allocation17 + $0xb0] sm:$0xff]  ;;  %v3677_v31 = vsel %vm3668_vm10, %v3672_v21, %v3676_v22  ;;  %vm3682_vm11 = vcmp.eq.s32.totalorder %v3681_v24, 1  ;;  %v4668_v21 = vpack.c.bf16 %v2031_v19, %v2027_v18  ;;  %v2035_v24 = vld [vmem:[#allocation17 + $0x298] sm:$0xff] }
 0x318   : > { %v4610_v33 = vpack.c.bf16 %v1799_v28, %v1795_v26  ;;  %v2026_v22 = vld [vmem:[#allocation17 + $0x250] sm:$0xff]  ;;  %v2075_v2 = vld [vmem:[#allocation17 + $0x3d8] sm:$0xff] }
 0x319   : > { %4563 = vmatpush1.bf16.msra.mxu1 %v4562_v35  ;;  %v1803_v35 = vld [vmem:[#allocation17 + $0xd0] sm:$0xff]  ;;  %v2079_v3 = vld [vmem:[#allocation17 + $0x3f8] sm:$0xff] }
 0x31a   : > { %5099 = vmatpush1.bf16.msra.mxu0 %v5098_v37  ;;  %4565 = vmatprep.subr.bf16.mxu1 %v4564_v38  ;;  %v1807_v37 = vld [vmem:[#allocation17 + $0xf0] sm:$0xff]  ;;  %v1812_v38 = vld [vmem:[#allocation17 + $0x118] sm:$0xff] }
 0x31b   : > { %5101 = vmatprep.subr.bf16.mxu0 %v5100_v42  ;;  %v4614_v41 = vpack.c.bf16 %v1807_v37, %v1803_v35  ;;  %v4616_v42 = vpack.c.bf16 %v1816_v39, %v1812_v38  ;;  %v2034_v28 = vld [vmem:[#allocation17 + $0x290] sm:$0xff]  ;;  %v2051_v37 = vld [vmem:[#allocation17 + $0x318] sm:$0xff] }
 0x31c   : > { %v2046_v35 = vld [vmem:[#allocation17 + $0x2f0] sm:$0xff]  ;;  %v2055_v38 = vld [vmem:[#allocation17 + $0x338] sm:$0xff] }
 0x31d   : > { %4567 = vmatpush1.bf16.msra.mxu1 %v4566_v56  ;;  %v4620_v56 = vpack.c.bf16 %v1824_v51, %v1820_v46  ;;  %v4680_v39 = vpack.c.bf16 %v2055_v38, %v2051_v37  ;;  %v4684_v51 = vpack.c.bf16 %v2063_v44, %v2059_v0  ;;  %v2289_v38 = vld [vmem:[#allocation17 + $0x510] sm:$0xff] }
 0x31e   : > { %5103 = vmatpush1.bf16.msra.mxu0 %v5102_v57  ;;  %4601 = vmatprep.subr.bf16.mxu1 %v4600_v59  ;;  %v1819_v57 = vld [vmem:[#allocation17 + $0x150] sm:$0xff] }
 0x31f   : > { %5105 = vmatprep.subr.bf16.mxu0 %v5104_v1  ;;  %v1823_v59 = vld [vmem:[#allocation17 + $0x170] sm:$0xff]  ;;  %v4624_v1 = vpack.c.bf16 %v1832_v62, %v1828_v61 }
 0x320   : > { %1731 = vmatmul.mubr.f32.vlgmr.msra.gmra.mrb[4].mxu1 %v6299_v7  ;;  %v3686_v7 = vrot.slane %v3661_v8, %v6256_v58  ;;  %v4622_v63 = vpack.c.bf16 %v1823_v59, %v1819_v57  ;;  %v4628_v8 = vpack.c.bf16 %v1840_v5, %v1836_v4  ;;  %v2067_v57 = vld [vmem:[#allocation17 + $0x398] sm:$0xff]  ;;  %v4692_v5 = vpack.c.bf16 %v2079_v3, %v2075_v2  ;;  %v2297_v44 = vld [vmem:[#allocation17 + $0x550] sm:$0xff] }
 0x321   : > { %4603 = vmatpush1.bf16.msra.mxu1 %v4602_v9  ;;  %1976 = vmatprep.mubr.f32.mxu1 %v5766_v52  ;;  %v1835_v9 = vld [vmem:[#allocation17 + $0x1d0] sm:$0xff]  ;;  %v2071_v59 = vld [vmem:[#allocation17 + $0x3b8] sm:$0xff] }
 0x322   : > { %5107 = vmatpush1.bf16.msra.mxu0 %v5106_v11  ;;  %4605 = vmatprep.subr.bf16.mxu1 %v4604_v12  ;;  %v6376_v40 = vsel %vm3682_vm11, %v3686_v7, %v3677_v31  ;;  %v1839_v11 = vld [vmem:[#allocation17 + $0x1f0] sm:$0xff]  ;;  %v2019_v12 = vld [vmem:[#allocation17 + $0x218] sm:$0xff]  ;;  %v4674_v31 = vpack.c.bf16 %v2038_v29, %v2034_v28  ;;  %v4688_v62 = vpack.c.bf16 %v2071_v59, %v2067_v57 }
 0x323   : > { %5109 = vmatprep.subr.bf16.mxu0 %v5108_v17  ;;  %v4630_v14 = vpack.c.bf16 %v1839_v11, %v1835_v9  ;;  %v4664_v15 = vpack.c.bf16 %v2023_v13, %v2019_v12  ;;  %v2022_v17 = vld [vmem:[#allocation17 + $0x230] sm:$0xff]  ;;  %v2047_v7 = vld [vmem:[#allocation17 + $0x2f8] sm:$0xff] }
 0x324   : > { %v4666_v20 = vpack.c.bf16 %v2022_v17, %v2018_v16  ;;  %v2258_v9 = vld [vmem:[#allocation17 + $0x418] sm:$0xff]  ;;  %v2305_v59 = vld [vmem:[#allocation17 + $0x590] sm:$0xff] }
 0x325   : > { %4607 = vmatpush1.bf16.msra.mxu1 %v4606_v49  ;;  %v2030_v49 = vld [vmem:[#allocation17 + $0x270] sm:$0xff]  ;;  %v2262_v11 = vld [vmem:[#allocation17 + $0x438] sm:$0xff] }
 0x326   : > { %5111 = vmatpush1.bf16.msra.mxu0 %v5110_v25  ;;  %4609 = vmatprep.subr.bf16.mxu1 %v4608_v10  ;;  %v2039_v25 = vld [vmem:[#allocation17 + $0x2b8] sm:$0xff]  ;;  %v4670_v10 = vpack.c.bf16 %v2030_v49, %v2026_v22  ;;  %v4728_v13 = vpack.c.bf16 %v2262_v11, %v2258_v9 }
 0x327   : > { %v4672_v26 = vpack.c.bf16 %v2039_v25, %v2035_v24  ;;  %v2266_v16 = vld [vmem:[#allocation17 + $0x458] sm:$0xff] }
 0x328   : > { %v2270_v17 = vld [vmem:[#allocation17 + $0x478] sm:$0xff] }
 0x329   : > { %4611 = vmatpush1.bf16.msra.mxu1 %v4610_v33  ;;  %3818 = vmatmul.mubr.f32.vlgmr.msra.gmra.mrb[2].mxu0 %v6376_v40  ;;  %v4676_v33 = vpack.c.bf16 %v2047_v7, %v2043_v30  ;;  %v4732_v19 = vpack.c.bf16 %v2270_v17, %v2266_v16  ;;  %v2274_v22 = vld [vmem:[#allocation17 + $0x498] sm:$0xff] }
 0x32a   : > { %4613 = vmatprep.subr.bf16.mxu1 %v4612_v34  ;;  %v2042_v34 = vld [vmem:[#allocation17 + $0x2d0] sm:$0xff]  ;;  %v2278_v49 = vld [vmem:[#allocation17 + $0x4b8] sm:$0xff] }
 0x32b   : > { %v4736_v25 = vpack.c.bf16 %v2278_v49, %v2274_v22  ;;  %v2282_v28 = vld [vmem:[#allocation17 + $0x4d8] sm:$0xff] }
 0x32c   : > { %v2286_v29 = vld [vmem:[#allocation17 + $0x4f8] sm:$0xff] }
 0x32d   : > { %4615 = vmatpush1.bf16.msra.mxu1 %v4614_v41  ;;  %v2050_v41 = vld [vmem:[#allocation17 + $0x310] sm:$0xff]  ;;  %v4740_v7 = vpack.c.bf16 %v2286_v29, %v2282_v28  ;;  %v2501_v9 = vld [vmem:[#allocation17 + $0x638] sm:$0xff] }
 0x32e   : > { %4617 = vmatprep.subr.bf16.mxu1 %v4616_v42  ;;  %v2054_v42 = vld [vmem:[#allocation17 + $0x330] sm:$0xff]  ;;  %v2509_v16 = vld [vmem:[#allocation17 + $0x678] sm:$0xff] }
 0x32f   : > { %v4682_v46 = vpack.c.bf16 %v2054_v42, %v2050_v41  ;;  %v2302_v41 = vld [vmem:[#allocation17 + $0x578] sm:$0xff] }
 0x330   : > { %v2517_v22 = vld [vmem:[#allocation17 + $0x6b8] sm:$0xff] }
 0x331   : > { %4619 = vmatpush1.bf16.msra.mxu1 %v4618_v55  ;;  %v2058_v55 = vld [vmem:[#allocation17 + $0x350] sm:$0xff]  ;;  %v2525_v28 = vld [vmem:[#allocation17 + $0x6f8] sm:$0xff] }
 0x332   : > { %4621 = vmatprep.subr.bf16.mxu1 %v4620_v56  ;;  %v2062_v56 = vld [vmem:[#allocation17 + $0x370] sm:$0xff] }
 0x333   : > { %v4686_v61 = vpack.c.bf16 %v2062_v56, %v2058_v55  ;;  %v2310_v55 = vld [vmem:[#allocation17 + $0x5b8] sm:$0xff] }
 0x335   : > { %4623 = vmatpush1.bf16.msra.mxu1 %v4622_v63  ;;  %v2066_v63 = vld [vmem:[#allocation17 + $0x390] sm:$0xff] }
 0x336   : > { %4625 = vmatprep.subr.bf16.mxu1 %v4624_v1  ;;  %v2070_v1 = vld [vmem:[#allocation17 + $0x3b0] sm:$0xff] }
 0x337   : > { %v4690_v4 = vpack.c.bf16 %v2070_v1, %v2066_v63  ;;  %v2314_v63 = vld [vmem:[#allocation17 + $0x5d8] sm:$0xff] }
 0x338   : > { %v2318_v1 = vld [vmem:[#allocation17 + $0x5f8] sm:$0xff] }
 0x339   : > { %4627 = vmatpush1.bf16.msra.mxu1 %v4626_v6  ;;  %v2074_v6 = vld [vmem:[#allocation17 + $0x3d0] sm:$0xff] }
 0x33a   : > { %4629 = vmatprep.subr.bf16.mxu1 %v4628_v8  ;;  %v2078_v8 = vld [vmem:[#allocation17 + $0x3f0] sm:$0xff] }
 0x33b   : > { %v4694_v12 = vpack.c.bf16 %v2078_v8, %v2074_v6  ;;  %v2317_v6 = vld [vmem:[#allocation17 + $0x5f0] sm:$0xff]  ;;  %v2497_v8 = vld [vmem:[#allocation17 + $0x618] sm:$0xff] }
 0x33d   : > { %4631 = vmatpush1.bf16.msra.mxu1 %v4630_v14  ;;  %v2257_v14 = vld [vmem:[#allocation17 + $0x410] sm:$0xff] }
 0x33e   : > { %4665 = vmatprep.subr.bf16.mxu1 %v4664_v15  ;;  %v2261_v15 = vld [vmem:[#allocation17 + $0x430] sm:$0xff] }
 0x33f   : > { %v4730_v18 = vpack.c.bf16 %v2261_v15, %v2257_v14  ;;  %v2500_v14 = vld [vmem:[#allocation17 + $0x630] sm:$0xff]  ;;  %v2505_v15 = vld [vmem:[#allocation17 + $0x658] sm:$0xff] }
 0x340   : > { %1977 = vmatmul.mubr.f32.vlgmr.msra.gmra.mrb[4].mxu1 %v6306_v47  ;;  %v4678_v47 = vpack.c.bf16 %v2046_v35, %v2042_v34  ;;  %v2290_v34 = vld [vmem:[#allocation17 + $0x518] sm:$0xff] }
 0x341   : > { %4667 = vmatpush1.bf16.msra.mxu1 %v4666_v20  ;;  %2215 = vmatprep.mubr.f32.mxu1 %v5766_v52  ;;  %v2265_v20 = vld [vmem:[#allocation17 + $0x450] sm:$0xff]  ;;  %v2294_v35 = vld [vmem:[#allocation17 + $0x538] sm:$0xff] }
 0x342   : > { %4669 = vmatprep.subr.bf16.mxu1 %v4668_v21  ;;  %v2269_v21 = vld [vmem:[#allocation17 + $0x470] sm:$0xff]  ;;  %v4744_v37 = vpack.c.bf16 %v2294_v35, %v2290_v34  ;;  %v2533_v34 = vld [vmem:[#allocation17 + $0x738] sm:$0xff] }
 0x343   : > { %v4734_v24 = vpack.c.bf16 %v2269_v21, %v2265_v20  ;;  %v2508_v20 = vld [vmem:[#allocation17 + $0x670] sm:$0xff]  ;;  %v2513_v21 = vld [vmem:[#allocation17 + $0x698] sm:$0xff] }
 0x345   : > { %4671 = vmatpush1.bf16.msra.mxu1 %v4670_v10  ;;  %v2273_v10 = vld [vmem:[#allocation17 + $0x490] sm:$0xff] }
 0x346   : > { %4673 = vmatprep.subr.bf16.mxu1 %v4672_v26  ;;  %v2277_v26 = vld [vmem:[#allocation17 + $0x4b0] sm:$0xff] }
 0x347   : > { %v4738_v30 = vpack.c.bf16 %v2277_v26, %v2273_v10  ;;  %v2516_v10 = vld [vmem:[#allocation17 + $0x6b0] sm:$0xff]  ;;  %v2521_v26 = vld [vmem:[#allocation17 + $0x6d8] sm:$0xff] }
 0x349   : > { %4675 = vmatpush1.bf16.msra.mxu1 %v4674_v31  ;;  %v2281_v31 = vld [vmem:[#allocation17 + $0x4d0] sm:$0xff] }
 0x34a   : > { %4677 = vmatprep.subr.bf16.mxu1 %v4676_v33  ;;  %v2285_v33 = vld [vmem:[#allocation17 + $0x4f0] sm:$0xff] }
 0x34d   : > { %4679 = vmatpush1.bf16.msra.mxu1 %v4678_v47  ;;  %v2293_v47 = vld [vmem:[#allocation17 + $0x530] sm:$0xff] }
 0x34e   : > { %4681 = vmatprep.subr.bf16.mxu1 %v4680_v39  ;;  %v2298_v39 = vld [vmem:[#allocation17 + $0x558] sm:$0xff]  ;;  %v4746_v42 = vpack.c.bf16 %v2293_v47, %v2289_v38 }
 0x34f   : > { %v4748_v0 = vpack.c.bf16 %v2302_v41, %v2298_v39  ;;  %v2537_v38 = vld [vmem:[#allocation17 + $0x758] sm:$0xff] }
 0x350   : > { %v2541_v47 = vld [vmem:[#allocation17 + $0x778] sm:$0xff] }
 0x351   : > { %4683 = vmatpush1.bf16.msra.mxu1 %v4682_v46  ;;  %v2301_v46 = vld [vmem:[#allocation17 + $0x570] sm:$0xff]  ;;  %v4812_v41 = vpack.c.bf16 %v2541_v47, %v2537_v38 }
 0x352   : > { %4685 = vmatprep.subr.bf16.mxu1 %v4684_v51  ;;  %v2306_v51 = vld [vmem:[#allocation17 + $0x598] sm:$0xff]  ;;  %v4750_v56 = vpack.c.bf16 %v2301_v46, %v2297_v44  ;;  %v2775_v47 = vld [vmem:[#allocation17 + $0x950] sm:$0xff] }
 0x353   : > { %v4752_v57 = vpack.c.bf16 %v2310_v55, %v2306_v51  ;;  %v2545_v44 = vld [vmem:[#allocation17 + $0x798] sm:$0xff] }
 0x354   : > { %v2549_v46 = vld [vmem:[#allocation17 + $0x7b8] sm:$0xff] }
 0x355   : > { %4687 = vmatpush1.bf16.msra.mxu1 %v4686_v61  ;;  %v2309_v61 = vld [vmem:[#allocation17 + $0x5b0] sm:$0xff]  ;;  %v4816_v55 = vpack.c.bf16 %v2549_v46, %v2545_v44 }
 0x356   : > { %4689 = vmatprep.subr.bf16.mxu1 %v4688_v62  ;;  %v4754_v3 = vpack.c.bf16 %v2309_v61, %v2305_v59  ;;  %v2553_v59 = vld [vmem:[#allocation17 + $0x7d8] sm:$0xff]  ;;  %v2783_v46 = vld [vmem:[#allocation17 + $0x990] sm:$0xff] }
 0x357   : > { %v2557_v61 = vld [vmem:[#allocation17 + $0x7f8] sm:$0xff] }
 0x359   : > { %4691 = vmatpush1.bf16.msra.mxu1 %v4690_v4  ;;  %v4756_v4 = vpack.c.bf16 %v2318_v1, %v2314_v63  ;;  %v4820_v1 = vpack.c.bf16 %v2557_v61, %v2553_v59 }
 0x35a   : > { %4693 = vmatprep.subr.bf16.mxu1 %v4692_v5  ;;  %v2313_v5 = vld [vmem:[#allocation17 + $0x5d0] sm:$0xff] }
 0x35b   : > { %v4758_v11 = vpack.c.bf16 %v2317_v6, %v2313_v5  ;;  %v2736_v5 = vld [vmem:[#allocation17 + $0x818] sm:$0xff] }
 0x35c   : > { %v2740_v6 = vld [vmem:[#allocation17 + $0x838] sm:$0xff] }
 0x35d   : > { %4695 = vmatpush1.bf16.msra.mxu1 %v4694_v12  ;;  %v4792_v12 = vpack.c.bf16 %v2501_v9, %v2497_v8  ;;  %v4856_v9 = vpack.c.bf16 %v2740_v6, %v2736_v5  ;;  %v2979_v5 = vld [vmem:[#allocation17 + $0xa38] sm:$0xff] }
 0x35e   : > { %4729 = vmatprep.subr.bf16.mxu1 %v4728_v13  ;;  %v2496_v13 = vld [vmem:[#allocation17 + $0x610] sm:$0xff] }
 0x35f   : > { %v4794_v17 = vpack.c.bf16 %v2500_v14, %v2496_v13  ;;  %v2744_v13 = vld [vmem:[#allocation17 + $0x858] sm:$0xff] }
 0x360   : > { %2216 = vmatmul.mubr.f32.vlgmr.msra.gmra.mrb[4].mxu1 %v6313_v48  ;;  %v4742_v48 = vpack.c.bf16 %v2285_v33, %v2281_v31  ;;  %v2524_v31 = vld [vmem:[#allocation17 + $0x6f0] sm:$0xff]  ;;  %v2529_v33 = vld [vmem:[#allocation17 + $0x718] sm:$0xff] }
 0x361   : > { %4731 = vmatpush1.bf16.msra.mxu1 %v4730_v18  ;;  %2454 = vmatprep.mubr.f32.mxu1 %v5766_v52  ;;  %v4796_v18 = vpack.c.bf16 %v2509_v16, %v2505_v15  ;;  %v4808_v35 = vpack.c.bf16 %v2533_v34, %v2529_v33  ;;  %v2748_v14 = vld [vmem:[#allocation17 + $0x878] sm:$0xff]  ;;  %v2767_v34 = vld [vmem:[#allocation17 + $0x910] sm:$0xff] }
 0x362   : > { %4733 = vmatprep.subr.bf16.mxu1 %v4732_v19  ;;  %v2504_v19 = vld [vmem:[#allocation17 + $0x650] sm:$0xff]  ;;  %v4860_v16 = vpack.c.bf16 %v2748_v14, %v2744_v13  ;;  %v2987_v13 = vld [vmem:[#allocation17 + $0xa78] sm:$0xff] }
 0x363   : > { %v4798_v49 = vpack.c.bf16 %v2508_v20, %v2504_v19  ;;  %v2752_v19 = vld [vmem:[#allocation17 + $0x898] sm:$0xff] }
 0x364   : > { %v2756_v20 = vld [vmem:[#allocation17 + $0x8b8] sm:$0xff] }
 0x365   : > { %4735 = vmatpush1.bf16.msra.mxu1 %v4734_v24  ;;  %v4800_v24 = vpack.c.bf16 %v2517_v22, %v2513_v21  ;;  %v4864_v22 = vpack.c.bf16 %v2756_v20, %v2752_v19  ;;  %v2995_v19 = vld [vmem:[#allocation17 + $0xab8] sm:$0xff] }
 0x366   : > { %4737 = vmatprep.subr.bf16.mxu1 %v4736_v25  ;;  %v2512_v25 = vld [vmem:[#allocation17 + $0x690] sm:$0xff] }
 0x367   : > { %v4802_v29 = vpack.c.bf16 %v2516_v10, %v2512_v25  ;;  %v2760_v25 = vld [vmem:[#allocation17 + $0x8d8] sm:$0xff] }
 0x368   : > { %v2764_v10 = vld [vmem:[#allocation17 + $0x8f8] sm:$0xff] }
 0x369   : > { %4739 = vmatpush1.bf16.msra.mxu1 %v4738_v30  ;;  %v4804_v30 = vpack.c.bf16 %v2525_v28, %v2521_v26  ;;  %v4868_v28 = vpack.c.bf16 %v2764_v10, %v2760_v25  ;;  %v3003_v25 = vld [vmem:[#allocation17 + $0xaf8] sm:$0xff] }
 0x36a   : > { %4741 = vmatprep.subr.bf16.mxu1 %v4740_v7  ;;  %v2520_v7 = vld [vmem:[#allocation17 + $0x6d0] sm:$0xff] }
 0x36d   : > { %4743 = vmatpush1.bf16.msra.mxu1 %v4742_v48  ;;  %v2528_v48 = vld [vmem:[#allocation17 + $0x710] sm:$0xff] }
 0x36e   : > { %4745 = vmatprep.subr.bf16.mxu1 %v4744_v37  ;;  %v2532_v37 = vld [vmem:[#allocation17 + $0x730] sm:$0xff] }
 0x36f   : > { %v4810_v39 = vpack.c.bf16 %v2532_v37, %v2528_v48  ;;  %v2780_v48 = vld [vmem:[#allocation17 + $0x978] sm:$0xff] }
 0x371   : > { %4747 = vmatpush1.bf16.msra.mxu1 %v4746_v42  ;;  %v2536_v42 = vld [vmem:[#allocation17 + $0x750] sm:$0xff] }
 0x372   : > { %4749 = vmatprep.subr.bf16.mxu1 %v4748_v0  ;;  %v2540_v0 = vld [vmem:[#allocation17 + $0x770] sm:$0xff] }
 0x373   : > { %v6383_v62 = vpop.f32.mrb[0].mxu1  ;;  %v4814_v51 = vpack.c.bf16 %v2540_v0, %v2536_v42  ;;  %v2788_v42 = vld [vmem:[#allocation17 + $0x9b8] sm:$0xff] }
 0x374   : > { %v6385_v2 = vpop.f32.mrb[1].mxu1 }
 0x375   : > { %4751 = vmatpush1.bf16.msra.mxu1 %v4750_v56  ;;  %v2544_v56 = vld [vmem:[#allocation17 + $0x790] sm:$0xff] }
 0x376   : > { %4753 = vmatprep.subr.bf16.mxu1 %v4752_v57  ;;  %v2548_v57 = vld [vmem:[#allocation17 + $0x7b0] sm:$0xff] }
 0x377   : > { %v4818_v63 = vpack.c.bf16 %v2548_v57, %v2544_v56  ;;  %v2792_v56 = vld [vmem:[#allocation17 + $0x9d8] sm:$0xff] }
 0x378   : > { %v2796_v57 = vld [vmem:[#allocation17 + $0x9f8] sm:$0xff] }
 0x379   : > { %4755 = vmatpush1.bf16.msra.mxu1 %v4754_v3  ;;  %v2552_v3 = vld [vmem:[#allocation17 + $0x7d0] sm:$0xff] }
 0x37a   : > { %4757 = vmatprep.subr.bf16.mxu1 %v4756_v4  ;;  %v2556_v4 = vld [vmem:[#allocation17 + $0x7f0] sm:$0xff] }
 0x37b   : > { %v4822_v8 = vpack.c.bf16 %v2556_v4, %v2552_v3  ;;  %v2795_v3 = vld [vmem:[#allocation17 + $0x9f0] sm:$0xff]  ;;  %v2975_v4 = vld [vmem:[#allocation17 + $0xa18] sm:$0xff] }
 0x37d   : > { %4759 = vmatpush1.bf16.msra.mxu1 %v4758_v11  ;;  %v2735_v11 = vld [vmem:[#allocation17 + $0x810] sm:$0xff] }
 0x37e   : > { %4793 = vmatprep.subr.bf16.mxu1 %v4792_v12  ;;  %v2739_v12 = vld [vmem:[#allocation17 + $0x830] sm:$0xff] }
 0x37f   : > { %v4858_v15 = vpack.c.bf16 %v2739_v12, %v2735_v11  ;;  %v2978_v11 = vld [vmem:[#allocation17 + $0xa30] sm:$0xff]  ;;  %v2983_v12 = vld [vmem:[#allocation17 + $0xa58] sm:$0xff] }
 0x380   : > { %2455 = vmatmul.mubr.f32.vlgmr.msra.gmra.mrb[4].mxu1 %v6320_v50  ;;  %v4806_v50 = vpack.c.bf16 %v2524_v31, %v2520_v7  ;;  %v2768_v7 = vld [vmem:[#allocation17 + $0x918] sm:$0xff] }
 0x381   : > { %4795 = vmatpush1.bf16.msra.mxu1 %v4794_v17  ;;  %2693 = vmatprep.mubr.f32.mxu1 %v5766_v52  ;;  %v2743_v17 = vld [vmem:[#allocation17 + $0x850] sm:$0xff]  ;;  %v2772_v31 = vld [vmem:[#allocation17 + $0x938] sm:$0xff] }
 0x382   : > { %4797 = vmatprep.subr.bf16.mxu1 %v4796_v18  ;;  %v2747_v18 = vld [vmem:[#allocation17 + $0x870] sm:$0xff]  ;;  %v4872_v33 = vpack.c.bf16 %v2772_v31, %v2768_v7  ;;  %v3011_v7 = vld [vmem:[#allocation17 + $0xb38] sm:$0xff] }
 0x383   : > { %v4862_v21 = vpack.c.bf16 %v2747_v18, %v2743_v17  ;;  %v2986_v17 = vld [vmem:[#allocation17 + $0xa70] sm:$0xff]  ;;  %v2991_v18 = vld [vmem:[#allocation17 + $0xa98] sm:$0xff] }
 0x385   : > { %4799 = vmatpush1.bf16.msra.mxu1 %v4798_v49  ;;  %v2751_v49 = vld [vmem:[#allocation17 + $0x890] sm:$0xff] }
 0x386   : > { %4801 = vmatprep.subr.bf16.mxu1 %v4800_v24  ;;  %v2755_v24 = vld [vmem:[#allocation17 + $0x8b0] sm:$0xff] }
 0x387   : > { %v4866_v26 = vpack.c.bf16 %v2755_v24, %v2751_v49  ;;  %v2994_v49 = vld [vmem:[#allocation17 + $0xab0] sm:$0xff]  ;;  %v2999_v24 = vld [vmem:[#allocation17 + $0xad8] sm:$0xff] }
 0x389   : > { %4803 = vmatpush1.bf16.msra.mxu1 %v4802_v29  ;;  %v2759_v29 = vld [vmem:[#allocation17 + $0x8d0] sm:$0xff] }
 0x38a   : > { %4805 = vmatprep.subr.bf16.mxu1 %v4804_v30  ;;  %v2763_v30 = vld [vmem:[#allocation17 + $0x8f0] sm:$0xff] }
 0x38d   : > { %4807 = vmatpush1.bf16.msra.mxu1 %v4806_v50  ;;  %v2771_v50 = vld [vmem:[#allocation17 + $0x930] sm:$0xff] }
 0x38e   : > { %4809 = vmatprep.subr.bf16.mxu1 %v4808_v35  ;;  %v2776_v35 = vld [vmem:[#allocation17 + $0x958] sm:$0xff]  ;;  %v4874_v37 = vpack.c.bf16 %v2771_v50, %v2767_v34 }
 0x38f   : > { %v4876_v38 = vpack.c.bf16 %v2780_v48, %v2776_v35  ;;  %v3015_v34 = vld [vmem:[#allocation17 + $0xb58] sm:$0xff] }
 0x390   : > { %v3019_v50 = vld [vmem:[#allocation17 + $0xb78] sm:$0xff] }
 0x391   : > { %4811 = vmatpush1.bf16.msra.mxu1 %v4810_v39  ;;  %v2779_v39 = vld [vmem:[#allocation17 + $0x970] sm:$0xff]  ;;  %v4940_v48 = vpack.c.bf16 %v3019_v50, %v3015_v34 }
 0x392   : > { %4813 = vmatprep.subr.bf16.mxu1 %v4812_v41  ;;  %v2784_v41 = vld [vmem:[#allocation17 + $0x998] sm:$0xff]  ;;  %v4878_v0 = vpack.c.bf16 %v2779_v39, %v2775_v47  ;;  %v3253_v50 = vld [vmem:[#allocation17 + $0xd50] sm:$0xff] }
 0x393   : > { %v4880_v44 = vpack.c.bf16 %v2788_v42, %v2784_v41  ;;  %v3023_v47 = vld [vmem:[#allocation17 + $0xb98] sm:$0xff] }
 0x394   : > { %v3027_v39 = vld [vmem:[#allocation17 + $0xbb8] sm:$0xff] }
 0x395   : > { %4815 = vmatpush1.bf16.msra.mxu1 %v4814_v51  ;;  %v2787_v51 = vld [vmem:[#allocation17 + $0x9b0] sm:$0xff]  ;;  %v4944_v42 = vpack.c.bf16 %v3027_v39, %v3023_v47 }
 0x396   : > { %4817 = vmatprep.subr.bf16.mxu1 %v4816_v55  ;;  %v4882_v61 = vpack.c.bf16 %v2787_v51, %v2783_v46  ;;  %v3031_v46 = vld [vmem:[#allocation17 + $0xbd8] sm:$0xff]  ;;  %v3261_v39 = vld [vmem:[#allocation17 + $0xd90] sm:$0xff] }
 0x397   : > { %v3035_v51 = vld [vmem:[#allocation17 + $0xbf8] sm:$0xff] }
 0x399   : > { %4819 = vmatpush1.bf16.msra.mxu1 %v4818_v63  ;;  %v4884_v63 = vpack.c.bf16 %v2796_v57, %v2792_v56  ;;  %v4948_v57 = vpack.c.bf16 %v3035_v51, %v3031_v46  ;;  %v3269_v51 = vld [vmem:[#allocation17 + $0xdd0] sm:$0xff] }
 0x39a   : > { %4821 = vmatprep.subr.bf16.mxu1 %v4820_v1  ;;  %v2791_v1 = vld [vmem:[#allocation17 + $0x9d0] sm:$0xff] }
 0x39b   : > { %v4886_v6 = vpack.c.bf16 %v2795_v3, %v2791_v1  ;;  %v3214_v1 = vld [vmem:[#allocation17 + $0xc18] sm:$0xff] }
 0x39c   : > { %v3218_v3 = vld [vmem:[#allocation17 + $0xc38] sm:$0xff] }
 0x39d   : > { %4823 = vmatpush1.bf16.msra.mxu1 %v4822_v8  ;;  %v4920_v8 = vpack.c.bf16 %v2979_v5, %v2975_v4  ;;  %v4984_v5 = vpack.c.bf16 %v3218_v3, %v3214_v1 }
 0x39e   : > { %4857 = vmatprep.subr.bf16.mxu1 %v4856_v9  ;;  %v2974_v9 = vld [vmem:[#allocation17 + $0xa10] sm:$0xff] }
 0x39f   : > { %v4922_v14 = vpack.c.bf16 %v2978_v11, %v2974_v9  ;;  %v3222_v9 = vld [vmem:[#allocation17 + $0xc58] sm:$0xff] }
 0x3a0   : > { %2694 = vmatmul.mubr.f32.vlgmr.msra.gmra.mrb[4].mxu1 %v6327_v54  ;;  %v4870_v54 = vpack.c.bf16 %v2763_v30, %v2759_v29  ;;  %v3002_v29 = vld [vmem:[#allocation17 + $0xaf0] sm:$0xff]  ;;  %v3007_v30 = vld [vmem:[#allocation17 + $0xb18] sm:$0xff] }
 0x3a1   : > { %4859 = vmatpush1.bf16.msra.mxu1 %v4858_v15  ;;  %2932 = vmatprep.mubr.f32.mxu1 %v5766_v52  ;;  %v4924_v15 = vpack.c.bf16 %v2987_v13, %v2983_v12  ;;  %v4936_v31 = vpack.c.bf16 %v3011_v7, %v3007_v30  ;;  %v3226_v11 = vld [vmem:[#allocation17 + $0xc78] sm:$0xff]  ;;  %v3245_v7 = vld [vmem:[#allocation17 + $0xd10] sm:$0xff] }
 0x3a2   : > { %4861 = vmatprep.subr.bf16.mxu1 %v4860_v16  ;;  %v2982_v16 = vld [vmem:[#allocation17 + $0xa50] sm:$0xff]  ;;  %v4988_v13 = vpack.c.bf16 %v3226_v11, %v3222_v9  ;;  %v3461_v9 = vld [vmem:[#allocation17 + $0xe58] sm:$0xff] }
 0x3a3   : > { %v4926_v20 = vpack.c.bf16 %v2986_v17, %v2982_v16  ;;  %v3230_v16 = vld [vmem:[#allocation17 + $0xc98] sm:$0xff] }
 0x3a4   : > { %v3234_v17 = vld [vmem:[#allocation17 + $0xcb8] sm:$0xff] }
 0x3a5   : > { %4863 = vmatpush1.bf16.msra.mxu1 %v4862_v21  ;;  %v4928_v21 = vpack.c.bf16 %v2995_v19, %v2991_v18  ;;  %v4992_v19 = vpack.c.bf16 %v3234_v17, %v3230_v16  ;;  %v3465_v11 = vld [vmem:[#allocation17 + $0xe78] sm:$0xff] }
 0x3a6   : > { %4865 = vmatprep.subr.bf16.mxu1 %v4864_v22  ;;  %v2990_v22 = vld [vmem:[#allocation17 + $0xa90] sm:$0xff] }
 0x3a7   : > { %v4930_v10 = vpack.c.bf16 %v2994_v49, %v2990_v22  ;;  %v3238_v22 = vld [vmem:[#allocation17 + $0xcd8] sm:$0xff] }
 0x3a8   : > { %v3242_v49 = vld [vmem:[#allocation17 + $0xcf8] sm:$0xff] }
 0x3a9   : > { %4867 = vmatpush1.bf16.msra.mxu1 %v4866_v26  ;;  %v4932_v26 = vpack.c.bf16 %v3003_v25, %v2999_v24  ;;  %v4996_v25 = vpack.c.bf16 %v3242_v49, %v3238_v22  ;;  %v3469_v22 = vld [vmem:[#allocation17 + $0xe98] sm:$0xff] }
 0x3aa   : > { %4869 = vmatprep.subr.bf16.mxu1 %v4868_v28  ;;  %v2998_v28 = vld [vmem:[#allocation17 + $0xad0] sm:$0xff]  ;;  %v3473_v49 = vld [vmem:[#allocation17 + $0xeb8] sm:$0xff] }
 0x3ad   : > { %4871 = vmatpush1.bf16.msra.mxu1 %v4870_v54  ;;  %v3006_v54 = vld [vmem:[#allocation17 + $0xb10] sm:$0xff] }
 0x3ae   : > { %4873 = vmatprep.subr.bf16.mxu1 %v4872_v33  ;;  %v3010_v33 = vld [vmem:[#allocation17 + $0xb30] sm:$0xff] }
 0x3af   : > { %v4938_v35 = vpack.c.bf16 %v3010_v33, %v3006_v54  ;;  %v3258_v54 = vld [vmem:[#allocation17 + $0xd78] sm:$0xff] }
 0x3b1   : > { %4875 = vmatpush1.bf16.msra.mxu1 %v4874_v37  ;;  %v3014_v37 = vld [vmem:[#allocation17 + $0xb50] sm:$0xff] }
 0x3b2   : > { %4877 = vmatprep.subr.bf16.mxu1 %v4876_v38  ;;  %v3018_v38 = vld [vmem:[#allocation17 + $0xb70] sm:$0xff] }
 0x3b3   : > { %v6391_v55 = vpop.f32.mrb[2].mxu1  ;;  %v4942_v41 = vpack.c.bf16 %v3018_v38, %v3014_v37  ;;  %v3266_v37 = vld [vmem:[#allocation17 + $0xdb8] sm:$0xff] }
 0x3b4   : > { %v6393_v59 = vpop.f32.mrb[3].mxu1 }
 0x3b5   : > { %4879 = vmatpush1.bf16.msra.mxu1 %v4878_v0  ;;  %v3022_v0 = vld [vmem:[#allocation17 + $0xb90] sm:$0xff] }
 0x3b6   : > { %4881 = vmatprep.subr.bf16.mxu1 %v4880_v44  ;;  %v3026_v44 = vld [vmem:[#allocation17 + $0xbb0] sm:$0xff] }
 0x3b7   : > { %v4946_v56 = vpack.c.bf16 %v3026_v44, %v3022_v0  ;;  %v3274_v0 = vld [vmem:[#allocation17 + $0xdf8] sm:$0xff] }
 0x3b9   : > { %4883 = vmatpush1.bf16.msra.mxu1 %v4882_v61  ;;  %v3030_v61 = vld [vmem:[#allocation17 + $0xbd0] sm:$0xff] }
 0x3ba   : > { %4885 = vmatprep.subr.bf16.mxu1 %v4884_v63  ;;  %v3034_v63 = vld [vmem:[#allocation17 + $0xbf0] sm:$0xff] }
 0x3bb   : > { %v4950_v4 = vpack.c.bf16 %v3034_v63, %v3030_v61  ;;  %v3457_v61 = vld [vmem:[#allocation17 + $0xe38] sm:$0xff]  ;;  %v6399_v63 = vld [vmem:[#allocation19] sm:$0xf] }
 0x3bd   : > { %4887 = vmatpush1.bf16.msra.mxu1 %v4886_v6  ;;  %v3213_v6 = vld [vmem:[#allocation17 + $0xc10] sm:$0xff] }
 0x3be   : > { %4921 = vmatprep.subr.bf16.mxu1 %v4920_v8  ;;  %v3217_v8 = vld [vmem:[#allocation17 + $0xc30] sm:$0xff] }
 0x3bf   : > { %v4986_v12 = vpack.c.bf16 %v3217_v8, %v3213_v6  ;;  %v1486_v6 = vrot.slane %v6383_v62, %v6256_v58  ;;  %v3904_v8 = vrot.slane %v6399_v63, %v6256_v58  ;;  %v5052_v62 = vpack.c.bf16 %v3465_v11, %v3461_v9  ;;  %v3691_v9 = vld [vmem:[#allocation17 + $0x1010] sm:$0xff] }
 0x3c0   : > { %2933 = vmatmul.mubr.f32.vlgmr.msra.gmra.mrb[4].mxu1 %v6340_v23  ;;  %v4934_v23 = vpack.c.bf16 %v3002_v29, %v2998_v28  ;;  %v3246_v28 = vld [vmem:[#allocation17 + $0xd18] sm:$0xff]  ;;  %v3695_v11 = vld [vmem:[#allocation17 + $0x1030] sm:$0xff] }
 0x3c1   : > { %4923 = vmatpush1.bf16.msra.mxu1 %v4922_v14  ;;  %3171 = vmatprep.mubr.f32.mxu1 %v5766_v52  ;;  %v3221_v14 = vld [vmem:[#allocation17 + $0xc50] sm:$0xff]  ;;  %v3250_v29 = vld [vmem:[#allocation17 + $0xd38] sm:$0xff] }
 0x3c2   : > { %4925 = vmatprep.subr.bf16.mxu1 %v4924_v15  ;;  %v3225_v15 = vld [vmem:[#allocation17 + $0xc70] sm:$0xff]  ;;  %v5000_v30 = vpack.c.bf16 %v3250_v29, %v3246_v28  ;;  %v3481_v28 = vld [vmem:[#allocation17 + $0xef8] sm:$0xff] }
 0x3c3   : > { %v4990_v18 = vpack.c.bf16 %v3225_v15, %v3221_v14  ;;  %v3908_v14 = vrot.slane %v6399_v63, %v6231_v43 }
 0x3c5   : > { %4927 = vmatpush1.bf16.msra.mxu1 %v4926_v20  ;;  %v3229_v20 = vld [vmem:[#allocation17 + $0xc90] sm:$0xff] }
 0x3c6   : > { %4929 = vmatprep.subr.bf16.mxu1 %v4928_v21  ;;  %v3233_v21 = vld [vmem:[#allocation17 + $0xcb0] sm:$0xff] }
 0x3c7   : > { %v4994_v24 = vpack.c.bf16 %v3233_v21, %v3229_v20  ;;  %v3464_v20 = vld [vmem:[#allocation17 + $0xe70] sm:$0xff] }
 0x3c9   : > { %4931 = vmatpush1.bf16.msra.mxu1 %v4930_v10  ;;  %v3237_v10 = vld [vmem:[#allocation17 + $0xcd0] sm:$0xff] }
 0x3ca   : > { %4933 = vmatprep.subr.bf16.mxu1 %v4932_v26  ;;  %v3241_v26 = vld [vmem:[#allocation17 + $0xcf0] sm:$0xff] }
 0x3cd   : > { %4935 = vmatpush1.bf16.msra.mxu1 %v4934_v23  ;;  %v3249_v23 = vld [vmem:[#allocation17 + $0xd30] sm:$0xff] }
 0x3ce   : > { %4937 = vmatprep.subr.bf16.mxu1 %v4936_v31  ;;  %v3254_v31 = vld [vmem:[#allocation17 + $0xd58] sm:$0xff]  ;;  %v5002_v33 = vpack.c.bf16 %v3249_v23, %v3245_v7 }
 0x3cf   : > { %v5004_v34 = vpack.c.bf16 %v3258_v54, %v3254_v31  ;;  %v3485_v7 = vld [vmem:[#allocation17 + $0xf18] sm:$0xff] }
 0x3d0   : > { %v3489_v23 = vld [vmem:[#allocation17 + $0xf38] sm:$0xff] }
 0x3d1   : > { %4939 = vmatpush1.bf16.msra.mxu1 %v4938_v35  ;;  %v3257_v35 = vld [vmem:[#allocation17 + $0xd70] sm:$0xff]  ;;  %v5064_v54 = vpack.c.bf16 %v3489_v23, %v3485_v7 }
 0x3d2   : > { %4941 = vmatprep.subr.bf16.mxu1 %v4940_v48  ;;  %v3262_v48 = vld [vmem:[#allocation17 + $0xd98] sm:$0xff]  ;;  %v5006_v38 = vpack.c.bf16 %v3257_v35, %v3253_v50 }
 0x3d3   : > { %v5008_v47 = vpack.c.bf16 %v3266_v37, %v3262_v48  ;;  %v3493_v50 = vld [vmem:[#allocation17 + $0xf58] sm:$0xff] }
 0x3d4   : > { %v3497_v35 = vld [vmem:[#allocation17 + $0xf78] sm:$0xff] }
 0x3d5   : > { %4943 = vmatpush1.bf16.msra.mxu1 %v4942_v41  ;;  %v3265_v41 = vld [vmem:[#allocation17 + $0xdb0] sm:$0xff]  ;;  %v5068_v37 = vpack.c.bf16 %v3497_v35, %v3493_v50 }
 0x3d6   : > { %4945 = vmatprep.subr.bf16.mxu1 %v4944_v42  ;;  %v3270_v42 = vld [vmem:[#allocation17 + $0xdd8] sm:$0xff]  ;;  %v5010_v44 = vpack.c.bf16 %v3265_v41, %v3261_v39 }
 0x3d7   : > { %v5012_v46 = vpack.c.bf16 %v3274_v0, %v3270_v42  ;;  %v3501_v39 = vld [vmem:[#allocation17 + $0xf98] sm:$0xff] }
 0x3d8   : > { %v3505_v41 = vld [vmem:[#allocation17 + $0xfb8] sm:$0xff] }
 0x3d9   : > { %4947 = vmatpush1.bf16.msra.mxu1 %v4946_v56  ;;  %v3273_v56 = vld [vmem:[#allocation17 + $0xdf0] sm:$0xff]  ;;  %v5072_v0 = vpack.c.bf16 %v3505_v41, %v3501_v39 }
 0x3da   : > { %4949 = vmatprep.subr.bf16.mxu1 %v4948_v57  ;;  %v3453_v57 = vld [vmem:[#allocation17 + $0xe18] sm:$0xff]  ;;  %v5014_v1 = vpack.c.bf16 %v3273_v56, %v3269_v51 }
 0x3db   : > { %v5048_v3 = vpack.c.bf16 %v3457_v61, %v3453_v57  ;;  %v3509_v51 = vld [vmem:[#allocation17 + $0xfd8] sm:$0xff] }
 0x3dc   : > { %v3513_v56 = vld [vmem:[#allocation17 + $0xff8] sm:$0xff] }
 0x3dd   : > { %4951 = vmatpush1.bf16.msra.mxu1 %v4950_v4  ;;  %v3452_v4 = vld [vmem:[#allocation17 + $0xe10] sm:$0xff]  ;;  %v5076_v61 = vpack.c.bf16 %v3513_v56, %v3509_v51  ;;  %v3912_v51 = vrot.slane %v6399_v63, %v6271_v45  ;;  %v1498_v56 = vrot.slane %v6393_v59, %v6256_v58 }
 0x3de   : > { %4985 = vmatprep.subr.bf16.mxu1 %v4984_v5  ;;  %v3456_v5 = vld [vmem:[#allocation17 + $0xe30] sm:$0xff] }
 0x3df   : > { %v5050_v17 = vpack.c.bf16 %v3456_v5, %v3452_v4  ;;  %v3692_v4 = vld [vmem:[#allocation17 + $0x1018] sm:$0xff] }
 0x3e0   : > { %3172 = vmatmul.mubr.f32.vlgmr.msra.gmra.mrb[4].mxu1 %v6347_v27  ;;  %v4998_v27 = vpack.c.bf16 %v3241_v26, %v3237_v10  ;;  %v3472_v10 = vld [vmem:[#allocation17 + $0xeb0] sm:$0xff]  ;;  %v3477_v26 = vld [vmem:[#allocation17 + $0xed8] sm:$0xff] }
 0x3e1   : > { %4987 = vmatpush1.bf16.msra.mxu1 %v4986_v12  ;;  %3410 = vmatprep.mubr.f32.mxu1 %v5766_v52  ;;  %v1490_v12 = vrot.slane %v6385_v2, %v6256_v58  ;;  %v5056_v2 = vpack.c.bf16 %v3473_v49, %v3469_v22  ;;  %v3696_v5 = vld [vmem:[#allocation17 + $0x1038] sm:$0xff]  ;;  %v3711_v22 = vld [vmem:[#allocation17 + $0x10b0] sm:$0xff] }
 0x3e2   : > { %4989 = vmatprep.subr.bf16.mxu1 %v4988_v13  ;;  %v3716_v49 = vld [vmem:[#allocation17 + $0x10d8] sm:$0xff] }
 0x3e5   : > { %4991 = vmatpush1.bf16.msra.mxu1 %v4990_v18 }
 0x3e6   : > { %4993 = vmatprep.subr.bf16.mxu1 %v4992_v19  ;;  %v3460_v19 = vld [vmem:[#allocation17 + $0xe50] sm:$0xff] }
 0x3e7   : > { %v5054_v43 = vpack.c.bf16 %v3464_v20, %v3460_v19 }
 0x3e9   : > { %4995 = vmatpush1.bf16.msra.mxu1 %v4994_v24 }
 0x3ea   : > { %4997 = vmatprep.subr.bf16.mxu1 %v4996_v25  ;;  %v3468_v25 = vld [vmem:[#allocation17 + $0xe90] sm:$0xff] }
 0x3eb   : > { %v5058_v29 = vpack.c.bf16 %v3472_v10, %v3468_v25  ;;  %v3715_v25 = vld [vmem:[#allocation17 + $0x10d0] sm:$0xff] }
 0x3ec   : > { %v3719_v10 = vld [vmem:[#allocation17 + $0x10f0] sm:$0xff] }
 0x3ed   : > { %4999 = vmatpush1.bf16.msra.mxu1 %v4998_v27  ;;  %v3476_v27 = vld [vmem:[#allocation17 + $0xed0] sm:$0xff] }
 0x3ee   : > { %5001 = vmatprep.subr.bf16.mxu1 %v5000_v30  ;;  %v3480_v30 = vld [vmem:[#allocation17 + $0xef0] sm:$0xff] }
 0x3ef   : > { %v5062_v31 = vpack.c.bf16 %v3480_v30, %v3476_v27  ;;  %v3732_v27 = vld [vmem:[#allocation17 + $0x1158] sm:$0xff] }
 0x3f0   : > { %v3736_v30 = vld [vmem:[#allocation17 + $0x1178] sm:$0xff] }
 0x3f1   : > { %5003 = vmatpush1.bf16.msra.mxu1 %v5002_v33  ;;  %v3484_v33 = vld [vmem:[#allocation17 + $0xf10] sm:$0xff]  ;;  %v5132_v23 = vpack.c.bf16 %v3736_v30, %v3732_v27 }
 0x3f2   : > { %5005 = vmatprep.subr.bf16.mxu1 %v5004_v34  ;;  %v3488_v34 = vld [vmem:[#allocation17 + $0xf30] sm:$0xff] }
 0x3f3   : > { %v5066_v48 = vpack.c.bf16 %v3488_v34, %v3484_v33  ;;  %v3740_v33 = vld [vmem:[#allocation17 + $0x1198] sm:$0xff] }
 0x3f4   : > { %v3744_v34 = vld [vmem:[#allocation17 + $0x11b8] sm:$0xff] }
 0x3f5   : > { %5007 = vmatpush1.bf16.msra.mxu1 %v5006_v38  ;;  %v3492_v38 = vld [vmem:[#allocation17 + $0xf50] sm:$0xff]  ;;  %v5136_v35 = vpack.c.bf16 %v3744_v34, %v3740_v33 }
 0x3f6   : > { %5009 = vmatprep.subr.bf16.mxu1 %v5008_v47  ;;  %v3496_v47 = vld [vmem:[#allocation17 + $0xf70] sm:$0xff] }
 0x3f7   : > { %v5070_v42 = vpack.c.bf16 %v3496_v47, %v3492_v38  ;;  %v3748_v38 = vld [vmem:[#allocation17 + $0x11d8] sm:$0xff] }
 0x3f8   : > { %v3752_v47 = vld [vmem:[#allocation17 + $0x11f8] sm:$0xff] }
 0x3f9   : > { %5011 = vmatpush1.bf16.msra.mxu1 %v5010_v44  ;;  %v3500_v44 = vld [vmem:[#allocation17 + $0xf90] sm:$0xff]  ;;  %v5140_v41 = vpack.c.bf16 %v3752_v47, %v3748_v38 }
 0x3fa   : > { %5013 = vmatprep.subr.bf16.mxu1 %v5012_v46  ;;  %v3504_v46 = vld [vmem:[#allocation17 + $0xfb0] sm:$0xff] }
 0x3fb   : > { %v5074_v57 = vpack.c.bf16 %v3504_v46, %v3500_v44  ;;  %v1494_v46 = vrot.slane %v6391_v55, %v6256_v58 }
 0x3fc   : > { %v3819_v13 = vpop.f32.mrb[2].mxu0 }
 0x3fd   : > { %v5146_v15 = vadd.f32 %v3819_v13, %v1486_v6  ;;  %5015 = vmatpush1.bf16.msra.mxu1 %v5014_v1  ;;  %v3821_v16 = vpop.f32.mrb[3].mxu0  ;;  %v3508_v1 = vld [vmem:[#allocation17 + $0xfd0] sm:$0xff]  ;;  %v3704_v13 = vld [vmem:[#allocation17 + $0x1078] sm:$0xff] }
 0x3fe   : > { %v5147_v18 = vadd.f32 %v3821_v16, %v1490_v12  ;;  %5049 = vmatprep.subr.bf16.mxu1 %v5048_v3  ;;  %v3512_v3 = vld [vmem:[#allocation17 + $0xff0] sm:$0xff]  ;;  %v3700_v12 = vld [vmem:[#allocation17 + $0x1058] sm:$0xff] }
 0x3ff   : > { %v3921_v21 = vadd.f32 %v5146_v15, %v3904_v8  ;;  %v5078_v6 = vpack.c.bf16 %v3512_v3, %v3508_v1  ;;  %v5112_v8 = vpack.c.bf16 %v3696_v5, %v3692_v4  ;;  %v5116_v15 = vpack.c.bf16 %v3704_v13, %v3700_v12  ;;  %v3699_v16 = vld [vmem:[#allocation17 + $0x1050] sm:$0xff] }
 0x400   : > { %v3922_v24 = vadd.f32 %v5147_v18, %v3908_v14  ;;  %3411 = vmatmul.mubr.f32.vlgmr.msra.gmra.mrb[4].mxu1 %v6357_v32  ;;  %v5060_v32 = vpack.c.bf16 %v3481_v28, %v3477_v26  ;;  %v5114_v14 = vpack.c.bf16 %v3695_v11, %v3691_v9  ;;  %v3708_v18 = vld [vmem:[#allocation17 + $0x1098] sm:$0xff] }
 0x401   : > { %3925 = vst [vmem:[%s6411_s3] sm:$0xff] %v3921_v21  ;;  %5051 = vmatpush1.bf16.msra.mxu1 %v5050_v17  ;;  %3649 = vmatprep.mubr.f32.mxu1 %v5766_v52  ;;  %v3703_v17 = vld [vmem:[#allocation17 + $0x1070] sm:$0xff]  ;;  %v3724_v26 = vld [vmem:[#allocation17 + $0x1118] sm:$0xff] }
 0x402   : > { %3926 = vst [vmem:[%s6411_s3 + $0x8] sm:$0xff] %v3922_v24  ;;  %5053 = vmatprep.subr.bf16.mxu1 %v5052_v62  ;;  %v3712_v62 = vld [vmem:[#allocation17 + $0x10b8] sm:$0xff]  ;;  %v5118_v19 = vpack.c.bf16 %v3703_v17, %v3699_v16  ;;  %v3707_v21 = vld [vmem:[#allocation17 + $0x1090] sm:$0xff] }
 0x403   : > { %v5120_v20 = vpack.c.bf16 %v3712_v62, %v3708_v18  ;;  %v3720_v24 = vld [vmem:[#allocation17 + $0x10f8] sm:$0xff] }
 0x404   : > { %v3728_v28 = vld [vmem:[#allocation17 + $0x1138] sm:$0xff] }
 0x405   : > { %5055 = vmatpush1.bf16.msra.mxu1 %v5054_v43  ;;  %v5122_v43 = vpack.c.bf16 %v3711_v22, %v3707_v21 }
 0x406   : > { %5057 = vmatprep.subr.bf16.mxu1 %v5056_v2  ;;  %v5124_v2 = vpack.c.bf16 %v3720_v24, %v3716_v49 }
 0x409   : > { %5059 = vmatpush1.bf16.msra.mxu1 %v5058_v29  ;;  %v5128_v29 = vpack.c.bf16 %v3728_v28, %v3724_v26 }
 0x40a   : > { %5061 = vmatprep.subr.bf16.mxu1 %v5060_v32  ;;  %v3723_v32 = vld [vmem:[#allocation17 + $0x1110] sm:$0xff] }
 0x40d   : > { %5063 = vmatpush1.bf16.msra.mxu1 %v5062_v31  ;;  %v3731_v31 = vld [vmem:[#allocation17 + $0x1150] sm:$0xff] }
 0x40e   : > { %5065 = vmatprep.subr.bf16.mxu1 %v5064_v54  ;;  %v3735_v54 = vld [vmem:[#allocation17 + $0x1170] sm:$0xff] }
 0x40f   : > { %v5134_v50 = vpack.c.bf16 %v3735_v54, %v3731_v31 }
 0x411   : > { %5067 = vmatpush1.bf16.msra.mxu1 %v5066_v48  ;;  %v3739_v48 = vld [vmem:[#allocation17 + $0x1190] sm:$0xff] }
 0x412   : > { %5069 = vmatprep.subr.bf16.mxu1 %v5068_v37  ;;  %v3743_v37 = vld [vmem:[#allocation17 + $0x11b0] sm:$0xff] }
 0x413   : > { %v5138_v39 = vpack.c.bf16 %v3743_v37, %v3739_v48 }
 0x415   : > { %5071 = vmatpush1.bf16.msra.mxu1 %v5070_v42  ;;  %v3747_v42 = vld [vmem:[#allocation17 + $0x11d0] sm:$0xff] }
 0x416   : > { %5073 = vmatprep.subr.bf16.mxu1 %v5072_v0  ;;  %v3751_v0 = vld [vmem:[#allocation17 + $0x11f0] sm:$0xff] }
 0x417   : > { %v5142_v44 = vpack.c.bf16 %v3751_v0, %v3747_v42 }
 0x419   : > { %5075 = vmatpush1.bf16.msra.mxu1 %v5074_v57 }
 0x41a   : > { %5077 = vmatprep.subr.bf16.mxu1 %v5076_v61  ;;  %v3916_v61 = vrot.slane %v6399_v63, %v820_v60 }
 0x41d   : > { %5079 = vmatpush1.bf16.msra.mxu1 %v5078_v6 }
 0x41e   : > { %5113 = vmatprep.subr.bf16.mxu1 %v5112_v8 }
 0x420   : > { %3650 = vmatmul.mubr.f32.vlgmr.msra.gmra.mrb[4].mxu1 %v6367_v53  ;;  %v5126_v53 = vpack.c.bf16 %v3719_v10, %v3715_v25 }
 0x421   : > { %5115 = vmatpush1.bf16.msra.mxu1 %v5114_v14  ;;  %3888 = vmatprep.mubr.f32.mxu1 %v5766_v52  ;;  %v3727_v52 = vld [vmem:[#allocation17 + $0x1130] sm:$0xff] }
 0x422   : > { %5117 = vmatprep.subr.bf16.mxu1 %v5116_v15  ;;  %v5130_v7 = vpack.c.bf16 %v3727_v52, %v3723_v32 }
 0x425   : > { %5119 = vmatpush1.bf16.msra.mxu1 %v5118_v19 }
 0x426   : > { %5121 = vmatprep.subr.bf16.mxu1 %v5120_v20 }
 0x429   : > { %5123 = vmatpush1.bf16.msra.mxu1 %v5122_v43 }
 0x42a   : > { %5125 = vmatprep.subr.bf16.mxu1 %v5124_v2 }
 0x42d   : > { %5127 = vmatpush1.bf16.msra.mxu1 %v5126_v53 }
 0x42e   : > { %5129 = vmatprep.subr.bf16.mxu1 %v5128_v29 }
 0x431   : > { %5131 = vmatpush1.bf16.msra.mxu1 %v5130_v7 }
 0x432   : > { %5133 = vmatprep.subr.bf16.mxu1 %v5132_v23 }
 0x435   : > { %5135 = vmatpush1.bf16.msra.mxu1 %v5134_v50 }
 0x436   : > { %5137 = vmatprep.subr.bf16.mxu1 %v5136_v35 }
 0x439   : > { %5139 = vmatpush1.bf16.msra.mxu1 %v5138_v39 }
 0x43a   : > { %5141 = vmatprep.subr.bf16.mxu1 %v5140_v41 }
 0x43d   : > { %5143 = vmatpush1.bf16.msra.mxu1 %v5142_v44 }
 0x440   : > { %3889 = vmatmul.mubr.f32.vlgmr.msra.gmra.mrb[4].mxu1 %v6376_v40 }
 0x513   : > { %v3890_v57 = vpop.f32.mrb[4].mxu1 }
 0x514   : > { %v5148_v1 = vadd.f32 %v3890_v57, %v1494_v46  ;;  %v3892_v3 = vpop.f32.mrb[5].mxu1 }
 0x515   : > { %v5149_v40 = vadd.f32 %v3892_v3, %v1498_v56 }
 0x516   : > { %v3923_v4 = vadd.f32 %v5148_v1, %v3912_v51 }
 0x517   : > { %v3924_v55 = vadd.f32 %v5149_v40, %v3916_v61 }
 0x518   : > { %3927 = vst [vmem:[%s6411_s3 + $0x10] sm:$0xff] %v3923_v4 }
 0x519   : > { %3928 = vst [vmem:[%s6411_s3 + $0x18] sm:$0xff] %v3924_v55 }
 0x51a   : > { %5673 = shalt.err (!%p5670_p5)
}
 0x51b   : > { %s5674_s0 = scalar_lea.hbm %s6433_s1, 512  ;;  %s5678_s14 = scalar_lea.hbm %s6535_s28, 1024 }
 0x51c   : > { %p5675_p7 = scmp.ne.s32.totalorder %s6433_s1, %s5674_s0  ;;  %p5679_p12 = scmp.lt.u32.totalorder %s6433_s1, %s6535_s28 }
 0x51d   : > { %p5680_p1 = scmp.lt.u32.totalorder %s5678_s14, %s5674_s0  ;;  %p5682_p0 = scmp.lt.u32.totalorder %s5674_s0, %s6433_s1 }
 0x51e   : > { %p5676_p6 = pnand %p5675_p7, %p6536_p2 }
 0x51f   : > { %p5681_p13 = por %p5680_p1, %p5679_p12 }
 0x520   : > { %p5677_p9 = pneg %p5676_p6 }
 0x521   : > { %p5683_p3 = por %p5682_p0, %p5681_p13 }
 0x523   : > { %p5684_p4 = pnand %p5683_p3, %p5677_p9 }
 0x525   : > { %5687 = shalt.err (!%p5684_p4)
}
 0x526   : > { %5235 = dma.vmem_to_hbm [thread:$0]  (%p6536_p2), %s6435_s22, 512, %s6433_s1, %s3930_s4  }
 0x527 PF: > { %s3956_s24 = sand.u32 1, %s5734_s29   ;;  %p6537_p10 = scmp.ne.s32.totalorder %s6517_s26, 0 }
 0x528   : > { %p6538_p11 = scmp.ge.s32.totalorder %s5746_s16, 2  ;;  %s3957_s19 = scalar_lea.sflag [#allocation4], %s3956_s24 }
 0x52a   : > { %p5273_p8 = pnand %p6538_p11, %p6537_p10 }
 0x52c   : > { %5729 = dma.done.wait (!%p5273_p8), %s3957_s19, 512  }
 0x52d   : > { %5731 = vsyncadd (!%p5273_p8), %s3957_s19, 4294966784  ;;  %p32_p5 = scmp.ge.s32.totalorder %s6103_s23, 4   ;;  %s6539_s29 = smov %s5738_s30 }
 0x52e   : > { %s6540_s30 = smov %s5742_s15  ;;  %s6541_s15 = smov %s6114_s2 }
 0x52f   : > { %s6542_s16 = smov %s6103_s23  ;;  %34 = sbr.rel (!%p32_p5) target bundleno = 18 (0x12), region = 186 }
 0x536   :  { %3962 = vsyncpa [#allocation3], 1 }
 0x537   :  { %3964 = vsyncpa [#allocation3 + $0x1], 1 }
 0x538   :  { %3965 = vsyncpa [#allocation6], 1 }
 0x539   :  { %3966 = vsyncpa [#allocation9], 1 }
 0x53a   :  { %3967 = vsyncpa [#allocation12], 1 }
 0x53b   :  { %3968 = vsyncpa [#allocation15], 1 }
 0x53c   :  { %3969 = vsyncpa [#allocation18], 1 }
 0x53d   :  { %3970 = vsyncpa [#allocation4], 1 }
 0x53e   :  { %3972 = vsyncpa [#allocation4 + $0x1], 1 }

</bundles_post_ra>
